<compile_context>
chip_gen: v6e
topology: v6e:2x2x1
jax: 0.10.0
libtpu: 0.0.40
codegen_flags: <defaults>
</compile_context>

<pallas_src>
import functools

import jax
import jax.numpy as jnp
from jax.experimental import pallas as pl
from jax.experimental.pallas import tpu as pltpu

LN_EPS = 1e-5     # torch nn.LayerNorm default eps
RMS_EPS = 1e-8    # RMSNorm eps in the reference module


# ----------------------------- in-kernel helpers -----------------------------

def _layernorm(v, w, b, eps=LN_EPS):
    v = v.astype(jnp.float32)
    mu = jnp.mean(v, axis=-1, keepdims=True)
    var = jnp.mean((v - mu) ** 2, axis=-1, keepdims=True)
    return (v - mu) * jax.lax.rsqrt(var + eps) * w + b


def _rmsnorm(v, gamma, eps=RMS_EPS):
    # matches: x / clamp(||x|| * dim**-0.5, min=eps) * gamma  (over last axis)
    dh = v.shape[-1]
    norm = jnp.sqrt(jnp.sum(v * v, axis=-1, keepdims=True)) * (dh ** (-0.5))
    return v / jnp.maximum(norm, eps) * gamma


# --------------------------------- fused kernel -------------------------------

def fused_kernel(x_ref, pos_ref, lat0_ref,
                 lnx_w, lnx_b, lnl_w, lnl_b,
                 q_w, k_w, v_w, lk_w, lv_w,
                 q_g, k_g, out_w, out_b,
                 ff_ln_w, ff_ln_b, w1, b1, w2, b2,
                 final_w, final_b,
                 o_ref, lat_sc,
                 *, heads, dim_head, l2_normalize):
    # TODO(synk): the optional `mask` argument of PerceiverAttention is not
    # exercised here (forward is called with mask=None).
    d_idx = pl.program_id(1)
    n_layers = pl.num_programs(1)

    @pl.when(d_idx == 0)
    def _init():
        lat_sc[...] = lat0_ref[...]                 # latents resident in VMEM

    lat = lat_sc[...]                               # (m, dl) f32
    m_rows = lat.shape[0]

    # -------- PerceiverAttention (pos-emb add fused, bf16 matmuls, f32 norms) --
    x = x_ref[0] + pos_ref[...]                     # (n, dim) f32
    n_rows = x.shape[0]
    xn = _layernorm(x, lnx_w[0], lnx_b[0]).astype(jnp.bfloat16)
    latn = _layernorm(lat, lnl_w[0], lnl_b[0]).astype(jnp.bfloat16)

    q = jnp.dot(latn, q_w[0], preferred_element_type=jnp.float32)    # (m, inner)
    kx = jnp.dot(xn, k_w[0], preferred_element_type=jnp.float32)     # (n, inner)
    vx = jnp.dot(xn, v_w[0], preferred_element_type=jnp.float32)     # (n, inner)
    kl = jnp.dot(latn, lk_w[0], preferred_element_type=jnp.float32)  # (m, inner)
    vl = jnp.dot(latn, lv_w[0], preferred_element_type=jnp.float32)  # (m, inner)

    def to_heads(t, rows):
        # (rows, heads*dh) -> (heads, rows, dh) for batched-head einsums
        return jnp.transpose(t.reshape(rows, heads, dim_head), (1, 0, 2))

    # RMSNorm per head in one shot (attention scale folded into q_g on host).
    qh = _rmsnorm(to_heads(q, m_rows), q_g[0]).astype(jnp.bfloat16)
    kxh = _rmsnorm(to_heads(kx, n_rows), k_g[0]).astype(jnp.bfloat16)
    klh = _rmsnorm(to_heads(kl, m_rows), k_g[0]).astype(jnp.bfloat16)
    vxh = to_heads(vx, n_rows).astype(jnp.bfloat16)
    vlh = to_heads(vl, m_rows).astype(jnp.bfloat16)

    sim_x = jnp.einsum('hmd,hnd->hmn', qh, kxh,
                       preferred_element_type=jnp.float32)           # (h, m, n)
    sim_l = jnp.einsum('hmd,hkd->hmk', qh, klh,
                       preferred_element_type=jnp.float32)           # (h, m, m)

    # Two-block softmax over the concatenated [x ; latents] key axis (f32),
    # avoiding any axis-0 concatenation or column slicing.
    row_max = jnp.maximum(jnp.max(sim_x, axis=-1, keepdims=True),
                          jnp.max(sim_l, axis=-1, keepdims=True))
    e_x = jnp.exp(sim_x - row_max)
    e_l = jnp.exp(sim_l - row_max)
    inv = 1.0 / (jnp.sum(e_x, axis=-1, keepdims=True)
                 + jnp.sum(e_l, axis=-1, keepdims=True))
    p_x = (e_x * inv).astype(jnp.bfloat16)
    p_l = (e_l * inv).astype(jnp.bfloat16)

    oh = (jnp.einsum('hmn,hnd->hmd', p_x, vxh, preferred_element_type=jnp.float32)
          + jnp.einsum('hmk,hkd->hmd', p_l, vlh, preferred_element_type=jnp.float32))
    o2 = jnp.transpose(oh, (1, 0, 2)).reshape(m_rows, heads * dim_head)
    attn_out = jnp.dot(o2.astype(jnp.bfloat16), out_w[0],
                       preferred_element_type=jnp.float32) + out_b[0]
    lat = lat + attn_out                                              # residual

    # -------- FeedForward ------------------------------------------------------
    h = _layernorm(lat, ff_ln_w[0], ff_ln_b[0]).astype(jnp.bfloat16)
    h = jnp.dot(h, w1[0], preferred_element_type=jnp.float32) + b1[0]
    # exact (erf-based) GELU in f32, matching torch nn.GELU() default
    h = 0.5 * h * (1.0 + jax.lax.erf(h * (2.0 ** -0.5)))
    h = jnp.dot(h.astype(jnp.bfloat16), w2[0],
                preferred_element_type=jnp.float32) + b2[0]
    lat = lat + h                                                     # residual

    lat_sc[...] = lat

    # -------- final LayerNorm (+ optional L2 normalize), last layer only -------
    @pl.when(d_idx == n_layers - 1)
    def _finalize():
        y = _layernorm(lat, final_w[...], final_b[...])
        if l2_normalize:
            nrm = jnp.sqrt(jnp.sum(y * y, axis=-1, keepdims=True))
            y = y / jnp.maximum(nrm, 1e-12) * jnp.sqrt(jnp.float32(y.shape[-1]))
        o_ref[0] = y.astype(o_ref.dtype)


# ------------------------------ pallas wrapper --------------------------------

def perceiver_resampler(x, params, *, heads, dim_head, l2_normalize_latents=False):
    B, n, dim = x.shape
    m, dl = params['latents'].shape
    depth = params['q_w'].shape[0]
    pos = params['pos_emb'][:n]                       # (n, dim) slab, lane-dense

    per_layer_names = ('lnx_w', 'lnx_b', 'lnl_w', 'lnl_b',
                       'q_w', 'k_w', 'v_w', 'lk_w', 'lv_w',
                       'q_g', 'k_g', 'out_w', 'out_b',
                       'ff_ln_w', 'ff_ln_b', 'w1', 'b1', 'w2', 'b2')
    per_layer = [params[name] for name in per_layer_names]

    def layer_spec(w):
        # stream one layer's weights per depth step
        return pl.BlockSpec((1,) + w.shape[1:], lambda b, d: (d, 0, 0))

    def const_spec(w):
        # full array, block index constant -> stays resident in VMEM
        return pl.BlockSpec(w.shape, lambda b, d, nd=w.ndim: (0,) * nd)

    return pl.pallas_call(
        functools.partial(fused_kernel, heads=heads, dim_head=dim_head,
                          l2_normalize=l2_normalize_latents),
        out_shape=jax.ShapeDtypeStruct((B, m, dl), jnp.float32),
        grid=(B, depth),
        in_specs=[pl.BlockSpec((1, n, dim), lambda b, d: (b, 0, 0)),
                  const_spec(pos),
                  const_spec(params['latents'])]
                 + [layer_spec(w) for w in per_layer]
                 + [const_spec(params['final_ln_w']),
                    const_spec(params['final_ln_b'])],
        out_specs=pl.BlockSpec((1, m, dl), lambda b, d: (b, 0, 0)),
        scratch_shapes=[pltpu.VMEM((m, dl), jnp.float32)],
        compiler_params=pltpu.CompilerParams(
            dimension_semantics=("parallel", "arbitrary")),
    )(x, pos, params['latents'], *per_layer,
      params['final_ln_w'], params['final_ln_b'])


# ----------------------------- parameter creation ------------------------------

def init_params(key, *, dim, dim_latent, depth, dim_head, num_latents,
                max_seq_len, ff_mult):
    inner = max(dim, dim_latent)
    hidden = int(dim_latent * ff_mult)
    attn_scale = dim_head ** (-0.5)

    kit = iter(jax.random.split(key, 2 + depth * 8))
    normal = lambda shape, std: jax.random.normal(next(kit), shape, jnp.float32) * std

    params = {
        # TODO(synk): AbsolutePositionalEmbedding definition is not included in
        # the reference; an unscaled learned table lookup is used here.
        'pos_emb': normal((max_seq_len, dim), 0.02),
        'latents': normal((num_latents, dim_latent), 0.02),
        'final_ln_w': jnp.ones((1, dim_latent), jnp.float32),
        'final_ln_b': jnp.zeros((1, dim_latent), jnp.float32),
    }

    acc = {}
    for _ in range(depth):
        q_w = normal((dim_latent, inner), 0.05)
        k_w = normal((dim, inner), 0.05)
        v_w = normal((dim, inner), 0.05)
        if dim_latent != dim:
            lk_w = normal((dim_latent, inner), 0.05)   # latent_to_kv (split)
            lv_w = normal((dim_latent, inner), 0.05)
        else:
            lk_w, lv_w = k_w, v_w                      # reference reuses to_kv
        layer = dict(
            lnx_w=jnp.ones((1, dim), jnp.float32),
            lnx_b=jnp.zeros((1, dim), jnp.float32),
            lnl_w=jnp.ones((1, dim_latent), jnp.float32),
            lnl_b=jnp.zeros((1, dim_latent), jnp.float32),
            q_w=q_w, k_w=k_w, v_w=v_w, lk_w=lk_w, lv_w=lv_w,
            # attention scale dim_head**-0.5 folded into the query RMSNorm gamma
            q_g=jnp.full((1, dim_head), attn_scale, jnp.float32),
            k_g=jnp.ones((1, dim_head), jnp.float32),
            out_w=normal((inner, dim_latent), 0.05),
            out_b=jnp.zeros((1, dim_latent), jnp.float32),
            ff_ln_w=jnp.ones((1, dim_latent), jnp.float32),
            ff_ln_b=jnp.zeros((1, dim_latent), jnp.float32),
            w1=normal((dim_latent, hidden), 0.05),
            b1=jnp.zeros((1, hidden), jnp.float32),
            w2=normal((hidden, dim_latent), 0.05),
            b2=jnp.zeros((1, dim_latent), jnp.float32),
        )
        for name, val in layer.items():
            acc.setdefault(name, []).append(val)

    matmul_weights = {'q_w', 'k_w', 'v_w', 'lk_w', 'lv_w', 'out_w', 'w1', 'w2'}
    for name, vals in acc.items():
        stacked = jnp.stack(vals, axis=0)              # (depth, ...)
        if name in matmul_weights:
            stacked = stacked.astype(jnp.bfloat16)     # bf16 MXU operands
        params[name] = stacked
    return params


# ------------------------------------ main --------------------------------------

if __name__ == "__main__":
    # small config consistent with the module's constructor
    dim, dim_latent, depth = 32, 64, 2
    dim_head, num_latents, max_seq_len, ff_mult = 16, 16, 64, 4
    B, n = 2, 8
    heads = max(dim, dim_latent) // dim_head   # inner_dim // dim_head = 4

    key = jax.random.PRNGKey(0)
    k_param, k_x = jax.random.split(key)
    params = init_params(k_param, dim=dim, dim_latent=dim_latent, depth=depth,
                         dim_head=dim_head, num_latents=num_latents,
                         max_seq_len=max_seq_len, ff_mult=ff_mult)
    x = jax.random.normal(k_x, (B, n, dim), jnp.float32)

    out = perceiver_resampler(x, params, heads=heads, dim_head=dim_head,
                              l2_normalize_latents=False)
    jax.block_until_ready(out)
    assert out.shape == (B, num_latents, dim_latent)
    assert out.dtype == jnp.float32
    print("KERNEL_OK")
</pallas_src>

<mosaic_0001>
module attributes {stable_mosaic.version = 11 : i64} {
  func.func @fused_kernel(%arg0: i32, %arg1: i32, %arg2: memref<1x8x32xf32, #tpu.memory_space<vmem>>, %arg3: memref<8x32xf32, #tpu.memory_space<vmem>>, %arg4: memref<16x64xf32, #tpu.memory_space<vmem>>, %arg5: memref<1x1x32xf32, #tpu.memory_space<vmem>>, %arg6: memref<1x1x32xf32, #tpu.memory_space<vmem>>, %arg7: memref<1x1x64xf32, #tpu.memory_space<vmem>>, %arg8: memref<1x1x64xf32, #tpu.memory_space<vmem>>, %arg9: memref<1x64x64xbf16, #tpu.memory_space<vmem>>, %arg10: memref<1x32x64xbf16, #tpu.memory_space<vmem>>, %arg11: memref<1x32x64xbf16, #tpu.memory_space<vmem>>, %arg12: memref<1x64x64xbf16, #tpu.memory_space<vmem>>, %arg13: memref<1x64x64xbf16, #tpu.memory_space<vmem>>, %arg14: memref<1x1x16xf32, #tpu.memory_space<vmem>>, %arg15: memref<1x1x16xf32, #tpu.memory_space<vmem>>, %arg16: memref<1x64x64xbf16, #tpu.memory_space<vmem>>, %arg17: memref<1x1x64xf32, #tpu.memory_space<vmem>>, %arg18: memref<1x1x64xf32, #tpu.memory_space<vmem>>, %arg19: memref<1x1x64xf32, #tpu.memory_space<vmem>>, %arg20: memref<1x64x256xbf16, #tpu.memory_space<vmem>>, %arg21: memref<1x1x256xf32, #tpu.memory_space<vmem>>, %arg22: memref<1x256x64xbf16, #tpu.memory_space<vmem>>, %arg23: memref<1x1x64xf32, #tpu.memory_space<vmem>>, %arg24: memref<1x64xf32, #tpu.memory_space<vmem>>, %arg25: memref<1x64xf32, #tpu.memory_space<vmem>>, %arg26: memref<1x16x64xf32, #tpu.memory_space<vmem>>, %arg27: memref<16x64xf32, #tpu.memory_space<vmem>>) attributes {dimension_semantics = [#tpu.dimension_semantics<parallel>, #tpu.dimension_semantics<arbitrary>], iteration_bounds = array<i64: 2, 2>, scalar_prefetch = 0 : i64, scratch_operands = 1 : i64, tpu.core_type = #tpu.core_type<tc>, window_params = [{transform_indices = @transform_0, window_bounds = array<i64: 1, 8, 32>}, {pipeline_mode = #tpu.pipeline_mode<synchronous>, transform_indices = @transform_1, window_bounds = array<i64: 8, 32>}, {pipeline_mode = #tpu.pipeline_mode<synchronous>, transform_indices = @transform_2, window_bounds = array<i64: 16, 64>}, {transform_indices = @transform_3, window_bounds = array<i64: 1, 1, 32>}, {transform_indices = @transform_4, window_bounds = array<i64: 1, 1, 32>}, {transform_indices = @transform_5, window_bounds = array<i64: 1, 1, 64>}, {transform_indices = @transform_6, window_bounds = array<i64: 1, 1, 64>}, {transform_indices = @transform_7, window_bounds = array<i64: 1, 64, 64>}, {transform_indices = @transform_8, window_bounds = array<i64: 1, 32, 64>}, {transform_indices = @transform_9, window_bounds = array<i64: 1, 32, 64>}, {transform_indices = @transform_10, window_bounds = array<i64: 1, 64, 64>}, {transform_indices = @transform_11, window_bounds = array<i64: 1, 64, 64>}, {transform_indices = @transform_12, window_bounds = array<i64: 1, 1, 16>}, {transform_indices = @transform_13, window_bounds = array<i64: 1, 1, 16>}, {transform_indices = @transform_14, window_bounds = array<i64: 1, 64, 64>}, {transform_indices = @transform_15, window_bounds = array<i64: 1, 1, 64>}, {transform_indices = @transform_16, window_bounds = array<i64: 1, 1, 64>}, {transform_indices = @transform_17, window_bounds = array<i64: 1, 1, 64>}, {transform_indices = @transform_18, window_bounds = array<i64: 1, 64, 256>}, {transform_indices = @transform_19, window_bounds = array<i64: 1, 1, 256>}, {transform_indices = @transform_20, window_bounds = array<i64: 1, 256, 64>}, {transform_indices = @transform_21, window_bounds = array<i64: 1, 1, 64>}, {pipeline_mode = #tpu.pipeline_mode<synchronous>, transform_indices = @transform_22, window_bounds = array<i64: 1, 64>}, {pipeline_mode = #tpu.pipeline_mode<synchronous>, transform_indices = @transform_23, window_bounds = array<i64: 1, 64>}, {transform_indices = @transform_24, window_bounds = array<i64: 1, 16, 64>}]} {
    %c0_i32 = arith.constant 0 : i32
    %0 = arith.cmpi eq, %arg1, %c0_i32 : i32
    %1 = arith.extui %0 : i1 to i32
    %c0_i32_0 = arith.constant 0 : i32
    %2 = arith.cmpi ne, %1, %c0_i32_0 : i32
    scf.if %2 {
      %c0_113 = arith.constant 0 : index
      %c0_114 = arith.constant 0 : index
      %232 = vector.load %arg4[%c0_113, %c0_114] : memref<16x64xf32, #tpu.memory_space<vmem>>, vector<16x64xf32>
      %c0_115 = arith.constant 0 : index
      %c0_116 = arith.constant 0 : index
      %233 = vector.load %arg27[%c0_115, %c0_116] : memref<16x64xf32, #tpu.memory_space<vmem>>, vector<16x64xf32>
      tpu.vector_store %arg27[%c0_115, %c0_116], %232 {strides = array<i32>} : memref<16x64xf32, #tpu.memory_space<vmem>>, vector<16x64xf32>,
    } else {
    }
    %c0 = arith.constant 0 : index
    %c0_1 = arith.constant 0 : index
    %3 = vector.load %arg27[%c0, %c0_1] : memref<16x64xf32, #tpu.memory_space<vmem>>, vector<16x64xf32>
    %c0_2 = arith.constant 0 : index
    %c0_3 = arith.constant 0 : index
    %c0_4 = arith.constant 0 : index
    %4 = vector.load %arg2[%c0_2, %c0_3, %c0_4] : memref<1x8x32xf32, #tpu.memory_space<vmem>>, vector<1x8x32xf32>
    %5 = vector.shape_cast %4 : vector<1x8x32xf32> to vector<8x32xf32>
    %c0_5 = arith.constant 0 : index
    %c0_6 = arith.constant 0 : index
    %6 = vector.load %arg3[%c0_5, %c0_6] : memref<8x32xf32, #tpu.memory_space<vmem>>, vector<8x32xf32>
    %7 = arith.addf %5, %6 : vector<8x32xf32>
    %c0_7 = arith.constant 0 : index
    %c0_8 = arith.constant 0 : index
    %c0_9 = arith.constant 0 : index
    %8 = vector.load %arg5[%c0_7, %c0_8, %c0_9] : memref<1x1x32xf32, #tpu.memory_space<vmem>>, vector<1x1x32xf32>
    %9 = vector.shape_cast %8 : vector<1x1x32xf32> to vector<1x32xf32>
    %c0_10 = arith.constant 0 : index
    %c0_11 = arith.constant 0 : index
    %c0_12 = arith.constant 0 : index
    %10 = vector.load %arg6[%c0_10, %c0_11, %c0_12] : memref<1x1x32xf32, #tpu.memory_space<vmem>>, vector<1x1x32xf32>
    %11 = vector.shape_cast %10 : vector<1x1x32xf32> to vector<1x32xf32>
    %cst = arith.constant dense<0.000000e+00> : vector<8xf32>
    %12 = vector.multi_reduction <add>, %7, %cst [1] : vector<8x32xf32> to vector<8xf32>
    %13 = vector.shape_cast %12 : vector<8xf32> to vector<8x1xf32>
    %cst_13 = arith.constant 3.200000e+01 : f32
    %14 = vector.broadcast %cst_13 : f32 to vector<8x1xf32>
    %15 = arith.divf %13, %14 : vector<8x1xf32>
    %16 = vector.broadcast %15 : vector<8x1xf32> to vector<8x32xf32>
    %17 = arith.subf %7, %16 : vector<8x32xf32>
    %18 = arith.mulf %17, %17 : vector<8x32xf32>
    %cst_14 = arith.constant dense<0.000000e+00> : vector<8xf32>
    %19 = vector.multi_reduction <add>, %18, %cst_14 [1] : vector<8x32xf32> to vector<8xf32>
    %20 = vector.shape_cast %19 : vector<8xf32> to vector<8x1xf32>
    %cst_15 = arith.constant 3.200000e+01 : f32
    %21 = vector.broadcast %cst_15 : f32 to vector<8x1xf32>
    %22 = arith.divf %20, %21 : vector<8x1xf32>
    %23 = vector.broadcast %15 : vector<8x1xf32> to vector<8x32xf32>
    %24 = arith.subf %7, %23 : vector<8x32xf32>
    %cst_16 = arith.constant 9.99999974E-6 : f32
    %25 = vector.broadcast %cst_16 : f32 to vector<8x1xf32>
    %26 = arith.addf %22, %25 : vector<8x1xf32>
    %27 = math.rsqrt %26 : vector<8x1xf32>
    %28 = vector.broadcast %27 : vector<8x1xf32> to vector<8x32xf32>
    %29 = arith.mulf %24, %28 : vector<8x32xf32>
    %30 = vector.broadcast %9 : vector<1x32xf32> to vector<8x32xf32>
    %31 = arith.mulf %29, %30 : vector<8x32xf32>
    %32 = vector.broadcast %11 : vector<1x32xf32> to vector<8x32xf32>
    %33 = arith.addf %31, %32 : vector<8x32xf32>
    %34 = arith.truncf %33 : vector<8x32xf32> to vector<8x32xbf16>
    %c0_17 = arith.constant 0 : index
    %c0_18 = arith.constant 0 : index
    %c0_19 = arith.constant 0 : index
    %35 = vector.load %arg7[%c0_17, %c0_18, %c0_19] : memref<1x1x64xf32, #tpu.memory_space<vmem>>, vector<1x1x64xf32>
    %36 = vector.shape_cast %35 : vector<1x1x64xf32> to vector<1x64xf32>
    %c0_20 = arith.constant 0 : index
    %c0_21 = arith.constant 0 : index
    %c0_22 = arith.constant 0 : index
    %37 = vector.load %arg8[%c0_20, %c0_21, %c0_22] : memref<1x1x64xf32, #tpu.memory_space<vmem>>, vector<1x1x64xf32>
    %38 = vector.shape_cast %37 : vector<1x1x64xf32> to vector<1x64xf32>
    %cst_23 = arith.constant dense<0.000000e+00> : vector<16xf32>
    %39 = vector.multi_reduction <add>, %3, %cst_23 [1] : vector<16x64xf32> to vector<16xf32>
    %40 = vector.shape_cast %39 : vector<16xf32> to vector<16x1xf32>
    %cst_24 = arith.constant 6.400000e+01 : f32
    %41 = vector.broadcast %cst_24 : f32 to vector<16x1xf32>
    %42 = arith.divf %40, %41 : vector<16x1xf32>
    %43 = vector.broadcast %42 : vector<16x1xf32> to vector<16x64xf32>
    %44 = arith.subf %3, %43 : vector<16x64xf32>
    %45 = arith.mulf %44, %44 : vector<16x64xf32>
    %cst_25 = arith.constant dense<0.000000e+00> : vector<16xf32>
    %46 = vector.multi_reduction <add>, %45, %cst_25 [1] : vector<16x64xf32> to vector<16xf32>
    %47 = vector.shape_cast %46 : vector<16xf32> to vector<16x1xf32>
    %cst_26 = arith.constant 6.400000e+01 : f32
    %48 = vector.broadcast %cst_26 : f32 to vector<16x1xf32>
    %49 = arith.divf %47, %48 : vector<16x1xf32>
    %50 = vector.broadcast %42 : vector<16x1xf32> to vector<16x64xf32>
    %51 = arith.subf %3, %50 : vector<16x64xf32>
    %cst_27 = arith.constant 9.99999974E-6 : f32
    %52 = vector.broadcast %cst_27 : f32 to vector<16x1xf32>
    %53 = arith.addf %49, %52 : vector<16x1xf32>
    %54 = math.rsqrt %53 : vector<16x1xf32>
    %55 = vector.broadcast %54 : vector<16x1xf32> to vector<16x64xf32>
    %56 = arith.mulf %51, %55 : vector<16x64xf32>
    %57 = vector.broadcast %36 : vector<1x64xf32> to vector<16x64xf32>
    %58 = arith.mulf %56, %57 : vector<16x64xf32>
    %59 = vector.broadcast %38 : vector<1x64xf32> to vector<16x64xf32>
    %60 = arith.addf %58, %59 : vector<16x64xf32>
    %61 = arith.truncf %60 : vector<16x64xf32> to vector<16x64xbf16>
    %c0_28 = arith.constant 0 : index
    %c0_29 = arith.constant 0 : index
    %c0_30 = arith.constant 0 : index
    %62 = vector.load %arg9[%c0_28, %c0_29, %c0_30] : memref<1x64x64xbf16, #tpu.memory_space<vmem>>, vector<1x64x64xbf16>
    %63 = vector.shape_cast %62 : vector<1x64x64xbf16> to vector<64x64xbf16>
    %cst_31 = arith.constant dense<0.000000e+00> : vector<16x64xf32>
    %64 = tpu.matmul %61, %63, %cst_31 {dimension_numbers = #tpu.dot_dimension_numbers<[1], [0], [0], [1], [0, 0, 1, 1], [], []>} : vector<16x64xbf16>, vector<64x64xbf16>, vector<16x64xf32> -> vector<16x64xf32>
    %c0_32 = arith.constant 0 : index
    %c0_33 = arith.constant 0 : index
    %c0_34 = arith.constant 0 : index
    %65 = vector.load %arg10[%c0_32, %c0_33, %c0_34] : memref<1x32x64xbf16, #tpu.memory_space<vmem>>, vector<1x32x64xbf16>
    %66 = vector.shape_cast %65 : vector<1x32x64xbf16> to vector<32x64xbf16>
    %cst_35 = arith.constant dense<0.000000e+00> : vector<8x64xf32>
    %67 = tpu.matmul %34, %66, %cst_35 {dimension_numbers = #tpu.dot_dimension_numbers<[1], [0], [0], [1], [0, 0, 1, 1], [], []>} : vector<8x32xbf16>, vector<32x64xbf16>, vector<8x64xf32> -> vector<8x64xf32>
    %c0_36 = arith.constant 0 : index
    %c0_37 = arith.constant 0 : index
    %c0_38 = arith.constant 0 : index
    %68 = vector.load %arg11[%c0_36, %c0_37, %c0_38] : memref<1x32x64xbf16, #tpu.memory_space<vmem>>, vector<1x32x64xbf16>
    %69 = vector.shape_cast %68 : vector<1x32x64xbf16> to vector<32x64xbf16>
    %cst_39 = arith.constant dense<0.000000e+00> : vector<8x64xf32>
    %70 = tpu.matmul %34, %69, %cst_39 {dimension_numbers = #tpu.dot_dimension_numbers<[1], [0], [0], [1], [0, 0, 1, 1], [], []>} : vector<8x32xbf16>, vector<32x64xbf16>, vector<8x64xf32> -> vector<8x64xf32>
    %c0_40 = arith.constant 0 : index
    %c0_41 = arith.constant 0 : index
    %c0_42 = arith.constant 0 : index
    %71 = vector.load %arg12[%c0_40, %c0_41, %c0_42] : memref<1x64x64xbf16, #tpu.memory_space<vmem>>, vector<1x64x64xbf16>
    %72 = vector.shape_cast %71 : vector<1x64x64xbf16> to vector<64x64xbf16>
    %cst_43 = arith.constant dense<0.000000e+00> : vector<16x64xf32>
    %73 = tpu.matmul %61, %72, %cst_43 {dimension_numbers = #tpu.dot_dimension_numbers<[1], [0], [0], [1], [0, 0, 1, 1], [], []>} : vector<16x64xbf16>, vector<64x64xbf16>, vector<16x64xf32> -> vector<16x64xf32>
    %c0_44 = arith.constant 0 : index
    %c0_45 = arith.constant 0 : index
    %c0_46 = arith.constant 0 : index
    %74 = vector.load %arg13[%c0_44, %c0_45, %c0_46] : memref<1x64x64xbf16, #tpu.memory_space<vmem>>, vector<1x64x64xbf16>
    %75 = vector.shape_cast %74 : vector<1x64x64xbf16> to vector<64x64xbf16>
    %cst_47 = arith.constant dense<0.000000e+00> : vector<16x64xf32>
    %76 = tpu.matmul %61, %75, %cst_47 {dimension_numbers = #tpu.dot_dimension_numbers<[1], [0], [0], [1], [0, 0, 1, 1], [], []>} : vector<16x64xbf16>, vector<64x64xbf16>, vector<16x64xf32> -> vector<16x64xf32>
    %77 = vector.shape_cast %64 : vector<16x64xf32> to vector<16x4x16xf32>
    %78 = tpu.transpose %77, [1, 0, 2] : vector<16x4x16xf32> -> vector<4x16x16xf32>
    %c0_48 = arith.constant 0 : index
    %c0_49 = arith.constant 0 : index
    %c0_50 = arith.constant 0 : index
    %79 = vector.load %arg14[%c0_48, %c0_49, %c0_50] : memref<1x1x16xf32, #tpu.memory_space<vmem>>, vector<1x1x16xf32>
    %80 = vector.shape_cast %79 : vector<1x1x16xf32> to vector<1x16xf32>
    %81 = arith.mulf %78, %78 : vector<4x16x16xf32>
    %cst_51 = arith.constant dense<0.000000e+00> : vector<4x16xf32>
    %82 = vector.multi_reduction <add>, %81, %cst_51 [2] : vector<4x16x16xf32> to vector<4x16xf32>
    %83 = vector.shape_cast %82 : vector<4x16xf32> to vector<4x16x1xf32>
    %84 = math.sqrt %83 : vector<4x16x1xf32>
    %cst_52 = arith.constant 2.500000e-01 : f32
    %85 = vector.broadcast %cst_52 : f32 to vector<4x16x1xf32>
    %86 = arith.mulf %84, %85 : vector<4x16x1xf32>
    %cst_53 = arith.constant 9.99999993E-9 : f32
    %87 = vector.broadcast %cst_53 : f32 to vector<4x16x1xf32>
    %88 = arith.maximumf %86, %87 : vector<4x16x1xf32>
    %89 = vector.broadcast %88 : vector<4x16x1xf32> to vector<4x16x16xf32>
    %90 = arith.divf %78, %89 : vector<4x16x16xf32>
    %91 = vector.shape_cast %80 : vector<1x16xf32> to vector<1x1x16xf32>
    %92 = vector.broadcast %91 : vector<1x1x16xf32> to vector<4x16x16xf32>
    %93 = arith.mulf %90, %92 : vector<4x16x16xf32>
    %94 = arith.truncf %93 : vector<4x16x16xf32> to vector<4x16x16xbf16>
    %95 = vector.shape_cast %67 : vector<8x64xf32> to vector<8x4x16xf32>
    %96 = tpu.transpose %95, [1, 0, 2] : vector<8x4x16xf32> -> vector<4x8x16xf32>
    %c0_54 = arith.constant 0 : index
    %c0_55 = arith.constant 0 : index
    %c0_56 = arith.constant 0 : index
    %97 = vector.load %arg15[%c0_54, %c0_55, %c0_56] : memref<1x1x16xf32, #tpu.memory_space<vmem>>, vector<1x1x16xf32>
    %98 = vector.shape_cast %97 : vector<1x1x16xf32> to vector<1x16xf32>
    %99 = arith.mulf %96, %96 : vector<4x8x16xf32>
    %cst_57 = arith.constant dense<0.000000e+00> : vector<4x8xf32>
    %100 = vector.multi_reduction <add>, %99, %cst_57 [2] : vector<4x8x16xf32> to vector<4x8xf32>
    %101 = vector.shape_cast %100 : vector<4x8xf32> to vector<4x8x1xf32>
    %102 = math.sqrt %101 : vector<4x8x1xf32>
    %cst_58 = arith.constant 2.500000e-01 : f32
    %103 = vector.broadcast %cst_58 : f32 to vector<4x8x1xf32>
    %104 = arith.mulf %102, %103 : vector<4x8x1xf32>
    %cst_59 = arith.constant 9.99999993E-9 : f32
    %105 = vector.broadcast %cst_59 : f32 to vector<4x8x1xf32>
    %106 = arith.maximumf %104, %105 : vector<4x8x1xf32>
    %107 = vector.broadcast %106 : vector<4x8x1xf32> to vector<4x8x16xf32>
    %108 = arith.divf %96, %107 : vector<4x8x16xf32>
    %109 = vector.shape_cast %98 : vector<1x16xf32> to vector<1x1x16xf32>
    %110 = vector.broadcast %109 : vector<1x1x16xf32> to vector<4x8x16xf32>
    %111 = arith.mulf %108, %110 : vector<4x8x16xf32>
    %112 = arith.truncf %111 : vector<4x8x16xf32> to vector<4x8x16xbf16>
    %113 = vector.shape_cast %73 : vector<16x64xf32> to vector<16x4x16xf32>
    %114 = tpu.transpose %113, [1, 0, 2] : vector<16x4x16xf32> -> vector<4x16x16xf32>
    %c0_60 = arith.constant 0 : index
    %c0_61 = arith.constant 0 : index
    %c0_62 = arith.constant 0 : index
    %115 = vector.load %arg15[%c0_60, %c0_61, %c0_62] : memref<1x1x16xf32, #tpu.memory_space<vmem>>, vector<1x1x16xf32>
    %116 = vector.shape_cast %115 : vector<1x1x16xf32> to vector<1x16xf32>
    %117 = arith.mulf %114, %114 : vector<4x16x16xf32>
    %cst_63 = arith.constant dense<0.000000e+00> : vector<4x16xf32>
    %118 = vector.multi_reduction <add>, %117, %cst_63 [2] : vector<4x16x16xf32> to vector<4x16xf32>
    %119 = vector.shape_cast %118 : vector<4x16xf32> to vector<4x16x1xf32>
    %120 = math.sqrt %119 : vector<4x16x1xf32>
    %cst_64 = arith.constant 2.500000e-01 : f32
    %121 = vector.broadcast %cst_64 : f32 to vector<4x16x1xf32>
    %122 = arith.mulf %120, %121 : vector<4x16x1xf32>
    %cst_65 = arith.constant 9.99999993E-9 : f32
    %123 = vector.broadcast %cst_65 : f32 to vector<4x16x1xf32>
    %124 = arith.maximumf %122, %123 : vector<4x16x1xf32>
    %125 = vector.broadcast %124 : vector<4x16x1xf32> to vector<4x16x16xf32>
    %126 = arith.divf %114, %125 : vector<4x16x16xf32>
    %127 = vector.shape_cast %116 : vector<1x16xf32> to vector<1x1x16xf32>
    %128 = vector.broadcast %127 : vector<1x1x16xf32> to vector<4x16x16xf32>
    %129 = arith.mulf %126, %128 : vector<4x16x16xf32>
    %130 = arith.truncf %129 : vector<4x16x16xf32> to vector<4x16x16xbf16>
    %131 = vector.shape_cast %70 : vector<8x64xf32> to vector<8x4x16xf32>
    %132 = tpu.transpose %131, [1, 0, 2] : vector<8x4x16xf32> -> vector<4x8x16xf32>
    %133 = arith.truncf %132 : vector<4x8x16xf32> to vector<4x8x16xbf16>
    %134 = vector.shape_cast %76 : vector<16x64xf32> to vector<16x4x16xf32>
    %135 = tpu.transpose %134, [1, 0, 2] : vector<16x4x16xf32> -> vector<4x16x16xf32>
    %136 = arith.truncf %135 : vector<4x16x16xf32> to vector<4x16x16xbf16>
    "tpu.trace_start"() <{level = 10 : i32, message = "hmd,hnd->hmn"}> : () -> ()
    %cst_66 = arith.constant dense<0.000000e+00> : vector<4x16x8xf32>
    %137 = tpu.matmul %94, %112, %cst_66 {dimension_numbers = #tpu.dot_dimension_numbers<[2], [2], [1], [1], [0, 0, 0, 1, 1, 1], [0], [0]>} : vector<4x16x16xbf16>, vector<4x8x16xbf16>, vector<4x16x8xf32> -> vector<4x16x8xf32>
    "tpu.trace_stop"() : () -> ()
    "tpu.trace_start"() <{level = 10 : i32, message = "hmd,hkd->hmk"}> : () -> ()
    %cst_67 = arith.constant dense<0.000000e+00> : vector<4x16x16xf32>
    %138 = tpu.matmul %94, %130, %cst_67 {dimension_numbers = #tpu.dot_dimension_numbers<[2], [2], [1], [1], [0, 0, 0, 1, 1, 1], [0], [0]>} : vector<4x16x16xbf16>, vector<4x16x16xbf16>, vector<4x16x16xf32> -> vector<4x16x16xf32>
    "tpu.trace_stop"() : () -> ()
    %cst_68 = arith.constant dense<0xFF800000> : vector<4x16xf32>
    %139 = vector.multi_reduction <maximumf>, %137, %cst_68 [2] : vector<4x16x8xf32> to vector<4x16xf32>
    %140 = vector.shape_cast %139 : vector<4x16xf32> to vector<4x16x1xf32>
    %cst_69 = arith.constant dense<0xFF800000> : vector<4x16xf32>
    %141 = vector.multi_reduction <maximumf>, %138, %cst_69 [2] : vector<4x16x16xf32> to vector<4x16xf32>
    %142 = vector.shape_cast %141 : vector<4x16xf32> to vector<4x16x1xf32>
    %143 = arith.maximumf %140, %142 : vector<4x16x1xf32>
    %144 = vector.broadcast %143 : vector<4x16x1xf32> to vector<4x16x8xf32>
    %145 = arith.subf %137, %144 : vector<4x16x8xf32>
    %146 = math.exp %145 : vector<4x16x8xf32>
    %147 = vector.broadcast %143 : vector<4x16x1xf32> to vector<4x16x16xf32>
    %148 = arith.subf %138, %147 : vector<4x16x16xf32>
    %149 = math.exp %148 : vector<4x16x16xf32>
    %cst_70 = arith.constant dense<0.000000e+00> : vector<4x16xf32>
    %150 = vector.multi_reduction <add>, %146, %cst_70 [2] : vector<4x16x8xf32> to vector<4x16xf32>
    %151 = vector.shape_cast %150 : vector<4x16xf32> to vector<4x16x1xf32>
    %cst_71 = arith.constant dense<0.000000e+00> : vector<4x16xf32>
    %152 = vector.multi_reduction <add>, %149, %cst_71 [2] : vector<4x16x16xf32> to vector<4x16xf32>
    %153 = vector.shape_cast %152 : vector<4x16xf32> to vector<4x16x1xf32>
    %154 = arith.addf %151, %153 : vector<4x16x1xf32>
    %cst_72 = arith.constant 1.000000e+00 : f32
    %155 = vector.broadcast %cst_72 : f32 to vector<4x16x1xf32>
    %156 = arith.divf %155, %154 : vector<4x16x1xf32>
    %157 = vector.broadcast %156 : vector<4x16x1xf32> to vector<4x16x8xf32>
    %158 = arith.mulf %146, %157 : vector<4x16x8xf32>
    %159 = arith.truncf %158 : vector<4x16x8xf32> to vector<4x16x8xbf16>
    %160 = vector.broadcast %156 : vector<4x16x1xf32> to vector<4x16x16xf32>
    %161 = arith.mulf %149, %160 : vector<4x16x16xf32>
    %162 = arith.truncf %161 : vector<4x16x16xf32> to vector<4x16x16xbf16>
    "tpu.trace_start"() <{level = 10 : i32, message = "hmn,hnd->hmd"}> : () -> ()
    %cst_73 = arith.constant dense<0.000000e+00> : vector<4x16x16xf32>
    %163 = tpu.matmul %159, %133, %cst_73 {dimension_numbers = #tpu.dot_dimension_numbers<[2], [1], [1], [2], [0, 0, 0, 1, 1, 2], [0], [0]>} : vector<4x16x8xbf16>, vector<4x8x16xbf16>, vector<4x16x16xf32> -> vector<4x16x16xf32>
    "tpu.trace_stop"() : () -> ()
    "tpu.trace_start"() <{level = 10 : i32, message = "hmk,hkd->hmd"}> : () -> ()
    %cst_74 = arith.constant dense<0.000000e+00> : vector<4x16x16xf32>
    %164 = tpu.matmul %162, %136, %cst_74 {dimension_numbers = #tpu.dot_dimension_numbers<[2], [1], [1], [2], [0, 0, 0, 1, 1, 2], [0], [0]>} : vector<4x16x16xbf16>, vector<4x16x16xbf16>, vector<4x16x16xf32> -> vector<4x16x16xf32>
    "tpu.trace_stop"() : () -> ()
    %165 = arith.addf %163, %164 : vector<4x16x16xf32>
    %166 = tpu.transpose %165, [1, 0, 2] : vector<4x16x16xf32> -> vector<16x4x16xf32>
    %167 = vector.shape_cast %166 : vector<16x4x16xf32> to vector<16x64xf32>
    %168 = arith.truncf %167 : vector<16x64xf32> to vector<16x64xbf16>
    %c0_75 = arith.constant 0 : index
    %c0_76 = arith.constant 0 : index
    %c0_77 = arith.constant 0 : index
    %169 = vector.load %arg16[%c0_75, %c0_76, %c0_77] : memref<1x64x64xbf16, #tpu.memory_space<vmem>>, vector<1x64x64xbf16>
    %170 = vector.shape_cast %169 : vector<1x64x64xbf16> to vector<64x64xbf16>
    %cst_78 = arith.constant dense<0.000000e+00> : vector<16x64xf32>
    %171 = tpu.matmul %168, %170, %cst_78 {dimension_numbers = #tpu.dot_dimension_numbers<[1], [0], [0], [1], [0, 0, 1, 1], [], []>} : vector<16x64xbf16>, vector<64x64xbf16>, vector<16x64xf32> -> vector<16x64xf32>
    %c0_79 = arith.constant 0 : index
    %c0_80 = arith.constant 0 : index
    %c0_81 = arith.constant 0 : index
    %172 = vector.load %arg17[%c0_79, %c0_80, %c0_81] : memref<1x1x64xf32, #tpu.memory_space<vmem>>, vector<1x1x64xf32>
    %173 = vector.shape_cast %172 : vector<1x1x64xf32> to vector<1x64xf32>
    %174 = vector.broadcast %173 : vector<1x64xf32> to vector<16x64xf32>
    %175 = arith.addf %171, %174 : vector<16x64xf32>
    %176 = arith.addf %3, %175 : vector<16x64xf32>
    %c0_82 = arith.constant 0 : index
    %c0_83 = arith.constant 0 : index
    %c0_84 = arith.constant 0 : index
    %177 = vector.load %arg18[%c0_82, %c0_83, %c0_84] : memref<1x1x64xf32, #tpu.memory_space<vmem>>, vector<1x1x64xf32>
    %178 = vector.shape_cast %177 : vector<1x1x64xf32> to vector<1x64xf32>
    %c0_85 = arith.constant 0 : index
    %c0_86 = arith.constant 0 : index
    %c0_87 = arith.constant 0 : index
    %179 = vector.load %arg19[%c0_85, %c0_86, %c0_87] : memref<1x1x64xf32, #tpu.memory_space<vmem>>, vector<1x1x64xf32>
    %180 = vector.shape_cast %179 : vector<1x1x64xf32> to vector<1x64xf32>
    %cst_88 = arith.constant dense<0.000000e+00> : vector<16xf32>
    %181 = vector.multi_reduction <add>, %176, %cst_88 [1] : vector<16x64xf32> to vector<16xf32>
    %182 = vector.shape_cast %181 : vector<16xf32> to vector<16x1xf32>
    %cst_89 = arith.constant 6.400000e+01 : f32
    %183 = vector.broadcast %cst_89 : f32 to vector<16x1xf32>
    %184 = arith.divf %182, %183 : vector<16x1xf32>
    %185 = vector.broadcast %184 : vector<16x1xf32> to vector<16x64xf32>
    %186 = arith.subf %176, %185 : vector<16x64xf32>
    %187 = arith.mulf %186, %186 : vector<16x64xf32>
    %cst_90 = arith.constant dense<0.000000e+00> : vector<16xf32>
    %188 = vector.multi_reduction <add>, %187, %cst_90 [1] : vector<16x64xf32> to vector<16xf32>
    %189 = vector.shape_cast %188 : vector<16xf32> to vector<16x1xf32>
    %cst_91 = arith.constant 6.400000e+01 : f32
    %190 = vector.broadcast %cst_91 : f32 to vector<16x1xf32>
    %191 = arith.divf %189, %190 : vector<16x1xf32>
    %192 = vector.broadcast %184 : vector<16x1xf32> to vector<16x64xf32>
    %193 = arith.subf %176, %192 : vector<16x64xf32>
    %cst_92 = arith.constant 9.99999974E-6 : f32
    %194 = vector.broadcast %cst_92 : f32 to vector<16x1xf32>
    %195 = arith.addf %191, %194 : vector<16x1xf32>
    %196 = math.rsqrt %195 : vector<16x1xf32>
    %197 = vector.broadcast %196 : vector<16x1xf32> to vector<16x64xf32>
    %198 = arith.mulf %193, %197 : vector<16x64xf32>
    %199 = vector.broadcast %178 : vector<1x64xf32> to vector<16x64xf32>
    %200 = arith.mulf %198, %199 : vector<16x64xf32>
    %201 = vector.broadcast %180 : vector<1x64xf32> to vector<16x64xf32>
    %202 = arith.addf %200, %201 : vector<16x64xf32>
    %203 = arith.truncf %202 : vector<16x64xf32> to vector<16x64xbf16>
    %c0_93 = arith.constant 0 : index
    %c0_94 = arith.constant 0 : index
    %c0_95 = arith.constant 0 : index
    %204 = vector.load %arg20[%c0_93, %c0_94, %c0_95] : memref<1x64x256xbf16, #tpu.memory_space<vmem>>, vector<1x64x256xbf16>
    %205 = vector.shape_cast %204 : vector<1x64x256xbf16> to vector<64x256xbf16>
    %cst_96 = arith.constant dense<0.000000e+00> : vector<16x256xf32>
    %206 = tpu.matmul %203, %205, %cst_96 {dimension_numbers = #tpu.dot_dimension_numbers<[1], [0], [0], [1], [0, 0, 1, 1], [], []>} : vector<16x64xbf16>, vector<64x256xbf16>, vector<16x256xf32> -> vector<16x256xf32>
    %c0_97 = arith.constant 0 : index
    %c0_98 = arith.constant 0 : index
    %c0_99 = arith.constant 0 : index
    %207 = vector.load %arg21[%c0_97, %c0_98, %c0_99] : memref<1x1x256xf32, #tpu.memory_space<vmem>>, vector<1x1x256xf32>
    %208 = vector.shape_cast %207 : vector<1x1x256xf32> to vector<1x256xf32>
    %209 = vector.broadcast %208 : vector<1x256xf32> to vector<16x256xf32>
    %210 = arith.addf %206, %209 : vector<16x256xf32>
    %cst_100 = arith.constant 5.000000e-01 : f32
    %211 = vector.broadcast %cst_100 : f32 to vector<16x256xf32>
    %212 = arith.mulf %211, %210 : vector<16x256xf32>
    %cst_101 = arith.constant 0.707106769 : f32
    %213 = vector.broadcast %cst_101 : f32 to vector<16x256xf32>
    %214 = arith.mulf %210, %213 : vector<16x256xf32>
    %215 = math.erf %214 : vector<16x256xf32>
    %cst_102 = arith.constant 1.000000e+00 : f32
    %216 = vector.broadcast %cst_102 : f32 to vector<16x256xf32>
    %217 = arith.addf %216, %215 : vector<16x256xf32>
    %218 = arith.mulf %212, %217 : vector<16x256xf32>
    %219 = arith.truncf %218 : vector<16x256xf32> to vector<16x256xbf16>
    %c0_103 = arith.constant 0 : index
    %c0_104 = arith.constant 0 : index
    %c0_105 = arith.constant 0 : index
    %220 = vector.load %arg22[%c0_103, %c0_104, %c0_105] : memref<1x256x64xbf16, #tpu.memory_space<vmem>>, vector<1x256x64xbf16>
    %221 = vector.shape_cast %220 : vector<1x256x64xbf16> to vector<256x64xbf16>
    %cst_106 = arith.constant dense<0.000000e+00> : vector<16x64xf32>
    %222 = tpu.matmul %219, %221, %cst_106 {dimension_numbers = #tpu.dot_dimension_numbers<[1], [0], [0], [1], [0, 0, 1, 1], [], []>} : vector<16x256xbf16>, vector<256x64xbf16>, vector<16x64xf32> -> vector<16x64xf32>
    %c0_107 = arith.constant 0 : index
    %c0_108 = arith.constant 0 : index
    %c0_109 = arith.constant 0 : index
    %223 = vector.load %arg23[%c0_107, %c0_108, %c0_109] : memref<1x1x64xf32, #tpu.memory_space<vmem>>, vector<1x1x64xf32>
    %224 = vector.shape_cast %223 : vector<1x1x64xf32> to vector<1x64xf32>
    %225 = vector.broadcast %224 : vector<1x64xf32> to vector<16x64xf32>
    %226 = arith.addf %222, %225 : vector<16x64xf32>
    %227 = arith.addf %176, %226 : vector<16x64xf32>
    %c0_110 = arith.constant 0 : index
    %c0_111 = arith.constant 0 : index
    %228 = vector.load %arg27[%c0_110, %c0_111] : memref<16x64xf32, #tpu.memory_space<vmem>>, vector<16x64xf32>
    tpu.vector_store %arg27[%c0_110, %c0_111], %227 {strides = array<i32>} : memref<16x64xf32, #tpu.memory_space<vmem>>, vector<16x64xf32>,
    %c1_i32 = arith.constant 1 : i32
    %229 = arith.cmpi eq, %arg1, %c1_i32 : i32
    %230 = arith.extui %229 : i1 to i32
    %c0_i32_112 = arith.constant 0 : i32
    %231 = arith.cmpi ne, %230, %c0_i32_112 : i32
    scf.if %231 {
      %c0_113 = arith.constant 0 : index
      %c0_114 = arith.constant 0 : index
      %232 = vector.load %arg24[%c0_113, %c0_114] : memref<1x64xf32, #tpu.memory_space<vmem>>, vector<1x64xf32>
      %c0_115 = arith.constant 0 : index
      %c0_116 = arith.constant 0 : index
      %233 = vector.load %arg25[%c0_115, %c0_116] : memref<1x64xf32, #tpu.memory_space<vmem>>, vector<1x64xf32>
      %cst_117 = arith.constant dense<0.000000e+00> : vector<16xf32>
      %234 = vector.multi_reduction <add>, %227, %cst_117 [1] : vector<16x64xf32> to vector<16xf32>
      %235 = vector.shape_cast %234 : vector<16xf32> to vector<16x1xf32>
      %cst_118 = arith.constant 6.400000e+01 : f32
      %236 = vector.broadcast %cst_118 : f32 to vector<16x1xf32>
      %237 = arith.divf %235, %236 : vector<16x1xf32>
      %238 = vector.broadcast %237 : vector<16x1xf32> to vector<16x64xf32>
      %239 = arith.subf %227, %238 : vector<16x64xf32>
      %240 = arith.mulf %239, %239 : vector<16x64xf32>
      %cst_119 = arith.constant dense<0.000000e+00> : vector<16xf32>
      %241 = vector.multi_reduction <add>, %240, %cst_119 [1] : vector<16x64xf32> to vector<16xf32>
      %242 = vector.shape_cast %241 : vector<16xf32> to vector<16x1xf32>
      %cst_120 = arith.constant 6.400000e+01 : f32
      %243 = vector.broadcast %cst_120 : f32 to vector<16x1xf32>
      %244 = arith.divf %242, %243 : vector<16x1xf32>
      %245 = vector.broadcast %237 : vector<16x1xf32> to vector<16x64xf32>
      %246 = arith.subf %227, %245 : vector<16x64xf32>
      %cst_121 = arith.constant 9.99999974E-6 : f32
      %247 = vector.broadcast %cst_121 : f32 to vector<16x1xf32>
      %248 = arith.addf %244, %247 : vector<16x1xf32>
      %249 = math.rsqrt %248 : vector<16x1xf32>
      %250 = vector.broadcast %249 : vector<16x1xf32> to vector<16x64xf32>
      %251 = arith.mulf %246, %250 : vector<16x64xf32>
      %252 = vector.broadcast %232 : vector<1x64xf32> to vector<16x64xf32>
      %253 = arith.mulf %251, %252 : vector<16x64xf32>
      %254 = vector.broadcast %233 : vector<1x64xf32> to vector<16x64xf32>
      %255 = arith.addf %253, %254 : vector<16x64xf32>
      %c0_122 = arith.constant 0 : index
      %c0_123 = arith.constant 0 : index
      %c0_124 = arith.constant 0 : index
      %256 = vector.load %arg26[%c0_122, %c0_123, %c0_124] : memref<1x16x64xf32, #tpu.memory_space<vmem>>, vector<1x16x64xf32>
      %257 = vector.shape_cast %256 : vector<1x16x64xf32> to vector<16x64xf32>
      %258 = vector.shape_cast %255 : vector<16x64xf32> to vector<1x16x64xf32>
      tpu.vector_store %arg26[%c0_122, %c0_123, %c0_124], %258 {strides = array<i32>} : memref<1x16x64xf32, #tpu.memory_space<vmem>>, vector<1x16x64xf32>,
    } else {
    }
    return
  }
  func.func @transform_0(%arg0: i32, %arg1: i32) -> (i32, i32, i32) {
    %c0_i32 = arith.constant 0 : i32
    %c0_i32_0 = arith.constant 0 : i32
    %c0_i32_1 = arith.constant 0 : i32
    return %arg0, %c0_i32, %c0_i32_0 : i32, i32, i32
  }
  func.func @transform_1(%arg0: i32, %arg1: i32) -> (i32, i32) {
    %c0_i32 = arith.constant 0 : i32
    %c0_i32_0 = arith.constant 0 : i32
    %c0_i32_1 = arith.constant 0 : i32
    return %c0_i32, %c0_i32_0 : i32, i32
  }
  func.func @transform_2(%arg0: i32, %arg1: i32) -> (i32, i32) {
    %c0_i32 = arith.constant 0 : i32
    %c0_i32_0 = arith.constant 0 : i32
    %c0_i32_1 = arith.constant 0 : i32
    return %c0_i32, %c0_i32_0 : i32, i32
  }
  func.func @transform_3(%arg0: i32, %arg1: i32) -> (i32, i32, i32) {
    %c0_i32 = arith.constant 0 : i32
    %c0_i32_0 = arith.constant 0 : i32
    %c0_i32_1 = arith.constant 0 : i32
    return %arg1, %c0_i32, %c0_i32_0 : i32, i32, i32
  }
  func.func @transform_4(%arg0: i32, %arg1: i32) -> (i32, i32, i32) {
    %c0_i32 = arith.constant 0 : i32
    %c0_i32_0 = arith.constant 0 : i32
    %c0_i32_1 = arith.constant 0 : i32
    return %arg1, %c0_i32, %c0_i32_0 : i32, i32, i32
  }
  func.func @transform_5(%arg0: i32, %arg1: i32) -> (i32, i32, i32) {
    %c0_i32 = arith.constant 0 : i32
    %c0_i32_0 = arith.constant 0 : i32
    %c0_i32_1 = arith.constant 0 : i32
    return %arg1, %c0_i32, %c0_i32_0 : i32, i32, i32
  }
  func.func @transform_6(%arg0: i32, %arg1: i32) -> (i32, i32, i32) {
    %c0_i32 = arith.constant 0 : i32
    %c0_i32_0 = arith.constant 0 : i32
    %c0_i32_1 = arith.constant 0 : i32
    return %arg1, %c0_i32, %c0_i32_0 : i32, i32, i32
  }
  func.func @transform_7(%arg0: i32, %arg1: i32) -> (i32, i32, i32) {
    %c0_i32 = arith.constant 0 : i32
    %c0_i32_0 = arith.constant 0 : i32
    %c0_i32_1 = arith.constant 0 : i32
    return %arg1, %c0_i32, %c0_i32_0 : i32, i32, i32
  }
  func.func @transform_8(%arg0: i32, %arg1: i32) -> (i32, i32, i32) {
    %c0_i32 = arith.constant 0 : i32
    %c0_i32_0 = arith.constant 0 : i32
    %c0_i32_1 = arith.constant 0 : i32
    return %arg1, %c0_i32, %c0_i32_0 : i32, i32, i32
  }
  func.func @transform_9(%arg0: i32, %arg1: i32) -> (i32, i32, i32) {
    %c0_i32 = arith.constant 0 : i32
    %c0_i32_0 = arith.constant 0 : i32
    %c0_i32_1 = arith.constant 0 : i32
    return %arg1, %c0_i32, %c0_i32_0 : i32, i32, i32
  }
  func.func @transform_10(%arg0: i32, %arg1: i32) -> (i32, i32, i32) {
    %c0_i32 = arith.constant 0 : i32
    %c0_i32_0 = arith.constant 0 : i32
    %c0_i32_1 = arith.constant 0 : i32
    return %arg1, %c0_i32, %c0_i32_0 : i32, i32, i32
  }
  func.func @transform_11(%arg0: i32, %arg1: i32) -> (i32, i32, i32) {
    %c0_i32 = arith.constant 0 : i32
    %c0_i32_0 = arith.constant 0 : i32
    %c0_i32_1 = arith.constant 0 : i32
    return %arg1, %c0_i32, %c0_i32_0 : i32, i32, i32
  }
  func.func @transform_12(%arg0: i32, %arg1: i32) -> (i32, i32, i32) {
    %c0_i32 = arith.constant 0 : i32
    %c0_i32_0 = arith.constant 0 : i32
    %c0_i32_1 = arith.constant 0 : i32
    return %arg1, %c0_i32, %c0_i32_0 : i32, i32, i32
  }
  func.func @transform_13(%arg0: i32, %arg1: i32) -> (i32, i32, i32) {
    %c0_i32 = arith.constant 0 : i32
    %c0_i32_0 = arith.constant 0 : i32
    %c0_i32_1 = arith.constant 0 : i32
    return %arg1, %c0_i32, %c0_i32_0 : i32, i32, i32
  }
  func.func @transform_14(%arg0: i32, %arg1: i32) -> (i32, i32, i32) {
    %c0_i32 = arith.constant 0 : i32
    %c0_i32_0 = arith.constant 0 : i32
    %c0_i32_1 = arith.constant 0 : i32
    return %arg1, %c0_i32, %c0_i32_0 : i32, i32, i32
  }
  func.func @transform_15(%arg0: i32, %arg1: i32) -> (i32, i32, i32) {
    %c0_i32 = arith.constant 0 : i32
    %c0_i32_0 = arith.constant 0 : i32
    %c0_i32_1 = arith.constant 0 : i32
    return %arg1, %c0_i32, %c0_i32_0 : i32, i32, i32
  }
  func.func @transform_16(%arg0: i32, %arg1: i32) -> (i32, i32, i32) {
    %c0_i32 = arith.constant 0 : i32
    %c0_i32_0 = arith.constant 0 : i32
    %c0_i32_1 = arith.constant 0 : i32
    return %arg1, %c0_i32, %c0_i32_0 : i32, i32, i32
  }
  func.func @transform_17(%arg0: i32, %arg1: i32) -> (i32, i32, i32) {
    %c0_i32 = arith.constant 0 : i32
    %c0_i32_0 = arith.constant 0 : i32
    %c0_i32_1 = arith.constant 0 : i32
    return %arg1, %c0_i32, %c0_i32_0 : i32, i32, i32
  }
  func.func @transform_18(%arg0: i32, %arg1: i32) -> (i32, i32, i32) {
    %c0_i32 = arith.constant 0 : i32
    %c0_i32_0 = arith.constant 0 : i32
    %c0_i32_1 = arith.constant 0 : i32
    return %arg1, %c0_i32, %c0_i32_0 : i32, i32, i32
  }
  func.func @transform_19(%arg0: i32, %arg1: i32) -> (i32, i32, i32) {
    %c0_i32 = arith.constant 0 : i32
    %c0_i32_0 = arith.constant 0 : i32
    %c0_i32_1 = arith.constant 0 : i32
    return %arg1, %c0_i32, %c0_i32_0 : i32, i32, i32
  }
  func.func @transform_20(%arg0: i32, %arg1: i32) -> (i32, i32, i32) {
    %c0_i32 = arith.constant 0 : i32
    %c0_i32_0 = arith.constant 0 : i32
    %c0_i32_1 = arith.constant 0 : i32
    return %arg1, %c0_i32, %c0_i32_0 : i32, i32, i32
  }
  func.func @transform_21(%arg0: i32, %arg1: i32) -> (i32, i32, i32) {
    %c0_i32 = arith.constant 0 : i32
    %c0_i32_0 = arith.constant 0 : i32
    %c0_i32_1 = arith.constant 0 : i32
    return %arg1, %c0_i32, %c0_i32_0 : i32, i32, i32
  }
  func.func @transform_22(%arg0: i32, %arg1: i32) -> (i32, i32) {
    %c0_i32 = arith.constant 0 : i32
    %c0_i32_0 = arith.constant 0 : i32
    %c0_i32_1 = arith.constant 0 : i32
    return %c0_i32, %c0_i32_0 : i32, i32
  }
  func.func @transform_23(%arg0: i32, %arg1: i32) -> (i32, i32) {
    %c0_i32 = arith.constant 0 : i32
    %c0_i32_0 = arith.constant 0 : i32
    %c0_i32_1 = arith.constant 0 : i32
    return %c0_i32, %c0_i32_0 : i32, i32
  }
  func.func @transform_24(%arg0: i32, %arg1: i32) -> (i32, i32, i32) {
    %c0_i32 = arith.constant 0 : i32
    %c0_i32_0 = arith.constant 0 : i32
    %c0_i32_1 = arith.constant 0 : i32
    return %arg0, %c0_i32, %c0_i32_0 : i32, i32, i32
  }
}

</mosaic_0001>

<bundles_post_ra>
// kernel: tpu_custom_call.1
= control target key start
LH: loop header
LB: loop body
LE: loop exit
PB: predicated region body
PF: predicated region fallthrough
CT: control target
= control target key end

     0   :  { %s8125_s0 = inlined_call_operand.hbm [shape: f32[2,8,32], index: 0, kind: input, shape index: {}]   ;;  %s8126_s1 = inlined_call_operand.hbm [shape: f32[8,32], index: 1, kind: input, shape index: {}]   ;;  %s8127_s2 = inlined_call_operand.hbm [shape: f32[16,64], index: 2, kind: input, shape index: {}]   ;;  %s8128_s3 = inlined_call_operand.hbm [shape: f32[2,1,32], index: 3, kind: input, shape index: {}]   ;;  %s8129_s4 = inlined_call_operand.hbm [shape: f32[2,1,32], index: 4, kind: input, shape index: {}]   ;;  %s8130_s5 = inlined_call_operand.hbm [shape: f32[2,1,64], index: 5, kind: input, shape index: {}]   ;;  %s8131_s6 = inlined_call_operand.vmem [shape: f32[2,1,64], index: 6, kind: input, shape index: {}]   ;;  %s8132_s7 = inlined_call_operand.vmem [shape: bf16[2,64,64], index: 7, kind: input, shape index: {}]   ;;  %s8133_s8 = inlined_call_operand.hbm [shape: bf16[2,32,64], index: 8, kind: input, shape index: {}]   ;;  %s8134_s9 = inlined_call_operand.hbm [shape: bf16[2,32,64], index: 9, kind: input, shape index: {}]   ;;  %s8135_s10 = inlined_call_operand.vmem [shape: bf16[2,64,64], index: 10, kind: input, shape index: {}]   ;;  %s8136_s11 = inlined_call_operand.vmem [shape: bf16[2,64,64], index: 11, kind: input, shape index: {}]   ;;  %s8137_s12 = inlined_call_operand.vmem [shape: f32[2,1,16], index: 12, kind: input, shape index: {}]   ;;  %s8138_s13 = inlined_call_operand.vmem [shape: f32[2,1,16], index: 13, kind: input, shape index: {}]   ;;  %s8139_s14 = inlined_call_operand.vmem [shape: bf16[2,64,64], index: 14, kind: input, shape index: {}]   ;;  %s8140_s15 = inlined_call_operand.vmem [shape: f32[2,1,64], index: 15, kind: input, shape index: {}]   ;;  %s8141_s16 = inlined_call_operand.vmem [shape: f32[2,1,64], index: 16, kind: input, shape index: {}]   ;;  %s8142_s17 = inlined_call_operand.vmem [shape: f32[2,1,64], index: 17, kind: input, shape index: {}]   ;;  %s8143_s18 = inlined_call_operand.vmem [shape: bf16[2,64,256], index: 18, kind: input, shape index: {}]   ;;  %s8144_s19 = inlined_call_operand.vmem [shape: f32[2,1,256], index: 19, kind: input, shape index: {}]   ;;  %s8145_s20 = inlined_call_operand.vmem [shape: bf16[2,256,64], index: 20, kind: input, shape index: {}]   ;;  %s8146_s21 = inlined_call_operand.vmem [shape: f32[2,1,64], index: 21, kind: input, shape index: {}]   ;;  %s8147_s22 = inlined_call_operand.vmem [shape: f32[1,64], index: 22, kind: input, shape index: {}]   ;;  %s8148_s23 = inlined_call_operand.vmem [shape: f32[1,64], index: 23, kind: input, shape index: {}]   ;;  %s8149_s24 = inlined_call_operand.hbm [shape: f32[2,16,64], index: 24, kind: output, shape index: {}]  }
   0x1   :  { %8183 = sst [smem:[#allocation44_spill]] %s8125_s0 }
   0x2   :  { %8184 = sst [smem:[#allocation45_spill]] %s8126_s1 }
   0x3   :  { %8185 = sst [smem:[#allocation46_spill]] %s8127_s2 }
   0x4   :  { %8186 = sst [smem:[#allocation47_spill]] %s8128_s3 }
   0x5   :  { %8187 = sst [smem:[#allocation48_spill]] %s8129_s4 }
   0x6   :  { %8188 = sst [smem:[#allocation49_spill]] %s8130_s5 }
   0x7   :  { %8189 = sst [smem:[#allocation50_spill]] %s8131_s6 }
   0x8   :  { %8190 = sst [smem:[#allocation51_spill]] %s8132_s7 }
   0x9   :  { %8191 = sst [smem:[#allocation52_spill]] %s8133_s8 }
   0xa   :  { %8192 = sst [smem:[#allocation53_spill]] %s8134_s9 }
   0xb   :  { %8193 = sst [smem:[#allocation54_spill]] %s8135_s10 }
   0xc   :  { %8194 = sst [smem:[#allocation55_spill]] %s8136_s11 }
   0xd   :  { %8195 = sst [smem:[#allocation56_spill]] %s8137_s12 }
   0xe   :  { %8196 = sst [smem:[#allocation57_spill]] %s8138_s13 }
   0xf   :  { %8197 = sst [smem:[#allocation58_spill]] %s8139_s14 }
  0x10   :  { %8198 = sst [smem:[#allocation59_spill]] %s8140_s15 }
  0x11   :  { %8199 = sst [smem:[#allocation60_spill]] %s8141_s16 }
  0x12   :  { %8200 = sst [smem:[#allocation61_spill]] %s8142_s17 }
  0x13   :  { %8201 = sst [smem:[#allocation62_spill]] %s8143_s18 }
  0x14   :  { %8202 = sst [smem:[#allocation63_spill]] %s8144_s19 }
  0x15   :  { %8203 = sst [smem:[#allocation64_spill]] %s8145_s20 }
  0x16   :  { %8204 = sst [smem:[#allocation65_spill]] %s8146_s21 }
  0x17   :  { %8205 = sst [smem:[#allocation66_spill]] %s8147_s22 }
  0x18   :  { %8206 = sst [smem:[#allocation67_spill]] %s8148_s23 }
  0x19   :  { %8207 = sst [smem:[#allocation68_spill]] %s8149_s24 }
  0x1a   :  { %29 = vsyncpa [#allocation4], 0 }
  0x1b   :  { %31 = vsyncpa [#allocation4 + $0x1], 0 }
  0x1c   :  { %32 = vsyncpa [#allocation7], 0 }
  0x1d   :  { %33 = vsyncpa [#allocation10], 0 }
  0x1e   :  { %35 = vsyncpa [#allocation10 + $0x1], 0 }
  0x1f   :  { %36 = vsyncpa [#allocation13], 0 }
  0x20   :  { %38 = vsyncpa [#allocation13 + $0x1], 0 }
  0x21   :  { %39 = vsyncpa [#allocation16], 0 }
  0x22   :  { %41 = vsyncpa [#allocation16 + $0x1], 0 }
  0x23   :  { %42 = vsyncpa [#allocation5], 0 }
  0x24   :  { %44 = vsyncpa [#allocation5 + $0x1], 0  ;;  %s6524_s5 = smov 0   ;;  %s6526_s26 = smov 0  }
  0x25   :  { %s6528_s27 = smov 0   ;;  %s6530_s28 = smov 0  }
  0x26   :  { %s6532_s6 = smov 0   ;;  %s6534_s2 = smov 0  }
  0x27   :  { %s6536_s29 = smov 0   ;;  %s6538_s0 = smov 0  }
  0x28   :  { %s6540_s7 = smov 0   ;;  %s6542_s30 = smov 0  }
  0x29   :  { %s6544_s3 = smov 0  }
  0x2a LB: > { %8208 = sst [smem:[#allocation24_spill]] %s6335_s26  ;;  %s6578_s25 = sadd.s32 4294967295, %s6371_s3   ;;  %s6371_s3 = sphi %s6544_s3, %s50_s3   ;;  %s6367_s30 = sphi %s6542_s30, %s8313_s30   ;;  %s6363_s7 = sphi %s6540_s7, %s8312_s7   ;;  %s6359_s0 = sphi %s6538_s0, %s8311_s0   ;;  %s6355_s29 = sphi %s6536_s29, %s8310_s29   ;;  %s6351_s2 = sphi %s6534_s2, %s8309_s2   ;;  %s6347_s6 = sphi %s6532_s6, %s8308_s6   ;;  %s6343_s28 = sphi %s6530_s28, %s8307_s28   ;;  %s6339_s27 = sphi %s6528_s27, %s8306_s27   ;;  %s6335_s26 = sphi %s6526_s26, %s8305_s26   ;;  %s6331_s5 = sphi %s6524_s5, %s8304_s5  }
  0x2b   : > { %8209 = sst [smem:[#allocation25_spill]] %s6339_s27  ;;  %p150_p0 = scmp.ne.s32.totalorder %s6335_s26, %s6331_s5 }
  0x2c   : > { %8210 = sst [smem:[#allocation26_spill]] %s6343_s28  ;;  %p8156_p1 = scmp.eq.s32.totalorder %s6578_s25, 0 }
  0x2d   : > { %8211 = sst [smem:[#allocation27_spill]] %s6347_s6  ;;  %p5245_p3 = scmp.ge.s32.totalorder %s6371_s3, 1 }
  0x2e   : > { %8212 = sst [smem:[#allocation28_spill]] %s6351_s2  ;;  %p697_p4 = scmp.lt.s32.totalorder %s6371_s3, 5 }
  0x2f   : > { %8213 = sst [smem:[#allocation29_spill]] %s6355_s29  ;;  %p6587_p5 = por %p150_p0, %p8156_p1 }
  0x30   : > { %8214 = sst [smem:[#allocation30_spill]] %s6359_s0  ;;  %p6591_p6 = pnand %p5245_p3, %p697_p4 }
  0x31   : > { %8215 = sst [smem:[#allocation31_spill]] %s6363_s7  ;;  %s6373_s1 = smov [#allocation6]  }
  0x32   : > { %8216 = sst [smem:[#allocation32_spill]] %s6367_s30  ;;  %s710_s24 = sshll.u32 %s6373_s1, 4  ;;  %s711_s24 = int_to_ptr.vmem [resolvable:$true] %s710_s24 }
  0x33   : > { %8217 = sst [smem:[#allocation33_spill]] %s6371_s3  ;;  %p5657_p7 = pneg %p6591_p6 }
  0x34   : > { %8218 = sst [smem:[#allocation34_spill]] %s6578_s25  ;;  %s59_s0 = sadd.s32 1, %s6363_s7 }
  0x35   : > { %s8219_s8 = scalar_select %p6587_p5, 1, 0 }
  0x36   : > { %p6599_p8 = pnand %p5657_p7, %p8156_p1  ;;  %p6604_p9 = scmp.ge.s32.totalorder %s59_s0, 2 }
  0x37   : > { %8220 = sst [smem:[#allocation35_spill]] %s8219_s8  ;;  %s6026_s22 = scalar_lea.vmem %s711_s24, 128 }
  0x38   : > { %p6017_p10 = pneg %p6599_p8  ;;  %p6027_p11 = scmp.ne.s32.totalorder %s711_s24, %s6026_s22 }
  0x39   : > { %p6034_p0 = scmp.lt.s32.totalorder %s711_s24, %s711_s24  ;;  %p6035_p3 = scmp.lt.s32.totalorder %s6026_s22, %s6026_s22 }
  0x3a   : > { %p6029_p12 = pnand %p6027_p11, %p6017_p10 }
  0x3b   : > { %p6036_p4 = por %p6035_p3, %p6034_p0 }
  0x3c   : > { %p6030_p13 = pneg %p6029_p12 }
  0x3e   : > { %p6037_p7 = pnand %p6036_p4, %p6030_p13 }
  0x40   : > { %6040 = shalt.err (!%p6037_p7)
}
  0x41   : > { %s8224_s20 = sld [smem:[#allocation45_spill]]  ;;  %s8315_s0 = smov (%p6604_p9, %s59_s0), 0 }
  0x42   : > { %8225 = sst [smem:[#allocation36_spill]] %s8315_s0  ;;  %p8157_p11 = scmp.eq.s32.totalorder %s6371_s3, 0 }
  0x43   : > { %s137_s21 = sadd.s32 1, %s6339_s27  ;;  %s134_s22 = ssub.s32 %s6363_s7, %s8315_s0 }
  0x44   : > { %p144_p12 = scmp.ne.s32.totalorder %s6339_s27, %s6335_s26  ;;  %p135_p13 = scmp.eq.s32.totalorder %s134_s22, 0 }
  0x45   : > { %p8155_p0 = scmp.lt.s32.totalorder %s6371_s3, 4  ;;  %s6636_s18 = sand.u32 1, %s6339_s27  }
  0x46   : > { %p146_p3 = por %p144_p12, %p8157_p11  ;;  %s8227_s16 = sld [smem:[#allocation47_spill]] }
  0x47   : > { %5660 = dma.hbm_to_vmem [thread:$0]  (!%p6599_p8), %s8224_s20, 128, %s711_s24, [#allocation7]  }
  0x48   : > { %s6633_s19 = scalar_select %p135_p13, %s6339_s27, %s137_s21  }
  0x49   : > { %s6639_s20 = sshll.u32 %s6363_s7, 4  ;;  %s761_s0 = scalar_lea.vmem [#allocation9], %s6636_s18 }
  0x4a   : > { %8226 = sst [smem:[#allocation37_spill]] %s6633_s19  ;;  %s768_s14 = sshll.u32 %s761_s0, 4  ;;  %s769_s14 = int_to_ptr.vmem [resolvable:$true] %s768_s14 }
  0x4b   : > { %p6648_p4 = pnand %p8155_p0, %p146_p3  ;;  %s8229_s19 = sld [smem:[#allocation49_spill]] }
  0x4c   : > { %s766_s15 = scalar_lea.hbm %s8227_s16, %s6639_s20  ;;  %s8230_s13 = sand.u32 1, %s6371_s3  }
  0x4d   : > { %s6658_s12 = scalar_lea.sflag [#allocation10], %s8230_s13  ;;  %p6662_p7 = pneg %p6648_p4 }
  0x4e   : > { %s6054_s16 = scalar_lea.vmem %s769_s14, 16  ;;  %s6374_s0 = smov [#allocation9]  }
  0x4f   : > { %p6055_p12 = scmp.ne.s32.totalorder %s769_s14, %s6054_s16  ;;  %s6059_s24 = sshll.u32 %s6374_s0, 4  ;;  %s6060_s24 = int_to_ptr.vmem [resolvable:$false] %s6059_s24 }
  0x50   : > { %s6061_s1 = scalar_lea.vmem %s6060_s24, 32  ;;  %p6062_p0 = scmp.lt.s32.totalorder %s769_s14, %s6060_s24 }
  0x51   : > { %p6057_p13 = pnand %p6055_p12, %p6662_p7  ;;  %p6063_p2 = scmp.lt.s32.totalorder %s6061_s1, %s6054_s16 }
  0x53   : > { %p6058_p3 = pneg %p6057_p13  ;;  %p6064_p1 = por %p6063_p2, %p6062_p0 }
  0x55   : > { %p6065_p11 = pnand %p6064_p1, %p6058_p3 }
  0x57   : > { %6068 = shalt.err (!%p6065_p11)
}
  0x58   : > { %5670 = dma.hbm_to_vmem [thread:$0]  (!%p6648_p4), %s766_s15, 16, %s769_s14, %s6658_s12  }
  0x59   : > { %s795_s13 = scalar_lea.vmem [#allocation12], %s6636_s18  ;;  %s6375_s27 = smov [#allocation8]  }
  0x5a   : > { %s802_s21 = sshll.u32 %s795_s13, 4  ;;  %s720_s11 = sshll.u32 %s6375_s27, 4  ;;  %s803_s21 = int_to_ptr.vmem [resolvable:$true] %s802_s21  ;;  %s721_s11 = int_to_ptr.vmem [resolvable:$true] %s720_s11 }
  0x5b   : > { %s8232_s0 = sand.u32 1, %s6371_s3   ;;  %s6082_s24 = scalar_lea.vmem %s803_s21, 16 }
  0x5c   : > { %s6674_s10 = scalar_lea.sflag [#allocation13], %s8232_s0  ;;  %p6083_p12 = scmp.ne.s32.totalorder %s803_s21, %s6082_s24 }
  0x5d   : > { %s6376_s16 = smov [#allocation12]  }
  0x5e   : > { %p6085_p1 = pnand %p6083_p12, %p6662_p7  ;;  %s6087_s1 = sshll.u32 %s6376_s16, 4  ;;  %s6088_s1 = int_to_ptr.vmem [resolvable:$false] %s6087_s1 }
  0x5f   : > { %s6089_s29 = scalar_lea.vmem %s6088_s1, 32  ;;  %p6090_p11 = scmp.lt.s32.totalorder %s803_s21, %s6088_s1 }
  0x60   : > { %p6086_p2 = pneg %p6085_p1  ;;  %p6091_p0 = scmp.lt.s32.totalorder %s6089_s29, %s6082_s24 }
  0x62   : > { %p6092_p13 = por %p6091_p0, %p6090_p11 }
  0x64   : > { %p6093_p3 = pnand %p6092_p13, %p6086_p2 }
  0x66   : > { %6096 = shalt.err (!%p6093_p3)
}
  0x67   : > { %s8233_s27 = scalar_lea.hbm %s8229_s19, %s6639_s20  ;;  %s6108_s13 = scalar_lea.vmem %s721_s11, 256 }
  0x68   : > { %5676 = dma.hbm_to_vmem [thread:$0]  (!%p6648_p4), %s8233_s27, 16, %s803_s21, %s6674_s10  }
  0x69   : > { %p6109_p12 = scmp.ne.s32.totalorder %s721_s11, %s6108_s13  ;;  %p6116_p11 = scmp.lt.s32.totalorder %s721_s11, %s721_s11 }
  0x6a   : > { %p6117_p2 = scmp.lt.s32.totalorder %s6108_s13, %s6108_s13 }
  0x6b   : > { %p6111_p1 = pnand %p6109_p12, %p6017_p10 }
  0x6c   : > { %p6118_p0 = por %p6117_p2, %p6116_p11 }
  0x6d   : > { %p6112_p5 = pneg %p6111_p1 }
  0x6f   : > { %p6119_p13 = pnand %p6118_p0, %p6112_p5 }
  0x71   : > { %6122 = shalt.err (!%p6119_p13)
}
  0x72   : > { %s6377_s29 = smov 128   ;;  %s6378_s21 = smov 8  }
  0x73   : > { %s8234_s16 = sld [smem:[#allocation46_spill]]  ;;  %s5244_s1 = sadd.s32 4294967294, %s6371_s3  }
  0x74   : > { %s62_s14 = sadd.s32 1, %s6367_s30  ;;  %s69_s15 = sadd.s32 1, %s6351_s2 }
  0x75   : > { %s8317_s14 = smov (!%p6604_p9, %s62_s14), %s6367_s30  ;;  %p76_p5 = scmp.ne.s32.totalorder %s6351_s2, %s6347_s6 }
  0x76   : > { %p82_p10 = scmp.ne.s32.totalorder %s6347_s6, %s6343_s28  ;;  %p64_p3 = scmp.ge.s32.totalorder %s8317_s14, 2 }
  0x77   : > { %p690_p12 = scmp.eq.s32.totalorder %s5244_s1, 3  ;;  %p8235_p1 = scmp.eq.s32.totalorder %s6371_s3, 0 }
  0x78   : > { %p8237_p2 = scmp.eq.s32.totalorder %s6578_s25, 0  ;;  %s8319_s14 = smov (%p64_p3, %s8317_s14), 0 }
  0x79   : > { %5663 = dma.hbm_to_vmem [thread:$0]  (!%p6599_p8), %s8234_s16, 256, %s721_s11, [#allocation7], %s6377_s29, %s6377_s29, %s6378_s21  }
  0x7a   : > { %p6706_p11 = por %p8235_p1, %p76_p5  ;;  %p6712_p8 = por %p8237_p2, %p82_p10 }
  0x7b   : > { %8239 = sst [smem:[#allocation38_spill]] %s8319_s14  ;;  %p8240_p9 = scmp.eq.s32.totalorder %s6578_s25, 3 }
  0x7c   : > { %p6724_p13 = por %p690_p12, %p82_p10  ;;  %s66_s13 = ssub.s32 %s6367_s30, %s8319_s14 }
  0x7d   : > { %p6720_p0 = por %p8240_p9, %p76_p5  ;;  %s740_s29 = sand.u32 1, %s6351_s2  }
  0x7e   : > { %s8243_s27 = scalar_select %p6724_p13, 1, 0 }
  0x7f   : > { %s8241_s23 = scalar_select %p6720_p0, 1, 0 }
  0x80   : > { %8244 = sst [smem:[#allocation40_spill]] %s8243_s27  ;;  %p67_p1 = scmp.eq.s32.totalorder %s66_s13, 0 }
  0x81   : > { %8242 = sst [smem:[#allocation39_spill]] %s8241_s23  ;;  %s5249_s21 = sshll.u32 %s740_s29, 3 }
  0x82   : > { %s5250_s0 = sshll.u32 %s6367_s30, 7  ;;  %s8246_s19 = sld [smem:[#allocation44_spill]] }
  0x83   : > { %s6733_s24 = scalar_select %p67_p1, %s6351_s2, %s69_s15  }
  0x84   : > { %s744_s8 = scalar_lea.vmem [#allocation3], %s5249_s21  ;;  %p8247_p5 = scmp.lt.s32.totalorder %s6371_s3, 4 }
  0x85   : > { %8245 = sst [smem:[#allocation41_spill]] %s6733_s24  ;;  %s751_s26 = sshll.u32 %s744_s8, 4  ;;  %s752_s26 = int_to_ptr.vmem [resolvable:$true] %s751_s26 }
  0x86   : > { %p6742_p3 = pnand %p8247_p5, %p6706_p11  ;;  %s8249_s27 = sld [smem:[#allocation48_spill]] }
  0x87   : > { %s741_s15 = scalar_lea.sflag [#allocation4], %s740_s29  ;;  %s6136_s24 = scalar_lea.vmem %s752_s26, 128 }
  0x88   : > { %s749_s28 = scalar_lea.hbm %s8246_s19, %s5250_s0  ;;  %p6125_p10 = pneg %p6742_p3 }
  0x89   : > { %p6137_p12 = scmp.ne.s32.totalorder %s752_s26, %s6136_s24  ;;  %s6379_s19 = smov [#allocation3]  }
  0x8a   : > { %s6141_s8 = sshll.u32 %s6379_s19, 4  ;;  %s6142_s8 = int_to_ptr.vmem [resolvable:$false] %s6141_s8 }
  0x8b   : > { %p6139_p2 = pnand %p6137_p12, %p6125_p10  ;;  %s6143_s5 = scalar_lea.vmem %s6142_s8, 256 }
  0x8c   : > { %s783_s30 = scalar_lea.hbm %s8249_s27, %s6639_s20  ;;  %p6144_p11 = scmp.lt.s32.totalorder %s752_s26, %s6142_s8 }
  0x8d   : > { %p6140_p9 = pneg %p6139_p2  ;;  %p6145_p1 = scmp.lt.s32.totalorder %s6143_s5, %s6136_s24 }
  0x8f   : > { %p6146_p5 = por %p6145_p1, %p6144_p11 }
  0x91   : > { %p6147_p13 = pnand %p6146_p5, %p6140_p9 }
  0x93   : > { %6150 = shalt.err (!%p6147_p13)
}
  0x94   : > { %5667 = dma.hbm_to_vmem [thread:$0]  (!%p6742_p3), %s749_s28, 128, %s752_s26, %s741_s15  }
  0x95   : > { %s778_s14 = scalar_lea.vmem [#allocation11], %s6636_s18  ;;  %s5254_s29 = sshll.u32 %s6636_s18, 4 }
  0x96   : > { %s785_s27 = sshll.u32 %s778_s14, 4  ;;  %s6380_s0 = smov [#allocation11]   ;;  %s786_s27 = int_to_ptr.vmem [resolvable:$true] %s785_s27 }
  0x97   : > { %s6164_s21 = scalar_lea.vmem %s786_s27, 16  ;;  %s6169_s24 = sshll.u32 %s6380_s0, 4  ;;  %s6170_s24 = int_to_ptr.vmem [resolvable:$false] %s6169_s24 }
  0x98   : > { %p6165_p10 = scmp.ne.s32.totalorder %s786_s27, %s6164_s21  ;;  %s6171_s16 = scalar_lea.vmem %s6170_s24, 32 }
  0x99   : > { %p6172_p13 = scmp.lt.s32.totalorder %s786_s27, %s6170_s24  ;;  %p6173_p9 = scmp.lt.s32.totalorder %s6171_s16, %s6164_s21 }
  0x9a   : > { %p6167_p12 = pnand %p6165_p10, %p6662_p7 }
  0x9b   : > { %p6174_p11 = por %p6173_p9, %p6172_p13 }
  0x9c   : > { %p6168_p2 = pneg %p6167_p12 }
  0x9e   : > { %p6175_p1 = pnand %p6174_p11, %p6168_p2 }
  0xa0   : > { %6178 = shalt.err (!%p6175_p1)
}
  0xa1   : > { %5673 = dma.hbm_to_vmem [thread:$0]  (!%p6648_p4), %s783_s30, 16, %s786_s27, %s6658_s12  }
  0xa2   : > { %s5386_s23 = sshll.u32 %s6363_s7, 8  ;;  %s827_s1 = scalar_lea.vmem [#allocation14], %s5254_s29 }
  0xa3   : > { %s834_s13 = sshll.u32 %s827_s1, 4  ;;  %s8251_s8 = sld [smem:[#allocation52_spill]]  ;;  %s835_s13 = int_to_ptr.vmem [resolvable:$true] %s834_s13 }
  0xa4   : > { %s6192_s14 = scalar_lea.vmem %s835_s13, 256  ;;  %s6381_s21 = smov [#allocation14]  }
  0xa5   : > { %p6193_p3 = scmp.ne.s32.totalorder %s835_s13, %s6192_s14  ;;  %s6197_s20 = sshll.u32 %s6381_s21, 4  ;;  %s6198_s20 = int_to_ptr.vmem [resolvable:$false] %s6197_s20 }
  0xa6   : > { %s6199_s0 = scalar_lea.vmem %s6198_s20, 512  ;;  %p6200_p12 = scmp.lt.s32.totalorder %s835_s13, %s6198_s20 }
  0xa7   : > { %p6195_p5 = pnand %p6193_p3, %p6662_p7  ;;  %p6201_p2 = scmp.lt.s32.totalorder %s6199_s0, %s6192_s14 }
  0xa9   : > { %s833_s5 = scalar_lea.hbm %s8251_s8, %s5386_s23  ;;  %p6196_p10 = pneg %p6195_p5 }
  0xaa   : > { %p6202_p13 = por %p6201_p2, %p6200_p12 }
  0xac   : > { %p6203_p9 = pnand %p6202_p13, %p6196_p10 }
  0xae   : > { %6206 = shalt.err (!%p6203_p9)
}
  0xaf   : > { %s6382_s12 = smov 64   ;;  %s6383_s30 = smov 4  }
  0xb0   : > { %5679 = dma.hbm_to_vmem [thread:$0]  (!%p6648_p4), %s833_s5, 256, %s835_s13, %s6674_s10, %s6382_s12, %s6382_s12, %s6383_s30  }
  0xb1   : > { %s8252_s9 = sld [smem:[#allocation53_spill]]  ;;  %s848_s26 = scalar_lea.vmem [#allocation15], %s5254_s29 }
  0xb2   : > { %s855_s28 = sshll.u32 %s848_s26, 4  ;;  %s845_s1 = scalar_lea.sflag [#allocation16], %s6636_s18  ;;  %s856_s28 = int_to_ptr.vmem [resolvable:$true] %s855_s28 }
  0xb3   : > { %s6220_s15 = scalar_lea.vmem %s856_s28, 256  ;;  %s6384_s19 = smov [#allocation15]  }
  0xb4   : > { %p6221_p11 = scmp.ne.s32.totalorder %s856_s28, %s6220_s15  ;;  %s6225_s8 = sshll.u32 %s6384_s19, 4  ;;  %s6226_s8 = int_to_ptr.vmem [resolvable:$false] %s6225_s8 }
  0xb5   : > { %s6227_s14 = scalar_lea.vmem %s6226_s8, 512  ;;  %p6228_p5 = scmp.lt.s32.totalorder %s856_s28, %s6226_s8 }
  0xb6   : > { %p6223_p1 = pnand %p6221_p11, %p6662_p7  ;;  %p6229_p10 = scmp.lt.s32.totalorder %s6227_s14, %s6220_s15 }
  0xb7   : > { %s854_s16 = scalar_lea.hbm %s8252_s9, %s5386_s23 }
  0xb8   : > { %p6224_p3 = pneg %p6223_p1  ;;  %p6230_p12 = por %p6229_p10, %p6228_p5 }
  0xba   : > { %p6231_p2 = pnand %p6230_p12, %p6224_p3 }
  0xbc   : > { %6234 = shalt.err (!%p6231_p2)
}
  0xbd   : > { %5682 = dma.hbm_to_vmem [thread:$0]  (!%p6648_p4), %s854_s16, 256, %s856_s28, %s845_s1, %s6382_s12, %s6382_s12, %s6383_s30  }
  0xbe   : > { %950 = sbr.rel (%p6591_p6) target bundleno = 3336 (0xd08), region = 116 }
  0xc3   : > { %s6790_s10 = sand.u32 1, %s6347_s6  }
  0xc4   : > { %8253 = sst [smem:[#allocation42_spill]] %s6790_s10  ;;  %s5261_s18 = sshll.u32 %s6790_s10, 3 }
  0xc5   : > { %s953_s17 = scalar_lea.sflag [#allocation4], %s6790_s10  ;;  %s6794_s29 = scalar_lea.vmem [#allocation3], %s5261_s18 }
  0xc6   : > { %6306 = dma.done.wait (%p6712_p8), %s953_s17, 128  }
  0xc7   : > { %6308 = vsyncadd (%p6712_p8), %s953_s17, 4294967168  ;;  %s8254_s22 = sld [smem:[#allocation34_spill]] }
  0xcd   : > { %p8255_p4 = scmp.eq.s32.totalorder %s8254_s22, 0 }
  0xcf   : > { %6310 = dma.done.wait (%p8255_p4), [#allocation7], 384   ;;  %p8256_p6 = pmov %p8255_p4 }
  0xd0   : > { %s8257_s4 = sld [smem:[#allocation24_spill]]  ;;  %s969_s13 = sand.u32 1, %s8254_s22  }
  0xd1   : > { %6312 = vsyncadd (%p8256_p6), [#allocation7], 4294966912  ;;  %s8258_s23 = sld [smem:[#allocation35_spill]]  ;;  %s970_s21 = scalar_lea.sflag [#allocation10], %s969_s13 }
  0xd6   : > { %s6806_s5 = sand.u32 1, %s8257_s4  }
  0xd7   : > { %p8259_p7 = scmp.ne.s32.totalorder %s8258_s23, 0 }
  0xd9   : > { %6314 = dma.done.wait (%p8259_p7), %s970_s21, 32  }
  0xda   : > { %6316 = vsyncadd (%p8259_p7), %s970_s21, 4294967264  ;;  %s986_s0 = scalar_lea.sflag [#allocation13], %s969_s13 }
  0xdb   : > { %6318 = dma.done.wait (%p8259_p7), %s986_s0, 272  }
  0xdc   : > { %6320 = vsyncadd (%p8259_p7), %s986_s0, 4294967024  ;;  %s5264_s30 = sshll.u32 %s6806_s5, 4  ;;  %s1003_s24 = scalar_lea.sflag [#allocation16], %s6806_s5 }
  0xdd   : > { %s6820_s27 = scalar_lea.vmem [#allocation14], %s5264_s30  ;;  %s6823_s16 = scalar_lea.vmem [#allocation15], %s5264_s30 }
  0xde   : > { %6322 = dma.done.wait (%p8259_p7), %s1003_s24, 256  }
  0xdf   : > { %6324 = vsyncadd (%p8259_p7), %s1003_s24, 4294967040  ;;  %s8260_s26 = sld [smem:[#allocation29_spill]]  ;;  %s5266_s28 = sshll.u32 %s6790_s10, 4 }
  0xe0   : > { %s8262_s4 = sld [smem:[#allocation51_spill]]  ;;  %s6901_s10 = scalar_lea.vmem [#allocation17], %s5266_s28 }
  0xe1   : > { %s8263_s0 = sld [smem:[#allocation54_spill]] }
  0xe2   : > { %s8264_s19 = sld [smem:[#allocation55_spill]] }
  0xe3   : > { %s8268_s2 = sld [smem:[#allocation58_spill]] }
  0xe4   : > { %s8272_s17 = sld [smem:[#allocation62_spill]] }
  0xe5   : > { %p1148_p8 = scmp.lt.s32.totalorder %s8260_s26, 1  ;;  %s8274_s15 = sld [smem:[#allocation64_spill]] }
  0xe6   : > { %s8275_s12 = sld [smem:[#allocation65_spill]]  ;;  %p5280_p13 = scmp.ne.s32.totalorder %s8260_s26, 0 }
  0xe7   : > { %s6832_s1 = scalar_select %p1148_p8, %s8260_s26, 1 }
  0xe9   : > { %s5388_s18 = sshll.u32 %s6832_s1, 5  ;;  %s5392_s14 = sshll.u32 %s6832_s1, 6 }
  0xea   : > { %s6842_s23 = scalar_lea.vmem %s8262_s4, %s5388_s18  ;;  %s6847_s30 = scalar_lea.vmem %s8263_s0, %s5388_s18 }
  0xeb   : > { %s6852_s11 = scalar_lea.vmem %s8264_s19, %s5388_s18  ;;  %s6865_s6 = scalar_lea.vmem %s8268_s2, %s5388_s18 }
  0xec   : > { %8265 = sst [smem:[#allocation43_spill]] %s6852_s11  ;;  %s6883_s22 = scalar_lea.vmem %s8272_s17, %s5392_s14 }
  0xed   : > { %s8269_s0 = sld [smem:[#allocation59_spill]]  ;;  %s5277_s2 = sshll.u32 %s6832_s1, 1 }
  0xee   : > { %s8273_s4 = sld [smem:[#allocation63_spill]]  ;;  %s5393_s21 = sshll.u32 %s6832_s1, 7 }
  0xef   : > { %s6895_s19 = scalar_lea.vmem %s8274_s15, %s5393_s21  ;;  %s1202_s8 = scalar_lea.vmem %s8275_s12, %s6832_s1 }
  0xf0   : > { %1207 = sbr.rel (%p5280_p13) target bundleno = 247 (0xf7), region = 152 }
  0xf3   : > { %s1179_s3 = scalar_lea.vmem %s8269_s0, %s6832_s1 }
  0xf4   : > { %s6889_s13 = scalar_lea.vmem %s8273_s4, %s5277_s2 }
  0xf5   : > { %v1208_v0 = vld [vmem:[#allocation8] sm:$0xff]  ;;  %vm1210_vm0 = vcmask 523264   ;;  %v1209_v1 = vld [vmem:[#allocation8 + $0x8] sm:$0xff] }
  0xf6   : > { %1211 = vst.msk [vmem:[#allocation2] sm:$0xff] %vm1210_vm0, %v1208_v0  ;;  %1212 = vst.msk [vmem:[#allocation2 + $0x8] sm:$0xff] %vm1210_vm0, %v1209_v1 }
  0xf7 PF: > { %vm1252_vm1 = vcmask 523264   ;;  %v1215_v3 = vld [vmem:[%s6794_s29] sm:$0xff]  ;;  %v1216_v4 = vld [vmem:[#allocation6] sm:$0xff]  ;;  %vm1220_vm2 = vcmask 261120   ;;  %v8181_v26 = vmov 0.0   ;;  %v5819_v30 = vld [vmem:[%s6842_s23 + $0x8] sm:$0xff]  }
  0xf8   : > { %v1217_v6 = vadd.f32 %v1216_v4, %v1215_v3  ;;  %v5815_v25 = vld [vmem:[%s6842_s23 + $0x18] sm:$0xff]   ;;  %5475 = vmatprep.subr.bf16.mxu1 %v8181_v26  ;;  %5503 = vmatprep.subr.bf16.mxu0 %v8181_v26  ;;  %v5817_v28 = vld [vmem:[%s6842_s23 + $0x10] sm:$0xff]   ;;  %v5820_v31 = vld [vmem:[%s6847_s30 + $0x8] sm:$0xff]   ;;  %vm6386_vm3 = vmmov 0   ;;  %s8276_s29 = scalar_lea.vmem [#allocation12], %s6806_s5  ;;  %s8277_s14 = sld [smem:[#allocation50_spill]] }
  0xf9   : > { %v5816_v27 = vld [vmem:[%s6847_s30 + $0x18] sm:$0xff]   ;;  %5476 = vmatpush3.bf16.msra.mxu1 %v5815_v25  ;;  %v5818_v29 = vld [vmem:[%s6847_s30 + $0x10] sm:$0xff]   ;;  %v5821_v32 = vld [vmem:[%s6842_s23] sm:$0xff]   ;;  %5483 = vmatprep.mubr.msk.bf16.mxu1 %vm6386_vm3, %v8181_v26  ;;  %s8280_s9 = scalar_lea.vmem [#allocation11], %s6806_s5  ;;  %s8281_s25 = sld [smem:[#allocation43_spill]]  ;;  %vm1935_vm4 = vcmask 130048  }
  0xfa   : > { %v1221_v9 = vsel %vm1220_vm2, %v1217_v6, 0.0  ;;  %5504 = vmatpush3.bf16.msra.mxu0 %v5816_v27  ;;  %5477 = vmatprep.subr.bf16.mxu1 %v8181_v26  ;;  %v5822_v33 = vld [vmem:[%s6847_s30] sm:$0xff]   ;;  %s8279_s30 = scalar_lea.vmem [#allocation9], %s6806_s5  ;;  %s6387_s5 = smov 112  }
  0xfb   : > { %1222 = vadd.xlane.f32.xlu1 %v1221_v9  ;;  %5505 = vmatprep.subr.bf16.mxu0 %v8181_v26  ;;  %v5283_v45 = vld [vmem:[%s8276_s29] ss:$0 sm:$0xff]  ;;  %v5823_v56 = vld [vmem:[%s6820_s27 + $0x8] sm:$0xff]   ;;  %s8282_s7 = sld [smem:[#allocation57_spill]]  ;;  %s6392_s15 = smov 32  }
  0xfc   : > { %5511 = vmatprep.mubr.msk.bf16.mxu0 %vm6386_vm3, %v8181_v26  ;;  %v5281_v53 = vld [vmem:[%s8279_s30] ss:$0 sm:$0xff]  ;;  %v5825_v62 = vld [vmem:[%s6823_s16 + $0x8] sm:$0xff]   ;;  %s8284_s0 = sld [smem:[#allocation56_spill]]  ;;  %s6393_s11 = smov 16  }
  0xfd   : > { %v1213_v2 = vld [vmem:[#allocation2] sm:$0xff]  ;;  %v1214_v7 = vld [vmem:[#allocation2 + $0x8] sm:$0xff]  ;;  %5478 = vmatpush3.bf16.msra.mxu1 %v5817_v28  ;;  %s6394_s20 = smov 48   ;;  %s8288_s28 = sld [smem:[#allocation60_spill]] }
  0xfe   : > { %v1253_v5 = vsel %vm1252_vm1, %v1213_v2, 0.0  ;;  %v1256_v8 = vsel %vm1252_vm1, %v1214_v7, 0.0  ;;  %5506 = vmatpush3.bf16.msra.mxu0 %v5818_v29  ;;  %5479 = vmatprep.subr.bf16.mxu1 %v8181_v26  ;;  %s8278_s23 = scalar_lea.vmem %s8277_s14, %s6832_s1  ;;  %v5282_v59 = vld [vmem:[%s8280_s9] ss:$0 sm:$0xff]  ;;  %v6390_v29 = vmov 1983009808  }
  0xff   : > { %1254 = vadd.xlane.f32.xlu0 %v1253_v5  ;;  %5507 = vmatprep.subr.bf16.mxu0 %v8181_v26  ;;  %v5284_v50 = vld [vmem:[%s8278_s23] ss:$0 sm:$0xff]  ;;  %v5827_v1 = vld [vmem:[%s8281_s25 + $0x18] sm:$0xff]   ;;  %v5829_v3 = vld [vmem:[%s8281_s25 + $0x8] sm:$0xff]   ;;  %s8290_s30 = sld [smem:[#allocation61_spill]] }
 0x100   : > { %v5824_v60 = vld [vmem:[%s6820_s27] sm:$0xff]   ;;  %s6388_s27 = smov 96  }
 0x101   : > { %5480 = vmatpush3.bf16.msra.mxu1 %v5819_v30  ;;  %v5826_v0 = vld [vmem:[%s6823_s16] sm:$0xff]   ;;  %s6389_s16 = smov 80   ;;  %v1657_v30 = vunpack.c.l.s4 %v6390_v29  ;;  %s8283_s18 = scalar_lea.vmem %s8282_s7, %s6832_s1 }
 0x102   : > { %5508 = vmatpush3.bf16.msra.mxu0 %v5820_v31  ;;  %5481 = vmatprep.subr.bf16.mxu1 %v8181_v26  ;;  %v5830_v4 = vld [vmem:[%s8281_s25] sm:$0xff]   ;;  %v1659_v31 = vlaneseq  ;;  %s8285_s24 = scalar_lea.vmem %s8284_s0, %s6832_s1 }
 0x103   : > { %1257 = vadd.xlane.f32.xlu0 %v1256_v8  ;;  %5509 = vmatprep.subr.bf16.mxu0 %v8181_v26 }
 0x105   : > { %5482 = vmatpush3.bf16.msra.mxu1 %v5821_v32  ;;  %s8291_s9 = scalar_lea.vmem %s8290_s30, %s6832_s1 }
 0x106   : > { %5510 = vmatpush3.bf16.msra.mxu0 %v5822_v33  ;;  %5487 = vmatprep.subr.bf16.mxu1 %v8181_v26 }
 0x107   : > { %5527 = vmatprep.subr.bf16.mxu0 %v8181_v26 }
 0x184   : > { %v1223_v12 = vpop.xlane.xlu1 %1222 }
 0x185   : > { %v1225_v14 = vmul.f32 0.03125, %v1223_v12 }
 0x187   : > { %v1226_v16 = vsub.f32 %v1217_v6, %v1225_v14 }
 0x188   : > { %v1255_v10 = vpop.xlane.xlu0 %1254 }
 0x189   : > { %v1260_v11 = vmul.f32 0.015625, %v1255_v10  ;;  %v1227_v21 = vmul.f32 %v1226_v16, %v1226_v16 }
 0x18b   : > { %v1262_v13 = vsub.f32 %v1213_v2, %v1260_v11  ;;  %v1228_v22 = vsel %vm1220_vm2, %v1227_v21, 0.0  ;;  %v5828_v2 = vld [vmem:[%s8281_s25 + $0x10] sm:$0xff]  }
 0x18c   : > { %v1258_v15 = vpop.xlane.xlu0 %1257 }
 0x18d   : > { %v1261_v17 = vmul.f32 0.015625, %v1258_v15  ;;  %v1264_v18 = vmul.f32 %v1262_v13, %v1262_v13 }
 0x18f   : > { %v1263_v19 = vsub.f32 %v1214_v7, %v1261_v17  ;;  %v1266_v20 = vsel %vm1252_vm1, %v1264_v18, 0.0 }
 0x190   : > { %1267 = vadd.xlane.f32.xlu1 %v1266_v20 }
 0x191   : > { %v1265_v23 = vmul.f32 %v1263_v19, %v1263_v19 }
 0x193   : > { %v1269_v24 = vsel %vm1252_vm1, %v1265_v23, 0.0 }
 0x194   : > { %1229 = vadd.xlane.f32.xlu1 %v1228_v22  ;;  %1270 = vadd.xlane.f32.xlu0 %v1269_v24 }
 0x219   : > { %v1268_v34 = vpop.xlane.xlu1 %1267 }
 0x21a   : > { %v1272_v35 = vmul.f32 0.015625, %v1268_v34  ;;  %v6391_v34 = vmov 1934713408  }
 0x21c   : > { %v1274_v36 = vadd.f32 1e-05, %v1272_v35  ;;  %v1689_v35 = vunpack.c.l.s4 %v6391_v34 }
 0x21d   : > { %v1230_v37 = vpop.xlane.xlu1 %1229  ;;  %v1271_v38 = vpop.xlane.xlu0 %1270 }
 0x21e   : > { %5863 = vrsqrt.f32 %v1274_v36  ;;  %v1231_v39 = vmul.f32 0.03125, %v1230_v37  ;;  %v1273_v40 = vmul.f32 0.015625, %v1271_v38  ;;  %v1658_v36 = vunpack.c.0.s8 %v1657_v30 }
 0x21f   : > { %v7016_v37 = vshrl.u32 %v1659_v31, 7 }
 0x220   : > { %v1232_v41 = vadd.f32 1e-05, %v1231_v39  ;;  %v1275_v42 = vadd.f32 1e-05, %v1273_v40 }
 0x222   : > { %5865 = vrsqrt.f32 %v1232_v41  ;;  %v1690_v41 = vunpack.c.0.s8 %v1689_v35 }
 0x223   : > { %5867 = vrsqrt.f32 %v1275_v42 }
 0x22b   : > { %v5864_v43 = vpop.eup %5863 }
 0x22c   : > { %v1278_v44 = vmul.f32 %v5864_v43, %v1262_v13  ;;  %v7019_v43 = vsub.s32 %v1658_v36, %v7016_v37 }
 0x22e   : > { %v1286_v49 = vmul.f32 %v5283_v45, %v1278_v44 }
 0x22f   : > { %v5866_v46 = vpop.eup %5865 }
 0x230   : > { %v5868_v47 = vpop.eup %5867  ;;  %v1234_v51 = vmul.f32 %v5866_v46, %v1226_v16  ;;  %v1294_v54 = vadd.f32 %v5284_v50, %v1286_v49 }
 0x231   : > { %v1279_v48 = vmul.f32 %v5868_v47, %v1263_v19 }
 0x232   : > { %v1241_v58 = vmul.f32 %v5281_v53, %v1234_v51 }
 0x233   : > { %v1287_v52 = vmul.f32 %v5283_v45, %v1279_v48 }
 0x234   : > { %v1248_v61 = vadd.f32 %v5282_v59, %v1241_v58 }
 0x235   : > { %v1295_v55 = vadd.f32 %v5284_v50, %v1287_v52 }
 0x236   : > { %v1249_v63 = vpack.c.bf16 %v1248_v61, %v1248_v61 }
 0x237   : > { %v1296_v57 = vpack.c.bf16 %v1295_v55, %v1294_v54  ;;  %v7030_v54 = vsub.s32 %v1690_v41, %v7016_v37 }
 0x239   : > { %5484 = vmatmul.mubr.msk.bf16.vlgmr.msra.gmra.mxu1 %vm1252_vm1, %v1296_v57  ;;  %5512 = vmatmul.mubr.msk.bf16.vlgmr.msra.gmra.mxu0 %vm1252_vm1, %v1296_v57 }
 0x23a   : > { %5488 = vmatpush3.bf16.msra.mxu1 %v5823_v56  ;;  %5491 = vmatprep.mubr.msk.bf16.mxu1 %vm6386_vm3, %v8181_v26 }
 0x23b   : > { %5489 = vmatprep.subr.bf16.mxu1 %v8181_v26  ;;  %5529 = vmatprep.mubr.msk.bf16.mxu0 %vm6386_vm3, %v8181_v26 }
 0x23e   : > { %5490 = vmatpush3.bf16.msra.mxu1 %v5824_v60 }
 0x23f   : > { %5495 = vmatprep.subr.bf16.mxu1 %v8181_v26 }
 0x241   : > { %5492 = vmatmul.mubr.msk.bf16.vlgmr.msra.gmra.mxu1 %vm1220_vm2, %v1249_v63 }
 0x242   : > { %5496 = vmatpush3.bf16.msra.mxu1 %v5825_v62  ;;  %5499 = vmatprep.mubr.msk.bf16.mxu1 %vm6386_vm3, %v8181_v26 }
 0x243   : > { %5497 = vmatprep.subr.bf16.mxu1 %v8181_v26 }
 0x246   : > { %5498 = vmatpush3.bf16.msra.mxu1 %v5826_v0 }
 0x247   : > { %5515 = vmatprep.subr.bf16.mxu1 %v8181_v26 }
 0x249   : > { %5500 = vmatmul.mubr.msk.bf16.vlgmr.msra.gmra.mxu1 %vm1220_vm2, %v1249_v63 }
 0x24a   : > { %5516 = vmatpush3.bf16.msra.mxu1 %v5827_v1  ;;  %5523 = vmatprep.mubr.msk.bf16.mxu1 %vm6386_vm3, %v8181_v26 }
 0x24b   : > { %5517 = vmatprep.subr.bf16.mxu1 %v8181_v26 }
 0x24e   : > { %5518 = vmatpush3.bf16.msra.mxu1 %v5828_v2 }
 0x24f   : > { %5519 = vmatprep.subr.bf16.mxu1 %v8181_v26 }
 0x252   : > { %5520 = vmatpush3.bf16.msra.mxu1 %v5829_v3 }
 0x253   : > { %5521 = vmatprep.subr.bf16.mxu1 %v8181_v26 }
 0x256   : > { %5522 = vmatpush3.bf16.msra.mxu1 %v5830_v4 }
 0x257   : > { %5533 = vmatprep.subr.bf16.mxu1 %v8181_v26 }
 0x259   : > { %5524 = vmatmul.mubr.msk.bf16.vlgmr.msra.gmra.mxu1 %vm1252_vm1, %v1296_v57 }
 0x25a   : > { %5535 = vmatprep.mubr.msk.bf16.mxu1 %vm6386_vm3, %v8181_v26 }
 0x2f9   : > { %v6975_v5 = vpop.f32.mrf.mxu1  ;;  %v6977_v6 = vpop.f32.mrf.mxu0 }
 0x2fa   : > { %1636 = vrot.lane.b32.xlu1 %v6975_v5, %s6387_s5 }
 0x2fb   : > { %v5485_v7 = vpop.f32.mrf.mxu1  ;;  %v5513_v8 = vpop.f32.mrf.mxu0 }
 0x2fd   : > { %v6981_v9 = vpop.f32.mrf.mxu1  ;;  %v6983_v10 = vpop.f32.mrf.mxu0 }
 0x2fe   : > { %1642 = vrot.lane.b32.xlu1 %v6975_v5, %s6388_s27  ;;  %1638 = vrot.lane.b32.xlu0 %v6981_v9, %s6387_s5 }
 0x2ff   : > { %v5486_v11 = vpop.f32.mrf.mxu1  ;;  %v5514_v12 = vpop.f32.mrf.mxu0 }
 0x301   : > { %v1426_v13 = vpop.f32.mrf.mxu1 }
 0x302   : > { %1644 = vrot.lane.b32.xlu0 %v6981_v9, %s6388_s27  ;;  %2070 = vrot.lane.b32.xlu1 %v1426_v13, %s6388_s27 }
 0x303   : > { %v5493_v14 = vpop.f32.mrf.mxu1 }
 0x305   : > { %v1429_v15 = vpop.f32.mrf.mxu1 }
 0x306   : > { %2073 = vrot.lane.b32.xlu1 %v1426_v13, %s6389_s16  ;;  %2067 = vrot.lane.b32.xlu0 %v1426_v13, %s6387_s5 }
 0x307   : > { %v5494_v16 = vpop.f32.mrf.mxu1 }
 0x309   : > { %v6994_v17 = vpop.f32.mrf.mxu1 }
 0x30a   : > { %1648 = vrot.lane.b32.xlu1 %v6975_v5, %s6389_s16  ;;  %1650 = vrot.lane.b32.xlu0 %v6981_v9, %s6389_s16 }
 0x30b   : > { %v5501_v18 = vpop.f32.mrf.mxu1 }
 0x30d   : > { %v1485_v19 = vpop.f32.mrf.mxu1 }
 0x30e   : > { %2289 = vrot.lane.b32.xlu1 %v6977_v6, %s6387_s5  ;;  %2291 = vrot.lane.b32.xlu0 %v6983_v10, %s6387_s5 }
 0x30f   : > { %v5502_v20 = vpop.f32.mrf.mxu1 }
 0x312   : > { %2295 = vrot.lane.b32.xlu1 %v6977_v6, %s6388_s27  ;;  %2297 = vrot.lane.b32.xlu0 %v6983_v10, %s6388_s27 }
 0x316   : > { %2301 = vrot.lane.b32.xlu1 %v6977_v6, %s6389_s16  ;;  %2303 = vrot.lane.b32.xlu0 %v6983_v10, %s6389_s16 }
 0x319   : > { %v7012_v21 = vpop.f32.mrf.mxu1 }
 0x31b   : > { %v5525_v22 = vpop.f32.mrf.mxu1 }
 0x31d   : > { %v7014_v23 = vpop.f32.mrf.mxu1 }
 0x31f   : > { %v5526_v24 = vpop.f32.mrf.mxu1 }
 0x36c   : > { %v1637_v25 = vpop.permute.xlu1 %1636 }
 0x370   : > { %v1643_v27 = vpop.permute.xlu1 %1642  ;;  %v1639_v28 = vpop.permute.xlu0 %1638 }
 0x371   : > { %v1654_v46 = vcombine.low %v6975_v5, %v1643_v27  ;;  %v1655_v47 = vcombine.high %v6975_v5, %v1643_v27 }
 0x373   : > { %v1662_v1 = vrot.slane %v1654_v46, %v7019_v43  ;;  %v1669_v2 = vrot.slane %v1655_v47, %v7019_v43 }
 0x374   : > { %v1645_v32 = vpop.permute.xlu0 %1644  ;;  %v2071_v33 = vpop.permute.xlu1 %2070 }
 0x375   : > { %v2076_v38 = vcombine.low %v1426_v13, %v2071_v33  ;;  %v2077_v39 = vcombine.high %v1426_v13, %v2071_v33  ;;  %v1722_v48 = vcombine.low %v6981_v9, %v1645_v32  ;;  %v1723_v49 = vcombine.high %v6981_v9, %v1645_v32 }
 0x377   : > { %v2084_v50 = vrot.slane %v2076_v38, %v7019_v43  ;;  %v2091_v51 = vrot.slane %v2077_v39, %v7019_v43  ;;  %v1730_v3 = vrot.slane %v1722_v48, %v7019_v43  ;;  %v1737_v4 = vrot.slane %v1723_v49, %v7019_v43 }
 0x378   : > { %v2074_v40 = vpop.permute.xlu1 %2073  ;;  %v2068_v42 = vpop.permute.xlu0 %2067 }
 0x379   : > { %v2092_v44 = vcombine.low %v2068_v42, %v2074_v40  ;;  %v2093_v45 = vcombine.high %v2068_v42, %v2074_v40 }
 0x37b   : > { %v2100_v52 = vrot.slane %v2092_v44, %v7019_v43  ;;  %v2107_v53 = vrot.slane %v2093_v45, %v7019_v43 }
 0x37c   : > { %v1649_v55 = vpop.permute.xlu1 %1648  ;;  %v1651_v56 = vpop.permute.xlu0 %1650 }
 0x37d   : > { %v2108_v57 = vcombine.low %v2084_v50, %v2100_v52  ;;  %v2109_v58 = vcombine.high %v2084_v50, %v2100_v52  ;;  %v2124_v59 = vcombine.low %v2091_v51, %v2107_v53  ;;  %v2125_v60 = vcombine.high %v2091_v51, %v2107_v53 }
 0x37e   : > { %v1670_v61 = vcombine.low %v1637_v25, %v1649_v55  ;;  %v1671_v62 = vcombine.high %v1637_v25, %v1649_v55  ;;  %v1738_v63 = vcombine.low %v1639_v28, %v1651_v56  ;;  %v1739_v0 = vcombine.high %v1639_v28, %v1651_v56 }
 0x37f   : > { %v7041_v13 = vrot.slane %v2108_v57, %v7030_v54  ;;  %v7044_v14 = vrot.slane %v2109_v58, %v7030_v54  ;;  %v7047_v15 = vrot.slane %v2124_v59, %v7030_v54  ;;  %v7050_v16 = vrot.slane %v2125_v60, %v7030_v54 }
 0x380   : > { %v1678_v5 = vrot.slane %v1670_v61, %v7019_v43  ;;  %v1685_v7 = vrot.slane %v1671_v62, %v7019_v43  ;;  %v1746_v8 = vrot.slane %v1738_v63, %v7019_v43  ;;  %v1753_v9 = vrot.slane %v1739_v0, %v7019_v43  ;;  %v2290_v11 = vpop.permute.xlu1 %2289  ;;  %v2292_v12 = vpop.permute.xlu0 %2291 }
 0x381   : > { %v2144_v33 = vcombine.low %v7041_v13, %v7044_v14  ;;  %v5311_v34 = vcombine.high %v7041_v13, %v7044_v14  ;;  %v2160_v35 = vcombine.low %v7047_v15, %v7050_v16 }
 0x382   : > { %v1686_v18 = vcombine.low %v1662_v1, %v1678_v5  ;;  %v1687_v19 = vcombine.high %v1662_v1, %v1678_v5  ;;  %v1702_v20 = vcombine.low %v1669_v2, %v1685_v7  ;;  %v1703_v22 = vcombine.high %v1669_v2, %v1685_v7 }
 0x383   : > { %v1754_v24 = vcombine.low %v1730_v3, %v1746_v8  ;;  %v1755_v25 = vcombine.high %v1730_v3, %v1746_v8  ;;  %v1770_v27 = vcombine.low %v1737_v4, %v1753_v9  ;;  %v1771_v28 = vcombine.high %v1737_v4, %v1753_v9 }
 0x384   : > { %v1694_v29 = vrot.slane %v1686_v18, %v7030_v54  ;;  %v1701_v30 = vrot.slane %v1687_v19, %v7030_v54  ;;  %v2296_v31 = vpop.permute.xlu1 %2295  ;;  %v2298_v32 = vpop.permute.xlu0 %2297  ;;  %v1710_v36 = vrot.slane %v1702_v20, %v7030_v54  ;;  %v1717_v38 = vrot.slane %v1703_v22, %v7030_v54 }
 0x385   : > { %v1762_v39 = vrot.slane %v1754_v24, %v7030_v54  ;;  %v1769_v40 = vrot.slane %v1755_v25, %v7030_v54  ;;  %v1778_v44 = vrot.slane %v1770_v27, %v7030_v54  ;;  %v1785_v45 = vrot.slane %v1771_v28, %v7030_v54 }
 0x386   : > { %v1790_v41 = vcombine.low %v1694_v29, %v1701_v30  ;;  %v5306_v42 = vcombine.high %v1694_v29, %v1701_v30  ;;  %v2307_v46 = vcombine.low %v6977_v6, %v2296_v31  ;;  %v2308_v47 = vcombine.high %v6977_v6, %v2296_v31 }
 0x387   : > { %v2375_v48 = vcombine.low %v6983_v10, %v2298_v32  ;;  %v2376_v49 = vcombine.high %v6983_v10, %v2298_v32  ;;  %v1806_v57 = vcombine.low %v1710_v36, %v1717_v38  ;;  %v5307_v58 = vcombine.high %v1710_v36, %v1717_v38 }
 0x388   : > { %v2302_v50 = vpop.permute.xlu1 %2301  ;;  %v2304_v51 = vpop.permute.xlu0 %2303  ;;  %v2315_v59 = vrot.slane %v2307_v46, %v7019_v43  ;;  %v2322_v60 = vrot.slane %v2308_v47, %v7019_v43  ;;  %v1797_v1 = vrot.slane %v1790_v41, %v7019_v43  ;;  %v1805_v2 = vrot.slane %v5306_v42, %v7019_v43 }
 0x389   : > { %v2323_v52 = vcombine.low %v2290_v11, %v2302_v50  ;;  %v2324_v53 = vcombine.high %v2290_v11, %v2302_v50  ;;  %v2391_v55 = vcombine.low %v2292_v12, %v2304_v51  ;;  %v2392_v56 = vcombine.high %v2292_v12, %v2304_v51 }
 0x38a   : > { %v2383_v63 = vrot.slane %v2375_v48, %v7019_v43  ;;  %v2390_v0 = vrot.slane %v2376_v49, %v7019_v43  ;;  %v1813_v20 = vrot.slane %v1806_v57, %v7019_v43  ;;  %v1821_v22 = vrot.slane %v5307_v58, %v7019_v43 }
 0x38b   : > { %v2331_v61 = vrot.slane %v2323_v52, %v7019_v43  ;;  %v2338_v6 = vrot.slane %v2324_v53, %v7019_v43  ;;  %v2399_v62 = vrot.slane %v2391_v55, %v7019_v43  ;;  %v2406_v10 = vrot.slane %v2392_v56, %v7019_v43 }
 0x38c   : > { %v1858_v24 = vcombine.low %v1762_v39, %v1769_v40  ;;  %v5308_v25 = vcombine.high %v1762_v39, %v1769_v40  ;;  %v1874_v27 = vcombine.low %v1778_v44, %v1785_v45  ;;  %v5309_v28 = vcombine.high %v1778_v44, %v1785_v45 }
 0x38d   : > { %v2339_v3 = vcombine.low %v2315_v59, %v2331_v61  ;;  %v2340_v4 = vcombine.high %v2315_v59, %v2331_v61  ;;  %v2355_v5 = vcombine.low %v2322_v60, %v2338_v6  ;;  %v2356_v7 = vcombine.high %v2322_v60, %v2338_v6 }
 0x38e   : > { %v2407_v8 = vcombine.low %v2383_v63, %v2399_v62  ;;  %v2408_v9 = vcombine.high %v2383_v63, %v2399_v62  ;;  %v2423_v11 = vcombine.low %v2390_v0, %v2406_v10  ;;  %v2424_v12 = vcombine.high %v2390_v0, %v2406_v10 }
 0x38f   : > { %v7081_v18 = vrot.slane %v2339_v3, %v7030_v54  ;;  %v7084_v19 = vrot.slane %v2340_v4, %v7030_v54  ;;  %v5312_v29 = vcombine.high %v7047_v15, %v7050_v16  ;;  %v7091_v30 = vrot.slane %v2355_v5, %v7030_v54 }
 0x390   : > { %v7094_v31 = vrot.slane %v2356_v7, %v7030_v54  ;;  %v7097_v32 = vrot.slane %v2407_v8, %v7030_v54  ;;  %v7102_v38 = vrot.slane %v2408_v9, %v7030_v54  ;;  %v7105_v39 = vrot.slane %v2423_v11, %v7030_v54 }
 0x391   : > { %v2443_v36 = vcombine.low %v7081_v18, %v7084_v19  ;;  %v7108_v40 = vrot.slane %v2424_v12, %v7030_v54  ;;  %v1822_v41 = vcombine.low %v1797_v1, %v1805_v2  ;;  %v1838_v42 = vcombine.low %v1813_v20, %v1821_v22 }
 0x392   : > { %v1823_v44 = vcombine.high %v1797_v1, %v1805_v2  ;;  %v1839_v45 = vcombine.high %v1813_v20, %v1821_v22  ;;  %v1865_v46 = vrot.slane %v1858_v24, %v7019_v43  ;;  %v1873_v47 = vrot.slane %v5308_v25, %v7019_v43 }
 0x393   : > { %v1881_v48 = vrot.slane %v1874_v27, %v7019_v43  ;;  %v1889_v49 = vrot.slane %v5309_v28, %v7019_v43  ;;  %v1830_v50 = vrot.slane %v1822_v41, %v7030_v54  ;;  %v1846_v51 = vrot.slane %v1838_v42, %v7030_v54 }
 0x394   : > { %v1837_v52 = vrot.slane %v1823_v44, %v7030_v54  ;;  %v1853_v53 = vrot.slane %v1839_v45, %v7030_v54  ;;  %v1890_v55 = vcombine.low %v1865_v46, %v1873_v47  ;;  %v2151_v57 = vrot.slane %v2144_v33, %v7019_v43 }
 0x395   : > { %v1906_v56 = vcombine.low %v1881_v48, %v1889_v49  ;;  %v2159_v58 = vrot.slane %v5311_v34, %v7019_v43  ;;  %v7126_v59 = vcombine.high %v1830_v50, %v1846_v51  ;;  %v7128_v60 = vcombine.low %v1830_v50, %v1846_v51 }
 0x396   : > { %v7130_v61 = vcombine.low %v1837_v52, %v1853_v53  ;;  %v2167_v6 = vrot.slane %v2160_v35, %v7019_v43  ;;  %v1898_v62 = vrot.slane %v1890_v55, %v7030_v54  ;;  %v2175_v10 = vrot.slane %v5312_v29, %v7019_v43 }
 0x397   : > { %v1914_v33 = vrot.slane %v1906_v56, %v7030_v54  ;;  %v2176_v63 = vcombine.low %v2151_v57, %v2159_v58  ;;  %v5314_v13 = vcombine.high %v7081_v18, %v7084_v19  ;;  %v1929_v14 = vmul.f32 %v7126_v59, %v7126_v59 }
 0x398   : > { %v1927_v34 = vmul.f32 %v7128_v60, %v7128_v60  ;;  %v1931_v15 = vmul.f32 %v7130_v61, %v7130_v61  ;;  %v2192_v0 = vcombine.low %v2167_v6, %v2175_v10  ;;  %v2459_v2 = vcombine.low %v7091_v30, %v7094_v31 }
 0x399   : > { %v7147_v16 = vcombine.low %v1898_v62, %v1914_v33  ;;  %v2184_v35 = vrot.slane %v2176_v63, %v7030_v54  ;;  %v7150_v1 = vcombine.high %v1898_v62, %v1914_v33  ;;  %v5315_v3 = vcombine.high %v7091_v30, %v7094_v31 }
 0x39a   : > { %v1942_v4 = vsel %vm1935_vm4, %v1929_v14, 0.0  ;;  %v1936_v5 = vsel %vm1935_vm4, %v1927_v34, 0.0  ;;  %v2200_v8 = vrot.slane %v2192_v0, %v7030_v54  ;;  %v7161_v9 = vcombine.high %v1837_v52, %v1853_v53 }
 0x39b   : > { %1943 = vadd.xlane.f32.xlu1 %v1942_v4  ;;  %1937 = vadd.xlane.f32.xlu0 %v1936_v5  ;;  %v1928_v7 = vmul.f32 %v7147_v16, %v7147_v16  ;;  %v1948_v11 = vsel %vm1935_vm4, %v1931_v15, 0.0  ;;  %v1891_v12 = vcombine.high %v1865_v46, %v1873_v47  ;;  %v1907_v18 = vcombine.high %v1881_v48, %v1889_v49 }
 0x39c   : > { %v2177_v19 = vcombine.high %v2151_v57, %v2159_v58  ;;  %v7165_v22 = vcombine.low %v2184_v35, %v2200_v8  ;;  %v1930_v24 = vmul.f32 %v7150_v1, %v7150_v1  ;;  %v2193_v25 = vcombine.high %v2167_v6, %v2175_v10 }
 0x39d   : > { %v1939_v20 = vsel %vm1935_vm4, %v1928_v7, 0.0  ;;  %v1905_v27 = vrot.slane %v1891_v12, %v7030_v54  ;;  %v1921_v28 = vrot.slane %v1907_v18, %v7030_v54  ;;  %v7172_v30 = vcombine.high %v2184_v35, %v2200_v8 }
 0x39e   : > { %v2191_v29 = vrot.slane %v2177_v19, %v7030_v54  ;;  %v2213_v31 = vmul.f32 %v7165_v22, %v7165_v22  ;;  %v2207_v41 = vrot.slane %v2193_v25, %v7030_v54  ;;  %v2450_v42 = vrot.slane %v2443_v36, %v7019_v43 }
 0x39f   : > { %1949 = vadd.xlane.f32.xlu1 %v1948_v11  ;;  %1940 = vadd.xlane.f32.xlu0 %v1939_v20  ;;  %v1933_v44 = vmul.f32 %v7161_v9, %v7161_v9  ;;  %v7180_v45 = vcombine.low %v1905_v27, %v1921_v28  ;;  %v2458_v46 = vrot.slane %v5314_v13, %v7019_v43  ;;  %v1945_v52 = vsel %vm1935_vm4, %v1930_v24, 0.0 }
 0x3a0   : > { %v2466_v47 = vrot.slane %v2459_v2, %v7019_v43  ;;  %v2511_v48 = vcombine.low %v7097_v32, %v7102_v38  ;;  %v5316_v49 = vcombine.high %v7097_v32, %v7102_v38  ;;  %v7188_v50 = vcombine.low %v2191_v29, %v2207_v41 }
 0x3a1   : > { %v2474_v51 = vrot.slane %v5315_v3, %v7019_v43  ;;  %v2217_v36 = vsel %vm1935_vm4, %v2213_v31, 0.0  ;;  %v1932_v53 = vmul.f32 %v7180_v45, %v7180_v45  ;;  %v2475_v55 = vcombine.low %v2450_v42, %v2458_v46 }
 0x3a2   : > { %v2214_v56 = vmul.f32 %v7172_v30, %v7172_v30  ;;  %v2527_v32 = vcombine.low %v7105_v39, %v7108_v40  ;;  %v5317_v38 = vcombine.high %v7105_v39, %v7108_v40  ;;  %v1954_v58 = vsel %vm1935_vm4, %v1933_v44, 0.0 }
 0x3a3   : > { %2218 = vadd.xlane.f32.xlu1 %v2217_v36  ;;  %1946 = vadd.xlane.f32.xlu0 %v1945_v52  ;;  %v2491_v57 = vcombine.low %v2466_v47, %v2474_v51  ;;  %v2483_v6 = vrot.slane %v2475_v55, %v7030_v54  ;;  %v2215_v62 = vmul.f32 %v7188_v50, %v7188_v50  ;;  %v1951_v13 = vsel %vm1935_vm4, %v1932_v53, 0.0 }
 0x3a4   : > { %v7206_v10 = vcombine.high %v1905_v27, %v1921_v28  ;;  %v2476_v63 = vcombine.high %v2450_v42, %v2458_v46  ;;  %v2492_v14 = vcombine.high %v2466_v47, %v2474_v51  ;;  %v2518_v34 = vrot.slane %v2511_v48, %v7019_v43 }
 0x3a5   : > { %v2499_v33 = vrot.slane %v2491_v57, %v7030_v54  ;;  %v2526_v15 = vrot.slane %v5316_v49, %v7019_v43  ;;  %v2220_v39 = vsel %vm1935_vm4, %v2214_v56, 0.0  ;;  %v7214_v35 = vcombine.high %v2191_v29, %v2207_v41 }
 0x3a6   : > { %v2534_v0 = vrot.slane %v2527_v32, %v7019_v43  ;;  %v2542_v2 = vrot.slane %v5317_v38, %v7019_v43  ;;  %v2223_v4 = vsel %vm1935_vm4, %v2215_v62, 0.0  ;;  %v1934_v5 = vmul.f32 %v7206_v10, %v7206_v10 }
 0x3a7   : > { %1955 = vadd.xlane.f32.xlu1 %v1954_v58  ;;  %1952 = vadd.xlane.f32.xlu0 %v1951_v13  ;;  %v7212_v40 = vcombine.low %v2483_v6, %v2499_v33  ;;  %v2543_v3 = vcombine.low %v2518_v34, %v2526_v15  ;;  %v7221_v7 = vcombine.high %v2483_v6, %v2499_v33 }
 0x3a8   : > { %v2490_v8 = vrot.slane %v2476_v63, %v7030_v54  ;;  %v2506_v12 = vrot.slane %v2492_v14, %v7030_v54  ;;  %v2559_v19 = vcombine.low %v2534_v0, %v2542_v2  ;;  %v1957_v24 = vsel %vm1935_vm4, %v1934_v5, 0.0 }
 0x3a9   : > { %v2579_v11 = vmul.f32 %v7212_v40, %v7212_v40  ;;  %v2551_v18 = vrot.slane %v2543_v3, %v7030_v54  ;;  %v2581_v25 = vmul.f32 %v7221_v7, %v7221_v7  ;;  %v2216_v27 = vmul.f32 %v7214_v35, %v7214_v35 }
 0x3aa   : > { %v2567_v20 = vrot.slane %v2559_v19, %v7030_v54  ;;  %v2544_v28 = vcombine.high %v2518_v34, %v2526_v15  ;;  %v7235_v31 = vcombine.low %v2490_v8, %v2506_v12  ;;  %v2560_v42 = vcombine.high %v2534_v0, %v2542_v2 }
 0x3ab   : > { %2224 = vadd.xlane.f32.xlu1 %v2223_v4  ;;  %2221 = vadd.xlane.f32.xlu0 %v2220_v39  ;;  %v2587_v29 = vsel %vm1935_vm4, %v2579_v11, 0.0  ;;  %v2593_v44 = vsel %vm1935_vm4, %v2581_v25, 0.0  ;;  %v2226_v46 = vsel %vm1935_vm4, %v2216_v27, 0.0  ;;  %v7241_v47 = vcombine.high %v2490_v8, %v2506_v12 }
 0x3ac   : > { %v7237_v41 = vcombine.low %v2551_v18, %v2567_v20  ;;  %v2558_v48 = vrot.slane %v2544_v28, %v7030_v54  ;;  %v2583_v49 = vmul.f32 %v7235_v31, %v7235_v31  ;;  %v7248_v36 = vcombine.high %v2551_v18, %v2567_v20 }
 0x3ad   : > { %v2574_v52 = vrot.slane %v2560_v42, %v7030_v54  ;;  %v2585_v53 = vmul.f32 %v7241_v47, %v7241_v47 }
 0x3ae   : > { %v2580_v51 = vmul.f32 %v7237_v41, %v7237_v41  ;;  %v2599_v55 = vsel %vm1935_vm4, %v2583_v49, 0.0  ;;  %v2582_v57 = vmul.f32 %v7248_v36, %v7248_v36 }
 0x3af   : > { %2588 = vadd.xlane.f32.xlu1 %v2587_v29  ;;  %1958 = vadd.xlane.f32.xlu0 %v1957_v24  ;;  %v7257_v32 = vcombine.low %v2558_v48, %v2574_v52  ;;  %v2605_v38 = vsel %vm1935_vm4, %v2585_v53, 0.0  ;;  %v7263_v62 = vcombine.high %v2558_v48, %v2574_v52 }
 0x3b0   : > { %v2590_v56 = vsel %vm1935_vm4, %v2580_v51, 0.0  ;;  %v2596_v58 = vsel %vm1935_vm4, %v2582_v57, 0.0 }
 0x3b1   : > { %v2584_v6 = vmul.f32 %v7257_v32, %v7257_v32  ;;  %v2586_v63 = vmul.f32 %v7263_v62, %v7263_v62 }
 0x3b3   : > { %2594 = vadd.xlane.f32.xlu1 %v2593_v44  ;;  %2227 = vadd.xlane.f32.xlu0 %v2226_v46  ;;  %v2602_v33 = vsel %vm1935_vm4, %v2584_v6, 0.0  ;;  %v2608_v13 = vsel %vm1935_vm4, %v2586_v63, 0.0 }
 0x3b7   : > { %2600 = vadd.xlane.f32.xlu1 %v2599_v55  ;;  %2591 = vadd.xlane.f32.xlu0 %v2590_v56 }
 0x3bb   : > { %2606 = vadd.xlane.f32.xlu1 %v2605_v38  ;;  %2597 = vadd.xlane.f32.xlu0 %v2596_v58 }
 0x3bf   : > { %2603 = vadd.xlane.f32.xlu0 %v2602_v33 }
 0x3c3   : > { %2609 = vadd.xlane.f32.xlu0 %v2608_v13 }
 0x3cc   : > { %2863 = vrot.lane.b32.xlu1 %v7012_v21, %s6387_s5 }
 0x3d0   : > { %2869 = vrot.lane.b32.xlu1 %v7012_v21, %s6388_s27 }
 0x3d4   : > { %2871 = vrot.lane.b32.xlu1 %v7014_v23, %s6388_s27 }
 0x3d8   : > { %2875 = vrot.lane.b32.xlu1 %v7012_v21, %s6389_s16 }
 0x3d9   : > { %2865 = vrot.lane.b32.xlu0 %v7014_v23, %s6387_s5 }
 0x424   : > { %v1944_v14 = vpop.xlane.xlu1 %1943  ;;  %v1938_v34 = vpop.xlane.xlu0 %1937 }
 0x425   : > { %5869 = vrsqrt.f32 %v1944_v14  ;;  %vm1976_vm5 = vcmp.eq.f32.partialorder %v1944_v14, inf  ;;  %vm1978_vm6 = vcmp.eq.f32.partialorder %v1944_v14, 0.0  ;;  %v1979_v12 = vand.u32 2147483648, %v1944_v14 }
 0x426   : > { %5871 = vrsqrt.f32 %v1938_v34  ;;  %vm1962_vm7 = vcmp.eq.f32.partialorder %v1938_v34, inf  ;;  %vm1964_vm8 = vcmp.eq.f32.partialorder %v1938_v34, 0.0  ;;  %v1965_v25 = vand.u32 2147483648, %v1938_v34 }
 0x428   : > { %v1950_v15 = vpop.xlane.xlu1 %1949  ;;  %v7279_v39 = vpop.xlane.xlu0 %1940 }
 0x429   : > { %5873 = vrsqrt.f32 %v1950_v15  ;;  %vm1990_vm9 = vcmp.eq.f32.partialorder %v1950_v15, inf  ;;  %vm1992_vm10 = vcmp.eq.f32.partialorder %v1950_v15, 0.0  ;;  %v1993_v46 = vand.u32 2147483648, %v1950_v15 }
 0x42a   : > { %5875 = vrsqrt.f32 %v7279_v39  ;;  %vm1969_vm11 = vcmp.eq.f32.partialorder %v7279_v39, inf  ;;  %vm1971_vm12 = vcmp.eq.f32.partialorder %v7279_v39, 0.0  ;;  %v1972_v51 = vand.u32 2147483648, %v7279_v39 }
 0x42c   : > { %v7282_v0 = vpop.xlane.xlu1 %2218  ;;  %v7284_v2 = vpop.xlane.xlu0 %1946 }
 0x42d   : > { %5877 = vrsqrt.f32 %v7282_v0  ;;  %vm2231_vm13 = vcmp.eq.f32.partialorder %v7282_v0, inf  ;;  %vm2233_vm14 = vcmp.eq.f32.partialorder %v7282_v0, 0.0  ;;  %v2234_v38 = vand.u32 2147483648, %v7282_v0 }
 0x42e   : > { %5879 = vrsqrt.f32 %v7284_v2  ;;  %vm1983_vm15 = vcmp.eq.f32.partialorder %v7284_v2, inf  ;;  %vm1985_vm0 = vcmp.eq.f32.partialorder %v7284_v2, 0.0  ;;  %v1986_v13 = vand.u32 2147483648, %v7284_v2 }
 0x430   : > { %v7288_v3 = vpop.xlane.xlu1 %1955  ;;  %v7290_v4 = vpop.xlane.xlu0 %1952 }
 0x431   : > { %5881 = vrsqrt.f32 %v7288_v3 }
 0x432   : > { %v5870_v5 = vpop.eup %5869  ;;  %5883 = vrsqrt.f32 %v7290_v4 }
 0x433   : > { %v5872_v8 = vpop.eup %5871  ;;  %v1975_v11 = vmul.f32 %v5870_v5, %v1944_v14  ;;  %v2007_v5 = vand.u32 2147483648, %v7288_v3 }
 0x434   : > { %v1961_v18 = vmul.f32 %v5872_v8, %v1938_v34  ;;  %v7294_v19 = vpop.xlane.xlu1 %2224  ;;  %v7296_v20 = vpop.xlane.xlu0 %2221 }
 0x435   : > { %v1977_v24 = vsel %vm1976_vm5, %v1944_v14, %v1975_v11  ;;  %5885 = vrsqrt.f32 %v7294_v19  ;;  %vm2004_vm5 = vcmp.eq.f32.partialorder %v7288_v3, inf }
 0x436   : > { %v5874_v27 = vpop.eup %5873  ;;  %v1963_v28 = vsel %vm1962_vm7, %v1938_v34, %v1961_v18  ;;  %5887 = vrsqrt.f32 %v7296_v20  ;;  %v1980_v42 = vsel %vm1978_vm6, %v1979_v12, %v1977_v24  ;;  %vm1997_vm6 = vcmp.eq.f32.partialorder %v7290_v4, inf }
 0x437   : > { %v5876_v29 = vpop.eup %5875  ;;  %v1989_v44 = vmul.f32 %v5874_v27, %v1950_v15  ;;  %v1966_v48 = vsel %vm1964_vm8, %v1965_v25, %v1963_v28  ;;  %v2018_v57 = vmul.f32 0.25, %v1980_v42  ;;  %vm1999_vm7 = vcmp.eq.f32.partialorder %v7290_v4, 0.0 }
 0x438   : > { %v1968_v49 = vmul.f32 %v5876_v29, %v7279_v39  ;;  %v7305_v52 = vpop.xlane.xlu1 %2588  ;;  %v7307_v53 = vpop.xlane.xlu0 %1958  ;;  %v2016_v6 = vmul.f32 0.25, %v1966_v48  ;;  %vm2006_vm8 = vcmp.eq.f32.partialorder %v7288_v3, 0.0 }
 0x439   : > { %v1991_v55 = vsel %vm1990_vm9, %v1950_v15, %v1989_v44  ;;  %5889 = vrsqrt.f32 %v7305_v52  ;;  %v2026_v18 = vmax.f32 %v2018_v57, 1e-08  ;;  %v2000_v44 = vand.u32 2147483648, %v7290_v4 }
 0x43a   : > { %v5878_v56 = vpop.eup %5877  ;;  %v1994_v33 = vsel %vm1992_vm10, %v1993_v46, %v1991_v55  ;;  %v1970_v14 = vsel %vm1969_vm11, %v7279_v39, %v1968_v49  ;;  %5891 = vrsqrt.f32 %v7307_v53  ;;  %v2024_v29 = vmax.f32 %v2016_v6, 1e-08 }
 0x43b   : > { %v5880_v58 = vpop.eup %5879  ;;  %v2230_v63 = vmul.f32 %v5878_v56, %v7282_v0  ;;  %v2020_v24 = vmul.f32 0.25, %v1994_v33  ;;  %v1973_v42 = vsel %vm1971_vm12, %v1972_v51, %v1970_v14  ;;  %vm2245_vm9 = vcmp.eq.f32.partialorder %v7294_v19, inf }
 0x43c   : > { %v1982_v34 = vmul.f32 %v5880_v58, %v7284_v2  ;;  %v7324_v8 = vpop.xlane.xlu1 %2594  ;;  %v7326_v11 = vpop.xlane.xlu0 %2227  ;;  %vm2247_vm10 = vcmp.eq.f32.partialorder %v7294_v19, 0.0  ;;  %v2248_v39 = vand.u32 2147483648, %v7294_v19  ;;  %vm2238_vm11 = vcmp.eq.f32.partialorder %v7296_v20, inf }
 0x43d   : > { %v2232_v15 = vsel %vm2231_vm13, %v7282_v0, %v2230_v63  ;;  %5893 = vrsqrt.f32 %v7324_v8  ;;  %v2017_v57 = vmul.f32 0.25, %v1973_v42  ;;  %vm2240_vm12 = vcmp.eq.f32.partialorder %v7296_v20, 0.0 }
 0x43e   : > { %v5882_v12 = vpop.eup %5881  ;;  %v2235_v25 = vsel %vm2233_vm14, %v2234_v38, %v2232_v15  ;;  %v1984_v27 = vsel %vm1983_vm15, %v7284_v2, %v1982_v34  ;;  %5895 = vrcp.f32 %v2026_v18  ;;  %v2028_v2 = vmax.f32 %v2020_v24, 1e-08 }
 0x43f   : > { %v5884_v28 = vpop.eup %5883  ;;  %v2257_v46 = vmul.f32 0.25, %v2235_v25  ;;  %v1987_v0 = vsel %vm1985_vm0, %v1986_v13, %v1984_v27  ;;  %v2003_v48 = vmul.f32 %v5882_v12, %v7288_v3  ;;  %5897 = vrcp.f32 %v2024_v29 }
 0x440   : > { %v1996_v49 = vmul.f32 %v5884_v28, %v7290_v4  ;;  %v7348_v55 = vpop.xlane.xlu1 %2600  ;;  %v7350_v56 = vpop.xlane.xlu0 %2591  ;;  %v2019_v6 = vmul.f32 0.25, %v1987_v0  ;;  %v2241_v24 = vand.u32 2147483648, %v7296_v20  ;;  %vm2613_vm13 = vcmp.eq.f32.partialorder %v7305_v52, inf }
 0x441   : > { %v2261_v63 = vmax.f32 %v2257_v46, 1e-08  ;;  %v2005_v13 = vsel %vm2004_vm5, %v7288_v3, %v2003_v48  ;;  %5899 = vrsqrt.f32 %v7326_v11  ;;  %vm2615_vm14 = vcmp.eq.f32.partialorder %v7305_v52, 0.0 }
 0x442   : > { %v5886_v51 = vpop.eup %5885  ;;  %v1998_v38 = vsel %vm1997_vm6, %v7290_v4, %v1996_v49  ;;  %5901 = vrcp.f32 %v2028_v2  ;;  %v2025_v4 = vmax.f32 %v2017_v57, 1e-08  ;;  %v2008_v28 = vsel %vm2006_vm8, %v2007_v5, %v2005_v13 }
 0x443   : > { %v5888_v58 = vpop.eup %5887  ;;  %v2244_v33 = vmul.f32 %v5886_v51, %v7294_v19  ;;  %v2001_v14 = vsel %vm1999_vm7, %v2000_v44, %v1998_v38  ;;  %5903 = vrcp.f32 %v2261_v63  ;;  %v2027_v46 = vmax.f32 %v2019_v6, 1e-08 }
 0x444   : > { %v2237_v34 = vmul.f32 %v5888_v58, %v7296_v20  ;;  %v7367_v15 = vpop.xlane.xlu1 %2606  ;;  %v7369_v12 = vpop.xlane.xlu0 %2597  ;;  %v2021_v29 = vmul.f32 0.25, %v2001_v14  ;;  %v2616_v48 = vand.u32 2147483648, %v7305_v52  ;;  %vm2011_vm15 = vcmp.eq.f32.partialorder %v7307_v53, inf }
 0x445   : > { %v2246_v18 = vsel %vm2245_vm9, %v7294_v19, %v2244_v33  ;;  %vm2013_vm0 = vcmp.eq.f32.partialorder %v7307_v53, 0.0  ;;  %5905 = vrsqrt.f32 %v7348_v55  ;;  %v7399_v5 = vmul.f32 0.25, %v2008_v28 }
 0x446   : > { %v5890_v25 = vpop.eup %5889  ;;  %v2239_v27 = vsel %vm2238_vm11, %v7296_v20, %v2237_v34  ;;  %v2249_v42 = vsel %vm2247_vm10, %v2248_v39, %v2246_v18  ;;  %5907 = vrsqrt.f32 %v7350_v56  ;;  %v2029_v2 = vmax.f32 %v2021_v29, 1e-08 }
 0x447   : > { %v2612_v44 = vmul.f32 %v5890_v25, %v7305_v52  ;;  %v2242_v0 = vsel %vm2240_vm12, %v2241_v24, %v2239_v27  ;;  %v5892_v19 = vpop.eup %5891  ;;  %v2259_v20 = vmul.f32 0.25, %v2249_v42  ;;  %5909 = vrcp.f32 %v2025_v4 }
 0x448   : > { %v7389_v49 = vpop.xlane.xlu0 %2603  ;;  %v7391_v51 = vpop.permute.xlu1 %2863  ;;  %v2258_v57 = vmul.f32 0.25, %v2242_v0  ;;  %v2010_v38 = vmul.f32 %v5892_v19, %v7307_v53  ;;  %5911 = vrcp.f32 %v2027_v46  ;;  %v2014_v58 = vand.u32 2147483648, %v7307_v53 }
 0x449   : > { %v2614_v3 = vsel %vm2613_vm13, %v7305_v52, %v2612_v44  ;;  %vm2627_vm5 = vcmp.eq.f32.partialorder %v7324_v8, inf  ;;  %vm2629_vm6 = vcmp.eq.f32.partialorder %v7324_v8, 0.0  ;;  %v2630_v63 = vand.u32 2147483648, %v7324_v8 }
 0x44a   : > { %v2617_v39 = vsel %vm2615_vm14, %v2616_v48, %v2614_v3  ;;  %v2012_v52 = vsel %vm2011_vm15, %v7307_v53, %v2010_v38  ;;  %5913 = vrsqrt.f32 %v7367_v15  ;;  %v5894_v13 = vpop.eup %5893  ;;  %v2030_v14 = vmax.f32 %v7399_v5, 1e-08 }
 0x44b   : > { %v2667_v33 = vmul.f32 0.25, %v2617_v39  ;;  %v2263_v34 = vmax.f32 %v2259_v20, 1e-08  ;;  %v2015_v18 = vsel %vm2013_vm0, %v2014_v58, %v2012_v52  ;;  %5915 = vrsqrt.f32 %v7369_v12  ;;  %v7421_v25 = vpop.eup %5895 }
 0x44c   : > { %v7408_v6 = vpop.permute.xlu1 %2869  ;;  %v7419_v24 = vpop.xlane.xlu0 %2609  ;;  %5917 = vrcp.f32 %v2029_v2  ;;  %v2262_v4 = vmax.f32 %v2258_v57, 1e-08  ;;  %v2626_v27 = vmul.f32 %v5894_v13, %v7324_v8  ;;  %vm2252_vm7 = vcmp.eq.f32.partialorder %v7326_v11, inf }
 0x44d   : > { %v7425_v28 = vpop.eup %5897  ;;  %v2023_v29 = vmul.f32 0.25, %v2015_v18  ;;  %vm2254_vm8 = vcmp.eq.f32.partialorder %v7326_v11, 0.0  ;;  %v2255_v53 = vand.u32 2147483648, %v7326_v11  ;;  %5919 = vrsqrt.f32 %v7389_v49 }
 0x44e   : > { %v2675_v44 = vmax.f32 %v2667_v33, 1e-08  ;;  %v2628_v46 = vsel %vm2627_vm5, %v7324_v8, %v2626_v27  ;;  %vm2641_vm9 = vcmp.eq.f32.partialorder %v7348_v55, inf  ;;  %5921 = vrsqrt.f32 %v7419_v24  ;;  %v5900_v0 = vpop.eup %5899 }
 0x44f   : > { %5923 = vrcp.f32 %v2263_v34  ;;  %v2631_v48 = vsel %vm2629_vm6, %v2630_v63, %v2628_v46  ;;  %vm2643_vm10 = vcmp.eq.f32.partialorder %v7348_v55, 0.0  ;;  %v2644_v3 = vand.u32 2147483648, %v7348_v55  ;;  %v7441_v19 = vpop.eup %5901 }
 0x450   : > { %v7430_v42 = vpop.permute.xlu1 %2871  ;;  %5925 = vrcp.f32 %v2262_v4  ;;  %v2251_v20 = vmul.f32 %v5900_v0, %v7326_v11  ;;  %vm2620_vm11 = vcmp.eq.f32.partialorder %v7350_v56, inf  ;;  %vm2622_vm12 = vcmp.eq.f32.partialorder %v7350_v56, 0.0  ;;  %v5904_v38 = vpop.eup %5903 }
 0x451   : > { %v2031_v39 = vmax.f32 %v2023_v29, 1e-08  ;;  %v2669_v2 = vmul.f32 0.25, %v2631_v48  ;;  %v2623_v57 = vand.u32 2147483648, %v7350_v56  ;;  %vm2655_vm13 = vcmp.eq.f32.partialorder %v7367_v15, inf }
 0x452   : > { %5927 = vrcp.f32 %v2675_v44  ;;  %v2253_v58 = vsel %vm2252_vm7, %v7326_v11, %v2251_v20  ;;  %vm2657_vm14 = vcmp.eq.f32.partialorder %v7367_v15, 0.0  ;;  %v2658_v33 = vand.u32 2147483648, %v7367_v15  ;;  %v5906_v52 = vpop.eup %5905 }
 0x453   : > { %vm2634_vm15 = vcmp.eq.f32.partialorder %v7369_v12, inf  ;;  %v2256_v63 = vsel %vm2254_vm8, %v2255_v53, %v2253_v58  ;;  %vm2636_vm0 = vcmp.eq.f32.partialorder %v7369_v12, 0.0  ;;  %v2637_v13 = vand.u32 2147483648, %v7369_v12  ;;  %v5908_v4 = vpop.eup %5907 }
 0x454   : > { %v2876_v8 = vpop.permute.xlu1 %2875  ;;  %v2881_v34 = vcombine.low %v7012_v21, %v7408_v6  ;;  %v2260_v27 = vmul.f32 0.25, %v2256_v63  ;;  %v2640_v29 = vmul.f32 %v5906_v52, %v7348_v55  ;;  %vm2648_vm5 = vcmp.eq.f32.partialorder %v7389_v49, inf  ;;  %v7465_v53 = vpop.eup %5909 }
 0x455   : > { %v2897_v18 = vcombine.low %v7391_v51, %v2876_v8  ;;  %v2651_v44 = vand.u32 2147483648, %v7389_v49  ;;  %v2665_v11 = vand.u32 2147483648, %v7419_v24  ;;  %5929 = vrcp.f32 %v2031_v39  ;;  %v7472_v20 = vpop.eup %5911 }
 0x456   : > { %v2677_v46 = vmax.f32 %v2669_v2, 1e-08  ;;  %v2619_v0 = vmul.f32 %v5908_v4, %v7350_v56  ;;  %vm2650_vm6 = vcmp.eq.f32.partialorder %v7389_v49, 0.0  ;;  %vm2662_vm7 = vcmp.eq.f32.partialorder %v7419_v24, inf }
 0x457   : > { %v2882_v48 = vcombine.high %v7012_v21, %v7408_v6  ;;  %v2264_v58 = vmax.f32 %v2260_v27, 1e-08  ;;  %v2642_v52 = vsel %vm2641_vm9, %v7348_v55, %v2640_v29  ;;  %vm2664_vm8 = vcmp.eq.f32.partialorder %v7419_v24, 0.0  ;;  %v5914_v63 = vpop.eup %5913  ;;  %v7492_v29 = vld [vmem:[%s8283_s18] ss:$0 sm:$0xff] }
 0x458   : > { %v2898_v39 = vcombine.high %v7391_v51, %v2876_v8  ;;  %v2266_v2 = vmul.f32 %v5904_v38, %v7165_v22  ;;  %v2645_v4 = vsel %vm2643_vm10, %v2644_v3, %v2642_v52  ;;  %v2621_v21 = vsel %vm2620_vm11, %v7350_v56, %v2619_v0  ;;  %v5916_v51 = vpop.eup %5915 }
 0x459   : > { %v2889_v6 = vrot.slane %v2881_v34, %v7019_v43  ;;  %v2905_v27 = vrot.slane %v2897_v18, %v7019_v43  ;;  %5931 = vrcp.f32 %v2264_v58  ;;  %v2671_v22 = vmul.f32 0.25, %v2645_v4  ;;  %v7497_v8 = vpop.eup %5917 }
 0x45a   : > { %v2624_v55 = vsel %vm2622_vm12, %v2623_v57, %v2621_v21  ;;  %v2654_v3 = vmul.f32 %v5914_v63, %v7367_v15  ;;  %5933 = vrcp.f32 %v2677_v46  ;;  %v2633_v34 = vmul.f32 %v5916_v51, %v7369_v12  ;;  %v5920_v0 = vpop.eup %5919 }
 0x45b   : > { %v2668_v38 = vmul.f32 0.25, %v2624_v55  ;;  %v2896_v18 = vrot.slane %v2882_v48, %v7019_v43  ;;  %v2679_v52 = vmax.f32 %v2671_v22, 1e-08  ;;  %v2912_v4 = vrot.slane %v2898_v39, %v7019_v43  ;;  %v5922_v57 = vpop.eup %5921 }
 0x45c   : > { %v2656_v58 = vsel %vm2655_vm13, %v7367_v15, %v2654_v3  ;;  %v2279_v56 = vmul.f32 %v7492_v29, %v2266_v2  ;;  %v2635_v21 = vsel %vm2634_vm15, %v7369_v12, %v2633_v34  ;;  %v2647_v48 = vmul.f32 %v5920_v0, %v7389_v49  ;;  %v5924_v51 = vpop.eup %5923 }
 0x45d   : > { %v2676_v63 = vmax.f32 %v2668_v38, 1e-08  ;;  %v2659_v46 = vsel %vm2657_vm14, %v2658_v33, %v2656_v58  ;;  %v2638_v22 = vsel %vm2636_vm0, %v2637_v13, %v2635_v21  ;;  %v2661_v55 = vmul.f32 %v5922_v57, %v7419_v24  ;;  %v5926_v2 = vpop.eup %5925 }
 0x45e   : > { %v2913_v39 = vcombine.low %v2889_v6, %v2905_v27  ;;  %v2914_v3 = vcombine.high %v2889_v6, %v2905_v27  ;;  %v2673_v38 = vmul.f32 0.25, %v2659_v46  ;;  %v2670_v26 = vmul.f32 0.25, %v2638_v22 }
 0x45f   : > { %5935 = vrcp.f32 %v2676_v63  ;;  %v2649_v15 = vsel %vm2648_vm5, %v7389_v49, %v2647_v48  ;;  %v2663_v12 = vsel %vm2662_vm7, %v7419_v24, %v2661_v55  ;;  %v2929_v13 = vcombine.low %v2896_v18, %v2912_v4  ;;  %v5928_v34 = vpop.eup %5927 }
 0x460   : > { %5937 = vrcp.f32 %v2679_v52  ;;  %v2652_v33 = vsel %vm2650_vm6, %v2651_v44, %v2649_v15  ;;  %v2678_v0 = vmax.f32 %v2670_v26, 1e-08  ;;  %v2666_v27 = vsel %vm2664_vm8, %v2665_v11, %v2663_v12 }
 0x461   : > { %v2672_v6 = vmul.f32 0.25, %v2652_v33  ;;  %v2930_v58 = vcombine.high %v2896_v18, %v2912_v4  ;;  %5939 = vrcp.f32 %v2030_v14  ;;  %v2674_v57 = vmul.f32 0.25, %v2666_v27  ;;  %v7541_v4 = vld [vmem:[%s8285_s24] ss:$0 sm:$0xff] }
 0x462   : > { %v2921_v49 = vrot.slane %v2913_v39, %v7030_v54  ;;  %v2681_v44 = vmax.f32 %v2673_v38, 1e-08  ;;  %5941 = vrcp.f32 %v2678_v0  ;;  %v2928_v63 = vrot.slane %v2914_v3, %v7030_v54  ;;  %v5930_v46 = vpop.eup %5929 }
 0x463   : > { %v2680_v52 = vmax.f32 %v2672_v6, 1e-08  ;;  %v2682_v21 = vmax.f32 %v2674_v57, 1e-08  ;;  %v2283_v26 = vpack.c.bf16 %v2279_v56, %v2279_v56  ;;  %v2035_v24 = vmul.f32 %v7465_v53, %v7147_v16 }
 0x464   : > { %v2937_v11 = vrot.slane %v2929_v13, %v7030_v54  ;;  %v2944_v5 = vrot.slane %v2930_v58, %v7030_v54  ;;  %v2033_v14 = vmul.f32 %v7425_v28, %v7128_v60  ;;  %v2268_v56 = vmul.f32 %v5926_v2, %v7172_v30 }
 0x465   : > { %5943 = vrcp.f32 %v2680_v52  ;;  %v3161_v18 = vsel %vm1935_vm4, %v2283_v26, 0  ;;  %v2270_v16 = vmul.f32 %v5924_v51, %v7188_v50  ;;  %v3017_v48 = vcombine.low %v2921_v49, %v2928_v63 }
 0x466   : > { %5945 = vrcp.f32 %v2682_v21  ;;  %v5932_v53 = vpop.eup %5931  ;;  %v5320_v22 = vcombine.high %v2921_v49, %v2928_v63  ;;  %5528 = vmatpush3.bf16.xpose.msra.mxu0 %v3161_v18  ;;  %v2055_v60 = vmul.f32 %v7541_v4, %v2035_v24  ;;  %v8286_v28 = vmov 0.0  }
 0x467   : > { %5947 = vrcp.f32 %v2681_v44  ;;  %v5934_v55 = vpop.eup %5933  ;;  %5539 = vmatprep.subr.bf16.mxu0 %v8286_v28  ;;  %v2280_v39 = vmul.f32 %v7492_v29, %v2268_v56  ;;  %v2281_v3 = vmul.f32 %v7492_v29, %v2270_v16  ;;  %v2272_v38 = vmul.f32 %v5932_v53, %v7214_v35 }
 0x468   : > { %v3033_v15 = vcombine.low %v2937_v11, %v2944_v5  ;;  %v5321_v30 = vcombine.high %v2937_v11, %v2944_v5  ;;  %v2054_v50 = vmul.f32 %v7541_v4, %v2033_v14  ;;  %v2037_v51 = vmul.f32 %v7421_v25, %v7126_v59 }
 0x469   : > { %v2284_v2 = vpack.c.bf16 %v2280_v39, %v2280_v39  ;;  %v2285_v33 = vpack.c.bf16 %v2281_v3, %v2281_v3  ;;  %v2039_v12 = vmul.f32 %v7472_v20, %v7150_v1  ;;  %v2282_v13 = vmul.f32 %v7492_v29, %v2272_v38 }
 0x46a   : > { %v7557_v0 = vrot.slane %v3017_v48, %v7019_v43  ;;  %v2043_v35 = vmul.f32 %v7497_v8, %v7180_v45  ;;  %v2684_v6 = vmul.f32 %v5928_v34, %v7212_v40  ;;  %v7562_v58 = vpack.c.bf16 %v2055_v60, %v2054_v50 }
 0x46b   : > { %v3208_v59 = vsel %vm1935_vm4, %v2284_v2, 0  ;;  %v3255_v25 = vsel %vm1935_vm4, %v2285_v33, 0  ;;  %v2041_v1 = vmul.f32 %v7441_v19, %v7130_v61  ;;  %v7569_v57 = vrot.slane %v5320_v22, %v7019_v43 }
 0x46c   : > { %v5936_v27 = vpop.eup %5935  ;;  %v7572_v49 = vrot.slane %v3033_v15, %v7019_v43  ;;  %v7575_v45 = vrot.slane %v5321_v30, %v7019_v43  ;;  %5534 = vmatpush3.bf16.xpose.msra.mxu1 %v3208_v59  ;;  %v2056_v8 = vmul.f32 %v7541_v4, %v2037_v51  ;;  %v2057_v61 = vmul.f32 %v7541_v4, %v2039_v12 }
 0x46d   : > { %v5938_v20 = vpop.eup %5937  ;;  %v2686_v40 = vmul.f32 %v5936_v27, %v7237_v41  ;;  %5530 = vmatmul.mubr.msk.bf16.vlgmr.msra.gmra.mxu0 %vm1935_vm4, %v7562_v58  ;;  %5545 = vmatprep.subr.bf16.mxu1 %v8286_v28  ;;  %v2286_v19 = vpack.c.bf16 %v2282_v13, %v2282_v13  ;;  %v2059_v44 = vmul.f32 %v7541_v4, %v2043_v35  ;;  %vm3521_vm9 = vcmask 64512  }
 0x46e   : > { %v5940_v34 = vpop.eup %5939  ;;  %5540 = vmatpush3.bf16.xpose.msra.mxu0 %v3255_v25  ;;  %5541 = vmatprep.mubr.msk.bf16.mxu0 %vm6386_vm3, %v8286_v28  ;;  %v2699_v52 = vmul.f32 %v7492_v29, %v2684_v6  ;;  %v2058_v21 = vmul.f32 %v7541_v4, %v2041_v1  ;;  %v2047_v26 = vmul.f32 %v5930_v46, %v7206_v10  ;;  %vm3901_vm10 = vcmask 1043456  }
 0x46f   : > { %v2700_v41 = vmul.f32 %v7492_v29, %v2686_v40  ;;  %v5942_v63 = vpop.eup %5941  ;;  %5551 = vmatprep.subr.bf16.mxu0 %v8286_v28  ;;  %v2688_v24 = vmul.f32 %v5934_v55, %v7221_v7  ;;  %v2692_v11 = vmul.f32 %v5938_v20, %v7235_v31  ;;  %v3050_v18 = vcombine.high %v7557_v0, %v7569_v57 }
 0x470   : > { %v2690_v14 = vmul.f32 %v5942_v63, %v7248_v36  ;;  %v3066_v56 = vcombine.high %v7572_v49, %v7575_v45  ;;  %v2063_v53 = vpack.c.bf16 %v2057_v61, %v2056_v8  ;;  %v3302_v48 = vsel %vm1935_vm4, %v2286_v19, 0 }
 0x471   : > { %v2707_v5 = vpack.c.bf16 %v2700_v41, %v2699_v52  ;;  %v2045_v22 = vmul.f32 %v5940_v34, %v7161_v9  ;;  %v2064_v46 = vpack.c.bf16 %v2059_v44, %v2058_v21  ;;  %v7603_v36 = vrot.slane %v3050_v18, %v7030_v54 }
 0x472   : > { %v5944_v16 = vpop.eup %5943  ;;  %v2702_v7 = vmul.f32 %v7492_v29, %v2690_v14  ;;  %v2061_v39 = vmul.f32 %v7541_v4, %v2047_v26  ;;  %v2701_v3 = vmul.f32 %v7492_v29, %v2688_v24  ;;  %v7610_v9 = vrot.slane %v3066_v56, %v7030_v54 }
 0x473   : > { %v5946_v10 = vpop.eup %5945  ;;  %v2694_v31 = vmul.f32 %v5944_v16, %v7257_v32  ;;  %5536 = vmatmul.mubr.msk.bf16.vlgmr.msra.gmra.mxu1 %vm1935_vm4, %v2063_v53  ;;  %v3346_v60 = vsel %vm1935_vm4, %v2707_v5, 0  ;;  %v2703_v32 = vmul.f32 %v7492_v29, %v2692_v11  ;;  %v2060_v2 = vmul.f32 %v7541_v4, %v2045_v22 }
 0x474   : > { %v5948_v55 = vpop.eup %5947  ;;  %5546 = vmatpush3.bf16.xpose.msra.mxu1 %v3302_v48  ;;  %5547 = vmatprep.mubr.msk.bf16.mxu1 %vm6386_vm3, %v8286_v28  ;;  %v2698_v15 = vmul.f32 %v5946_v10, %v7263_v62  ;;  %v2708_v30 = vpack.c.bf16 %v2702_v7, %v2701_v3  ;;  %v3083_v50 = vcombine.low %v7603_v36, %v7610_v9 }
 0x475   : > { %v2704_v38 = vmul.f32 %v7492_v29, %v2694_v31  ;;  %5542 = vmatmul.mubr.msk.bf16.vlgmr.msra.gmra.mxu0 %vm1935_vm4, %v2064_v46  ;;  %5557 = vmatprep.subr.bf16.mxu1 %v8286_v28  ;;  %v3084_v51 = vcombine.high %v7603_v36, %v7610_v9  ;;  %v2696_v33 = vmul.f32 %v5948_v55, %v7241_v47 }
 0x476   : > { %5552 = vmatpush3.bf16.xpose.msra.mxu0 %v3346_v60  ;;  %5553 = vmatprep.mubr.msk.bf16.mxu0 %vm6386_vm3, %v8286_v28  ;;  %v2065_v12 = vpack.c.bf16 %v2061_v39, %v2060_v2  ;;  %v3390_v13 = vsel %vm1935_vm4, %v2708_v30, 0  ;;  %v2706_v35 = vmul.f32 %v7492_v29, %v2698_v15 }
 0x477   : > { %5563 = vmatprep.subr.bf16.mxu0 %v8286_v28  ;;  %v2709_v62 = vpack.c.bf16 %v2704_v38, %v2703_v32  ;;  %v2705_v27 = vmul.f32 %v7492_v29, %v2696_v33 }
 0x479   : > { %v3434_v6 = vsel %vm1935_vm4, %v2709_v62, 0  ;;  %v2710_v47 = vpack.c.bf16 %v2706_v35, %v2705_v27 }
 0x47b   : > { %5548 = vmatmul.mubr.msk.bf16.vlgmr.msra.gmra.mxu1 %vm1935_vm4, %v2065_v12  ;;  %v3478_v4 = vsel %vm1935_vm4, %v2710_v47, 0 }
 0x47c   : > { %5558 = vmatpush3.bf16.xpose.msra.mxu1 %v3390_v13  ;;  %5559 = vmatprep.mubr.msk.bf16.mxu1 %vm6386_vm3, %v8286_v28 }
 0x47d   : > { %5554 = vmatmul.mubr.msk.bf16.vlgmr.msra.gmra.mxu0 %vm1935_vm4, %v7562_v58  ;;  %5569 = vmatprep.subr.bf16.mxu1 %v8286_v28 }
 0x47e   : > { %5564 = vmatpush3.bf16.xpose.msra.mxu0 %v3434_v6  ;;  %5565 = vmatprep.mubr.msk.bf16.mxu0 %vm6386_vm3, %v8286_v28 }
 0x47f   : > { %5575 = vmatprep.subr.bf16.mxu0 %v8286_v28 }
 0x483   : > { %5560 = vmatmul.mubr.msk.bf16.vlgmr.msra.gmra.mxu1 %vm1935_vm4, %v2063_v53 }
 0x484   : > { %5570 = vmatpush3.bf16.xpose.msra.mxu1 %v3478_v4  ;;  %5571 = vmatprep.mubr.msk.bf16.mxu1 %vm6386_vm3, %v8286_v28  ;;  %v7717_v4 = vpop.permute.xlu0 %2865 }
 0x485   : > { %5566 = vmatmul.mubr.msk.bf16.vlgmr.msra.gmra.mxu0 %vm1935_vm4, %v2064_v46  ;;  %5581 = vmatprep.subr.bf16.mxu1 %v8286_v28 }
 0x486   : > { %5577 = vmatprep.mubr.msk.bf16.mxu0 %vm6386_vm3, %v8286_v28 }
 0x48b   : > { %5572 = vmatmul.mubr.msk.bf16.vlgmr.msra.gmra.mxu1 %vm1935_vm4, %v2065_v12 }
 0x48c   : > { %5583 = vmatprep.mubr.msk.bf16.mxu1 %vm6386_vm3, %v8286_v28 }
 0x52d   : > { %v7652_v29 = vpop.f32.mrf.mxu0 }
 0x52e   : > { %v3522_v58 = vsel %vm3521_vm9, %v7652_v29, -inf }
 0x52f   : > { %v5531_v59 = vpop.f32.mrf.mxu0  ;;  %3523 = vmax.xlane.f32.xlu1 %v3522_v58 }
 0x531   : > { %v7656_v25 = vpop.f32.mrf.mxu0 }
 0x532   : > { %v3525_v1 = vsel %vm3521_vm9, %v7656_v25, -inf }
 0x533   : > { %v5532_v20 = vpop.f32.mrf.mxu0  ;;  %3526 = vmax.xlane.f32.xlu0 %v3525_v1  ;;  %v7660_v40 = vpop.f32.mrf.mxu1 }
 0x534   : > { %v3528_v8 = vsel %vm3521_vm9, %v7660_v40, -inf }
 0x535   : > { %v7664_v61 = vpop.f32.mrf.mxu0  ;;  %3529 = vmax.xlane.f32.xlu1 %v3528_v8  ;;  %v5537_v19 = vpop.f32.mrf.mxu1 }
 0x536   : > { %v3534_v52 = vsel %vm3521_vm9, %v7664_v61, -inf }
 0x537   : > { %v5543_v34 = vpop.f32.mrf.mxu0  ;;  %v7666_v44 = vpop.f32.mrf.mxu1 }
 0x538   : > { %v3531_v41 = vsel %vm3521_vm9, %v7666_v44, -inf }
 0x539   : > { %v7672_v63 = vpop.f32.mrf.mxu0  ;;  %3535 = vmax.xlane.f32.xlu1 %v3534_v52  ;;  %3532 = vmax.xlane.f32.xlu0 %v3531_v41  ;;  %v5538_v21 = vpop.f32.mrf.mxu1 }
 0x53a   : > { %v3537_v11 = vsel %vm3521_vm9, %v7672_v63, -inf }
 0x53b   : > { %v5544_v26 = vpop.f32.mrf.mxu0  ;;  %v7674_v24 = vpop.f32.mrf.mxu1 }
 0x53c   : > { %v3540_v5 = vsel %vm3521_vm9, %v7674_v24, -inf }
 0x53d   : > { %3538 = vmax.xlane.f32.xlu0 %v3537_v11  ;;  %3541 = vmax.xlane.f32.xlu1 %v3540_v5  ;;  %v5549_v14 = vpop.f32.mrf.mxu1  ;;  %v3382_v18 = vpop.f32.mrf.mxu0 }
 0x53e   : > { %v3546_v56 = vsel %vm1935_vm4, %v3382_v18, -inf }
 0x53f   : > { %v7681_v16 = vpop.f32.mrf.mxu1  ;;  %v5555_v53 = vpop.f32.mrf.mxu0 }
 0x540   : > { %v3543_v48 = vsel %vm3521_vm9, %v7681_v16, -inf }
 0x541   : > { %3547 = vmax.xlane.f32.xlu1 %v3546_v56  ;;  %3544 = vmax.xlane.f32.xlu0 %v3543_v48  ;;  %v5550_v22 = vpop.f32.mrf.mxu1  ;;  %v7685_v10 = vpop.f32.mrf.mxu0 }
 0x542   : > { %v3549_v46 = vsel %vm1935_vm4, %v7685_v10, -inf }
 0x543   : > { %v7689_v7 = vpop.f32.mrf.mxu1  ;;  %v5556_v31 = vpop.f32.mrf.mxu0 }
 0x544   : > { %v3552_v55 = vsel %vm1935_vm4, %v7689_v7, -inf }
 0x545   : > { %3550 = vmax.xlane.f32.xlu0 %v3549_v46  ;;  %3553 = vmax.xlane.f32.xlu1 %v3552_v55  ;;  %v5561_v60 = vpop.f32.mrf.mxu1  ;;  %v7693_v39 = vpop.f32.mrf.mxu0 }
 0x546   : > { %v3558_v3 = vsel %vm1935_vm4, %v7693_v39, -inf }
 0x547   : > { %v7697_v32 = vpop.f32.mrf.mxu1  ;;  %v5567_v38 = vpop.f32.mrf.mxu0 }
 0x548   : > { %v3555_v15 = vsel %vm1935_vm4, %v7697_v32, -inf }
 0x549   : > { %3559 = vmax.xlane.f32.xlu1 %v3558_v3  ;;  %3556 = vmax.xlane.f32.xlu0 %v3555_v15  ;;  %v5562_v30 = vpop.f32.mrf.mxu1  ;;  %v7701_v2 = vpop.f32.mrf.mxu0 }
 0x54a   : > { %v3561_v62 = vsel %vm1935_vm4, %v7701_v2, -inf }
 0x54b   : > { %v7705_v33 = vpop.f32.mrf.mxu1  ;;  %v5568_v12 = vpop.f32.mrf.mxu0 }
 0x54c   : > { %v3564_v13 = vsel %vm1935_vm4, %v7705_v33, -inf }
 0x54d   : > { %3562 = vmax.xlane.f32.xlu0 %v3561_v62  ;;  %3565 = vmax.xlane.f32.xlu1 %v3564_v13  ;;  %v5573_v35 = vpop.f32.mrf.mxu1 }
 0x54f   : > { %v7709_v6 = vpop.f32.mrf.mxu1 }
 0x550   : > { %v3567_v27 = vsel %vm1935_vm4, %v7709_v6, -inf }
 0x551   : > { %3568 = vmax.xlane.f32.xlu0 %v3567_v27  ;;  %v5574_v47 = vpop.f32.mrf.mxu1 }
 0x55e   : > { %2712 = vrot.lane.b32.xlu1 %v6994_v17, %s6387_s5  ;;  %s8293_s5 = sld [smem:[#allocation29_spill]] }
 0x564   : > { %p5378_p9 = scmp.ne.s32.totalorder %s8293_s5, 1 }
 0x565   : > { %s8295_s2 = sld [smem:[#allocation67_spill]] (!%p5378_p9) }
 0x567   : > { %2877 = vrot.lane.b32.xlu0 %v7014_v23, %s6389_s16 }
 0x5b8   : > { %v3524_v58 = vpop.xlane.xlu1 %3523 }
 0x5bc   : > { %v3527_v59 = vpop.xlane.xlu0 %3526 }
 0x5be   : > { %v3530_v1 = vpop.xlane.xlu1 %3529 }
 0x5c2   : > { %v3536_v20 = vpop.xlane.xlu1 %3535  ;;  %v3533_v8 = vpop.xlane.xlu0 %3532 }
 0x5c6   : > { %v3539_v19 = vpop.xlane.xlu0 %3538  ;;  %v3542_v34 = vpop.xlane.xlu1 %3541 }
 0x5ca   : > { %v3548_v52 = vpop.xlane.xlu1 %3547  ;;  %v3545_v41 = vpop.xlane.xlu0 %3544 }
 0x5cb   : > { %v3570_v21 = vmax.f32 %v3524_v58, %v3548_v52 }
 0x5cd   : > { %v3578_v26 = vsub.f32 %v7652_v29, %v3570_v21  ;;  %v3602_v11 = vsub.f32 %v3382_v18, %v3570_v21 }
 0x5ce   : > { %v3551_v5 = vpop.xlane.xlu0 %3550  ;;  %v3554_v14 = vpop.xlane.xlu1 %3553 }
 0x5cf   : > { %v3586_v56 = vmul.f32 1.442695, %v3578_v26  ;;  %v3571_v53 = vmax.f32 %v3527_v59, %v3551_v5  ;;  %v3572_v48 = vmax.f32 %v3530_v1, %v3554_v14  ;;  %v3610_v31 = vmul.f32 1.442695, %v3602_v11 }
 0x5d0   : > { %v2949_v1 = vcombine.low %v7014_v23, %v7430_v42 }
 0x5d1   : > { %5949 = vpow2.f32 %v3586_v56  ;;  %v3579_v22 = vsub.f32 %v7656_v25, %v3571_v53  ;;  %v3580_v46 = vsub.f32 %v7660_v40, %v3572_v48  ;;  %v3603_v15 = vsub.f32 %v7685_v10, %v3571_v53 }
 0x5d2   : > { %v3560_v55 = vpop.xlane.xlu1 %3559  ;;  %v3557_v60 = vpop.xlane.xlu0 %3556  ;;  %v3604_v18 = vsub.f32 %v7689_v7, %v3572_v48  ;;  %v2957_v21 = vrot.slane %v2949_v1, %v7019_v43 }
 0x5d3   : > { %v3588_v3 = vmul.f32 1.442695, %v3579_v22  ;;  %v3590_v38 = vmul.f32 1.442695, %v3580_v46  ;;  %v3574_v30 = vmax.f32 %v3536_v20, %v3560_v55  ;;  %v3573_v29 = vmax.f32 %v3533_v8, %v3557_v60 }
 0x5d4   : > { %v3612_v40 = vmul.f32 1.442695, %v3603_v15  ;;  %v3614_v58 = vmul.f32 1.442695, %v3604_v18  ;;  %v2950_v8 = vcombine.high %v7014_v23, %v7430_v42  ;;  %v3065_v18 = vcombine.low %v7572_v49, %v7575_v45 }
 0x5d5   : > { %5951 = vpow2.f32 %v3588_v3  ;;  %v3581_v62 = vsub.f32 %v7666_v44, %v3573_v29  ;;  %v3582_v35 = vsub.f32 %v7664_v61, %v3574_v30  ;;  %v3605_v10 = vsub.f32 %v7697_v32, %v3573_v29 }
 0x5d6   : > { %5953 = vpow2.f32 %v3610_v31  ;;  %v3563_v12 = vpop.xlane.xlu0 %3562  ;;  %v3566_v13 = vpop.xlane.xlu1 %3565  ;;  %v3606_v32 = vsub.f32 %v7693_v39, %v3574_v30  ;;  %v2964_v42 = vrot.slane %v2950_v8, %v7019_v43 }
 0x5d7   : > { %5955 = vpow2.f32 %v3590_v38  ;;  %v3575_v25 = vmax.f32 %v3539_v19, %v3563_v12  ;;  %v3592_v27 = vmul.f32 1.442695, %v3581_v62  ;;  %v3576_v47 = vmax.f32 %v3542_v34, %v3566_v13 }
 0x5d8   : > { %v3594_v44 = vmul.f32 1.442695, %v3582_v35  ;;  %v3616_v61 = vmul.f32 1.442695, %v3605_v10  ;;  %v3618_v14 = vmul.f32 1.442695, %v3606_v32 }
 0x5d9   : > { %5957 = vpow2.f32 %v3592_v27  ;;  %v3583_v7 = vsub.f32 %v7672_v63, %v3575_v25  ;;  %v3584_v20 = vsub.f32 %v7674_v24, %v3576_v47  ;;  %v3607_v56 = vsub.f32 %v7701_v2, %v3575_v25 }
 0x5da   : > { %v3569_v59 = vpop.xlane.xlu0 %3568  ;;  %5959 = vpow2.f32 %v3612_v40  ;;  %v3608_v53 = vsub.f32 %v7705_v33, %v3576_v47  ;;  %v3049_v2 = vcombine.low %v7557_v0, %v7569_v57 }
 0x5db   : > { %5961 = vpow2.f32 %v3614_v58  ;;  %v7733_v19 = vmax.f32 %v3545_v41, %v3569_v59  ;;  %v3596_v26 = vmul.f32 1.442695, %v3583_v7  ;;  %v3598_v11 = vmul.f32 1.442695, %v3584_v20 }
 0x5dc   : > { %5963 = vpow2.f32 %v3594_v44  ;;  %v3620_v62 = vmul.f32 1.442695, %v3607_v56  ;;  %v3622_v12 = vmul.f32 1.442695, %v3608_v53  ;;  %v3057_v1 = vrot.slane %v3049_v2, %v7030_v54 }
 0x5dd   : > { %5965 = vpow2.f32 %v3616_v61  ;;  %v3585_v41 = vsub.f32 %v7681_v16, %v7733_v19  ;;  %v3609_v25 = vsub.f32 %v7709_v6, %v7733_v19  ;;  %v3073_v7 = vrot.slane %v3065_v18, %v7030_v54 }
 0x5de   : > { %v7735_v34 = vpop.eup %5949  ;;  %v2878_v52 = vpop.permute.xlu0 %2877  ;;  %5967 = vpow2.f32 %v3596_v26 }
 0x5df   : > { %v2965_v63 = vcombine.low %v7717_v4, %v2878_v52  ;;  %v2966_v24 = vcombine.high %v7717_v4, %v2878_v52  ;;  %v3626_v23 = vsel %vm3521_vm9, %v7735_v34, 0.0  ;;  %5969 = vpow2.f32 %v3598_v11 }
 0x5e0   : > { %3627 = vadd.xlane.f32.xlu1 %v3626_v23  ;;  %v3600_v33 = vmul.f32 1.442695, %v3585_v41  ;;  %5971 = vpow2.f32 %v3618_v14  ;;  %v3624_v8 = vmul.f32 1.442695, %v3609_v25  ;;  %v3082_v14 = vcombine.high %v3057_v1, %v3073_v7 }
 0x5e1   : > { %v2973_v39 = vrot.slane %v2965_v63, %v7019_v43  ;;  %v2980_v4 = vrot.slane %v2966_v24, %v7019_v43 }
 0x5e2   : > { %v7747_v5 = vpop.eup %5951  ;;  %5973 = vpow2.f32 %v3600_v33 }
 0x5e3   : > { %v7752_v48 = vpop.eup %5953  ;;  %v2981_v22 = vcombine.low %v2957_v21, %v2973_v39  ;;  %v2982_v46 = vcombine.high %v2957_v21, %v2973_v39  ;;  %v3629_v16 = vsel %vm3521_vm9, %v7747_v5, 0.0  ;;  %v2997_v55 = vcombine.low %v2964_v42, %v2980_v4 }
 0x5e4   : > { %v7756_v31 = vpop.eup %5955  ;;  %v2998_v60 = vcombine.high %v2964_v42, %v2980_v4  ;;  %3630 = vadd.xlane.f32.xlu0 %v3629_v16  ;;  %v3650_v27 = vsel %vm1935_vm4, %v7752_v48, 0.0  ;;  %5975 = vpow2.f32 %v3620_v62  ;;  %v3081_v42 = vcombine.low %v3057_v1, %v3073_v7 }
 0x5e5   : > { %v2989_v3 = vrot.slane %v2981_v22, %v7030_v54  ;;  %v2996_v38 = vrot.slane %v2982_v46, %v7030_v54  ;;  %v3632_v15 = vsel %vm3521_vm9, %v7756_v31, 0.0  ;;  %v3005_v30 = vrot.slane %v2997_v55, %v7030_v54 }
 0x5e6   : > { %v3012_v29 = vrot.slane %v2998_v60, %v7030_v54  ;;  %3633 = vadd.xlane.f32.xlu1 %v3632_v15  ;;  %v7768_v13 = vpop.eup %5957  ;;  %5977 = vpow2.f32 %v3622_v12 }
 0x5e7   : > { %v3085_v0 = vcombine.low %v2989_v3, %v2996_v38  ;;  %v5322_v57 = vcombine.high %v2989_v3, %v2996_v38  ;;  %v7774_v47 = vpop.eup %5959  ;;  %v3635_v45 = vsel %vm3521_vm9, %v7768_v13, 0.0  ;;  %5979 = vpow2.f32 %v3624_v8 }
 0x5e8   : > { %v3101_v40 = vcombine.low %v3005_v30, %v3012_v29  ;;  %v5323_v35 = vcombine.high %v3005_v30, %v3012_v29  ;;  %v7780_v10 = vpop.eup %5961  ;;  %3636 = vadd.xlane.f32.xlu0 %v3635_v45  ;;  %v3653_v21 = vsel %vm1935_vm4, %v7774_v47, 0.0 }
 0x5e9   : > { %v3092_v58 = vrot.slane %v3085_v0, %v7019_v43  ;;  %v3100_v49 = vrot.slane %v5322_v57, %v7019_v43  ;;  %v7786_v32 = vpop.eup %5963  ;;  %v3656_v52 = vsel %vm1935_vm4, %v7780_v10, 0.0  ;;  %v2713_v0 = vpop.permute.xlu1 %2712 }
 0x5ea   : > { %v3108_v59 = vrot.slane %v3101_v40, %v7019_v43  ;;  %v3116_v6 = vrot.slane %v5323_v35, %v7019_v43  ;;  %3651 = vadd.xlane.f32.xlu1 %v3650_v27  ;;  %v7794_v11 = vpop.eup %5965  ;;  %v3638_v22 = vsel %vm3521_vm9, %v7786_v32, 0.0 }
 0x5eb   : > { %v3117_v44 = vcombine.low %v3092_v58, %v3100_v49  ;;  %v3118_v20 = vcombine.high %v3092_v58, %v3100_v49  ;;  %v7798_v41 = vpop.eup %5967  ;;  %v3659_v46 = vsel %vm1935_vm4, %v7794_v11, 0.0 }
 0x5ec   : > { %v3133_v61 = vcombine.low %v3108_v59, %v3116_v6  ;;  %v3134_v19 = vcombine.high %v3108_v59, %v3116_v6  ;;  %3654 = vadd.xlane.f32.xlu0 %v3653_v21  ;;  %v7800_v4 = vpop.eup %5969  ;;  %v3641_v15 = vsel %vm3521_vm9, %v7798_v41, 0.0 }
 0x5ed   : > { %v3125_v26 = vrot.slane %v3117_v44, %v7030_v54  ;;  %v3132_v63 = vrot.slane %v3118_v20, %v7030_v54  ;;  %v7811_v33 = vpop.eup %5971  ;;  %v3644_v38 = vsel %vm3521_vm9, %v7800_v4, 0.0 }
 0x5ee   : > { %3657 = vadd.xlane.f32.xlu1 %v3656_v52  ;;  %v3141_v24 = vrot.slane %v3133_v61, %v7030_v54  ;;  %v3148_v23 = vrot.slane %v3134_v19, %v7030_v54  ;;  %v3662_v9 = vsel %vm1935_vm4, %v7811_v33, 0.0 }
 0x5f0   : > { %v3149_v39 = vcombine.low %v3125_v26, %v3141_v24  ;;  %v3150_v56 = vcombine.high %v3125_v26, %v3141_v24  ;;  %v3151_v53 = vcombine.low %v3132_v63, %v3148_v23  ;;  %v3152_v16 = vcombine.high %v3132_v63, %v3148_v23  ;;  %3660 = vadd.xlane.f32.xlu0 %v3659_v46 }
 0x5f2   : > { %3639 = vadd.xlane.f32.xlu1 %v3638_v22  ;;  %v3153_v55 = vpack.c.bf16 %v3149_v39, %v3081_v42  ;;  %v3154_v60 = vpack.c.bf16 %v3150_v56, %v3082_v14  ;;  %v7809_v2 = vpack.c.bf16 %v3151_v53, %v3083_v50  ;;  %v7816_v3 = vpack.c.bf16 %v3152_v16, %v3084_v51  ;;  %v7824_v50 = vpop.eup %5973 }
 0x5f3   : > { %v7826_v30 = vpop.eup %5975  ;;  %v3647_v51 = vsel %vm3521_vm9, %v7824_v50, 0.0 }
 0x5f4   : > { %5576 = vmatpush3.bf16.msra.mxu0 %v3153_v55  ;;  %5582 = vmatpush3.bf16.msra.mxu1 %v3154_v60  ;;  %v7828_v36 = vpop.eup %5977  ;;  %v3665_v18 = vsel %vm1935_vm4, %v7826_v30, 0.0 }
 0x5f5   : > { %5587 = vmatprep.subr.bf16.mxu0 %v8286_v28  ;;  %5593 = vmatprep.subr.bf16.mxu1 %v8286_v28  ;;  %v3668_v29 = vsel %vm1935_vm4, %v7828_v36, 0.0  ;;  %v7838_v62 = vpop.eup %5979 }
 0x5f6   : > { %3645 = vadd.xlane.f32.xlu1 %v3644_v38  ;;  %3642 = vadd.xlane.f32.xlu0 %v3641_v15  ;;  %v3671_v12 = vsel %vm1935_vm4, %v7838_v62, 0.0 }
 0x5fa   : > { %3663 = vadd.xlane.f32.xlu1 %v3662_v9  ;;  %3648 = vadd.xlane.f32.xlu0 %v3647_v51 }
 0x5fe   : > { %3669 = vadd.xlane.f32.xlu1 %v3668_v29  ;;  %3666 = vadd.xlane.f32.xlu0 %v3665_v18 }
 0x602   : > { %3672 = vadd.xlane.f32.xlu0 %v3671_v12 }
 0x60f   : > { %2718 = vrot.lane.b32.xlu1 %v6994_v17, %s6389_s16 }
 0x618   : > { %2715 = vrot.lane.b32.xlu0 %v6994_v17, %s6388_s27  ;;  %s8294_s27 = sld [smem:[#allocation66_spill]] (!%p5378_p9) }
 0x669   : > { %v3628_v57 = vpop.xlane.xlu1 %3627 }
 0x66d   : > { %v3631_v25 = vpop.xlane.xlu0 %3630 }
 0x66f   : > { %v3634_v40 = vpop.xlane.xlu1 %3633 }
 0x671   : > { %v3637_v27 = vpop.xlane.xlu0 %3636 }
 0x673   : > { %v3652_v35 = vpop.xlane.xlu1 %3651 }
 0x674   : > { %v3674_v58 = vadd.f32 %v3652_v35, %v3628_v57 }
 0x675   : > { %v3655_v45 = vpop.xlane.xlu0 %3654 }
 0x676   : > { %v3675_v6 = vadd.f32 %v3655_v45, %v3631_v25  ;;  %5981 = vrcp.f32 %v3674_v58 }
 0x677   : > { %v3658_v49 = vpop.xlane.xlu1 %3657 }
 0x678   : > { %v3676_v59 = vadd.f32 %v3658_v49, %v3634_v40  ;;  %5983 = vrcp.f32 %v3675_v6 }
 0x679   : > { %v3661_v7 = vpop.xlane.xlu0 %3660 }
 0x67a   : > { %5985 = vrcp.f32 %v3676_v59  ;;  %v3677_v44 = vadd.f32 %v3661_v7, %v3637_v27 }
 0x67b   : > { %v3640_v1 = vpop.xlane.xlu1 %3639 }
 0x67c   : > { %5987 = vrcp.f32 %v3677_v44 }
 0x67f   : > { %v3646_v20 = vpop.xlane.xlu1 %3645  ;;  %v3643_v8 = vpop.xlane.xlu0 %3642 }
 0x683   : > { %v3664_v61 = vpop.xlane.xlu1 %3663  ;;  %v3649_v19 = vpop.xlane.xlu0 %3648 }
 0x684   : > { %v3678_v52 = vadd.f32 %v3664_v61, %v3640_v1  ;;  %v7846_v21 = vpop.eup %5981 }
 0x685   : > { %v7848_v24 = vpop.eup %5983  ;;  %v3710_v14 = vmul.f32 %v7846_v21, %v7752_v48 }
 0x686   : > { %5989 = vrcp.f32 %v3678_v52  ;;  %v3711_v56 = vmul.f32 %v7848_v24, %v7774_v47 }
 0x687   : > { %v3670_v26 = vpop.xlane.xlu1 %3669  ;;  %v3667_v63 = vpop.xlane.xlu0 %3666 }
 0x688   : > { %v3680_v23 = vadd.f32 %v3670_v26, %v3646_v20  ;;  %v3679_v42 = vadd.f32 %v3667_v63, %v3643_v8  ;;  %v7850_v39 = vpop.eup %5985  ;;  %v3718_v16 = vpack.c.bf16 %v3711_v56, %v3710_v14 }
 0x689   : > { %v7856_v53 = vpop.eup %5987  ;;  %v3712_v60 = vmul.f32 %v7850_v39, %v7780_v10 }
 0x68a   : > { %5991 = vrcp.f32 %v3680_v23  ;;  %v3713_v38 = vmul.f32 %v7856_v53, %v7794_v11  ;;  %5578 = vmatmul.mubr.msk.bf16.vlgmr.msra.gmra.mxu0 %vm1935_vm4, %v3718_v16 }
 0x68b   : > { %5993 = vrcp.f32 %v3679_v42  ;;  %v2719_v22 = vpop.permute.xlu1 %2718  ;;  %v3673_v46 = vpop.xlane.xlu0 %3672  ;;  %5588 = vmatpush3.bf16.msra.mxu0 %v7809_v2  ;;  %5589 = vmatprep.mubr.msk.bf16.mxu0 %vm6386_vm3, %v8286_v28 }
 0x68c   : > { %v3681_v55 = vadd.f32 %v3673_v46, %v3649_v19  ;;  %v2737_v48 = vcombine.low %v2713_v0, %v2719_v22  ;;  %v2738_v15 = vcombine.high %v2713_v0, %v2719_v22  ;;  %v3719_v47 = vpack.c.bf16 %v3713_v38, %v3712_v60  ;;  %5599 = vmatprep.subr.bf16.mxu0 %v8286_v28 }
 0x68e   : > { %5995 = vrcp.f32 %v3681_v55  ;;  %5584 = vmatmul.mubr.msk.bf16.vlgmr.msra.gmra.mxu1 %vm1935_vm4, %v3719_v47  ;;  %v2745_v11 = vrot.slane %v2737_v48, %v7019_v43  ;;  %v2752_v2 = vrot.slane %v2738_v15, %v7019_v43  ;;  %v3699_v47 = vmul.f32 %v7848_v24, %v7747_v5 }
 0x68f   : > { %v2716_v9 = vpop.permute.xlu0 %2715  ;;  %5594 = vmatpush3.bf16.msra.mxu1 %v7816_v3  ;;  %5595 = vmatprep.mubr.msk.bf16.mxu1 %vm6386_vm3, %v8286_v28 }
 0x690   : > { %v2721_v51 = vcombine.low %v6994_v17, %v2716_v9  ;;  %v2722_v10 = vcombine.high %v6994_v17, %v2716_v9  ;;  %5605 = vmatprep.subr.bf16.mxu1 %v8286_v28  ;;  %v3701_v9 = vmul.f32 %v7856_v53, %v7768_v13 }
 0x692   : > { %v2729_v29 = vrot.slane %v2721_v51, %v7019_v43  ;;  %v2736_v18 = vrot.slane %v2722_v10, %v7019_v43  ;;  %v3698_v51 = vmul.f32 %v7846_v21, %v7735_v34  ;;  %v3700_v10 = vmul.f32 %v7850_v39, %v7756_v31 }
 0x693   : > { %v7878_v25 = vpop.eup %5989 }
 0x694   : > { %v2753_v12 = vcombine.low %v2729_v29, %v2745_v11  ;;  %v2754_v0 = vcombine.high %v2729_v29, %v2745_v11  ;;  %v2769_v17 = vcombine.low %v2736_v18, %v2752_v2  ;;  %v2770_v57 = vcombine.high %v2736_v18, %v2752_v2 }
 0x695   : > { %v3714_v7 = vmul.f32 %v7878_v25, %v7811_v33  ;;  %v3702_v21 = vmul.f32 %v7878_v25, %v7786_v32 }
 0x696   : > { %v2761_v3 = vrot.slane %v2753_v12, %v7030_v54  ;;  %v2768_v40 = vrot.slane %v2754_v0, %v7030_v54  ;;  %v2777_v35 = vrot.slane %v2769_v17, %v7030_v54  ;;  %v2784_v27 = vrot.slane %v2770_v57, %v7030_v54  ;;  %v5831_v17 = vld [vmem:[%s6865_s6 + $0x18] sm:$0xff]  }
 0x697   : > { %v5992_v58 = vpop.eup %5991  ;;  %v3706_v12 = vpack.c.bf16 %v3699_v47, %v3698_v51  ;;  %v3707_v0 = vpack.c.bf16 %v3701_v9, %v3700_v10 }
 0x698   : > { %v5994_v49 = vpop.eup %5993  ;;  %v2789_v45 = vcombine.low %v2761_v3, %v2768_v40  ;;  %v5318_v59 = vcombine.high %v2761_v3, %v2768_v40  ;;  %v2805_v6 = vcombine.low %v2777_v35, %v2784_v27  ;;  %v5319_v1 = vcombine.high %v2777_v35, %v2784_v27 }
 0x699   : > { %v3715_v44 = vmul.f32 %v5994_v49, %v7826_v30  ;;  %v3716_v63 = vmul.f32 %v5992_v58, %v7828_v36  ;;  %v3703_v31 = vmul.f32 %v5994_v49, %v7798_v41  ;;  %v3704_v24 = vmul.f32 %v5992_v58, %v7800_v4  ;;  %v5832_v41 = vld [vmem:[%s6865_s6 + $0x10] sm:$0xff]  }
 0x69a   : > { %v2796_v20 = vrot.slane %v2789_v45, %v7019_v43  ;;  %v2804_v8 = vrot.slane %v5318_v59, %v7019_v43  ;;  %v2812_v61 = vrot.slane %v2805_v6, %v7019_v43  ;;  %v2820_v19 = vrot.slane %v5319_v1, %v7019_v43 }
 0x69b   : > { %v5996_v52 = vpop.eup %5995  ;;  %v3720_v26 = vpack.c.bf16 %v3715_v44, %v3714_v7  ;;  %v3708_v39 = vpack.c.bf16 %v3703_v31, %v3702_v21 }
 0x69c   : > { %v3717_v23 = vmul.f32 %v5996_v52, %v7838_v62  ;;  %v2821_v42 = vcombine.low %v2796_v20, %v2804_v8  ;;  %v2837_v14 = vcombine.low %v2812_v61, %v2820_v19  ;;  %v2822_v56 = vcombine.high %v2796_v20, %v2804_v8 }
 0x69d   : > { %5590 = vmatmul.mubr.msk.bf16.vlgmr.msra.gmra.mxu0 %vm1935_vm4, %v3720_v26  ;;  %v2838_v33 = vcombine.high %v2812_v61, %v2820_v19  ;;  %v3705_v13 = vmul.f32 %v5996_v52, %v7824_v50 }
 0x69e   : > { %v3721_v30 = vpack.c.bf16 %v3717_v23, %v3716_v63  ;;  %v2829_v22 = vrot.slane %v2821_v42, %v7030_v54  ;;  %v2845_v46 = vrot.slane %v2837_v14, %v7030_v54  ;;  %5601 = vmatprep.mubr.msk.bf16.mxu0 %vm6386_vm3, %v8286_v28  ;;  %v2836_v16 = vrot.slane %v2822_v56, %v7030_v54 }
 0x69f   : > { %v2852_v36 = vrot.slane %v2838_v33, %v7030_v54  ;;  %v3709_v53 = vpack.c.bf16 %v3705_v13, %v3704_v24 }
 0x6a0   : > { %5596 = vmatmul.mubr.msk.bf16.vlgmr.msra.gmra.mxu1 %vm1935_vm4, %v3721_v30  ;;  %v2853_v62 = vcombine.low %v2829_v22, %v2845_v46  ;;  %v2854_v55 = vcombine.high %v2829_v22, %v2845_v46 }
 0x6a1   : > { %5607 = vmatprep.mubr.msk.bf16.mxu1 %vm6386_vm3, %v8286_v28  ;;  %v2855_v60 = vcombine.low %v2836_v16, %v2852_v36  ;;  %v2856_v38 = vcombine.high %v2836_v16, %v2852_v36 }
 0x6a2   : > { %v2857_v48 = vpack.c.bf16 %v2853_v62, %v2853_v62  ;;  %v2858_v15 = vpack.c.bf16 %v2854_v55, %v2854_v55 }
 0x6a3   : > { %v2859_v29 = vpack.c.bf16 %v2855_v60, %v2855_v60  ;;  %v2860_v18 = vpack.c.bf16 %v2856_v38, %v2856_v38 }
 0x6a4   : > { %v3903_v11 = vsel %vm3901_vm10, %v2857_v48, 0  ;;  %v3950_v2 = vsel %vm3901_vm10, %v2858_v15, 0 }
 0x6a5   : > { %5600 = vmatpush3.bf16.msra.mxu0 %v3903_v11  ;;  %5606 = vmatpush3.bf16.msra.mxu1 %v3950_v2  ;;  %v3997_v34 = vsel %vm3901_vm10, %v2859_v29, 0  ;;  %v4044_v5 = vsel %vm3901_vm10, %v2860_v18, 0 }
 0x6a6   : > { %5611 = vmatprep.subr.bf16.mxu0 %v8286_v28  ;;  %5617 = vmatprep.subr.bf16.mxu1 %v8286_v28 }
 0x6a8   : > { %5602 = vmatmul.mubr.msk.bf16.vlgmr.msra.gmra.mxu0 %vm3521_vm9, %v3706_v12  ;;  %5608 = vmatmul.mubr.msk.bf16.vlgmr.msra.gmra.mxu1 %vm3521_vm9, %v3707_v0 }
 0x6a9   : > { %5612 = vmatpush3.bf16.msra.mxu0 %v3997_v34  ;;  %5618 = vmatpush3.bf16.msra.mxu1 %v4044_v5 }
 0x6aa   : > { %5613 = vmatprep.mubr.msk.bf16.mxu0 %vm6386_vm3, %v8286_v28  ;;  %5619 = vmatprep.mubr.msk.bf16.mxu1 %vm6386_vm3, %v8286_v28 }
 0x6ab   : > { %5623 = vmatprep.subr.bf16.mxu0 %v8286_v28 }
 0x6b0   : > { %5614 = vmatmul.mubr.msk.bf16.vlgmr.msra.gmra.mxu0 %vm3521_vm9, %v3708_v39  ;;  %5620 = vmatmul.mubr.msk.bf16.vlgmr.msra.gmra.mxu1 %vm3521_vm9, %v3709_v53 }
 0x6b1   : > { %5631 = vmatprep.mubr.msk.bf16.mxu0 %vm6386_vm3, %v8286_v28  ;;  %5624 = vmatpush3.bf16.msra.mxu0 %v5831_v17  ;;  %vm4387_vm3 = vcmask 392192  }
 0x6b2   : > { %5625 = vmatprep.subr.bf16.mxu0 %v8286_v28 }
 0x6b5   : > { %5626 = vmatpush3.bf16.msra.mxu0 %v5832_v41 }
 0x6b6   : > { %5627 = vmatprep.subr.bf16.mxu0 %v8286_v28 }
 0x74a   : > { %v3759_v32 = vpop.f32.mrf.mxu0 }
 0x74c   : > { %v5579_v50 = vpop.f32.mrf.mxu0 }
 0x74e   : > { %v3803_v4 = vpop.f32.mrf.mxu1  ;;  %v3762_v57 = vpop.f32.mrf.mxu0 }
 0x750   : > { %v5585_v25 = vpop.f32.mrf.mxu1  ;;  %v5580_v3 = vpop.f32.mrf.mxu0 }
 0x752   : > { %v3806_v40 = vpop.f32.mrf.mxu1 }
 0x754   : > { %v5586_v35 = vpop.f32.mrf.mxu1 }
 0x75d   : > { %v3847_v27 = vpop.f32.mrf.mxu0 }
 0x75f   : > { %v5591_v58 = vpop.f32.mrf.mxu0 }
 0x760   : > { %v3891_v49 = vpop.f32.mrf.mxu1 }
 0x761   : > { %v3850_v45 = vpop.f32.mrf.mxu0 }
 0x762   : > { %v5597_v59 = vpop.f32.mrf.mxu1 }
 0x763   : > { %v5592_v6 = vpop.f32.mrf.mxu0 }
 0x764   : > { %v3894_v1 = vpop.f32.mrf.mxu1 }
 0x766   : > { %v5598_v7 = vpop.f32.mrf.mxu1 }
 0x768   : > { %v3939_v44 = vpop.f32.mrf.mxu0  ;;  %v3986_v20 = vpop.f32.mrf.mxu1 }
 0x769   : > { %v3940_v14 = vadd.f32 %v3939_v44, %v3759_v32  ;;  %v3987_v56 = vadd.f32 %v3986_v20, %v3803_v4 }
 0x76a   : > { %v5603_v8 = vpop.f32.mrf.mxu0  ;;  %v5609_v61 = vpop.f32.mrf.mxu1 }
 0x76c   : > { %v3942_v19 = vpop.f32.mrf.mxu0  ;;  %v3989_v52 = vpop.f32.mrf.mxu1 }
 0x76d   : > { %v3943_v51 = vadd.f32 %v3942_v19, %v3762_v57  ;;  %v3990_v10 = vadd.f32 %v3989_v52, %v3806_v40 }
 0x76e   : > { %v5604_v26 = vpop.f32.mrf.mxu0  ;;  %v5610_v63 = vpop.f32.mrf.mxu1 }
 0x770   : > { %v4033_v23 = vpop.f32.mrf.mxu0  ;;  %v4080_v42 = vpop.f32.mrf.mxu1 }
 0x771   : > { %v4034_v33 = vadd.f32 %v4033_v23, %v3847_v27  ;;  %v4081_v30 = vadd.f32 %v4080_v42, %v3891_v49 }
 0x772   : > { %v5615_v22 = vpop.f32.mrf.mxu0  ;;  %v5621_v46 = vpop.f32.mrf.mxu1 }
 0x773   : > { %v4087_v16 = vcombine.low %v3940_v14, %v4034_v33  ;;  %v4088_v36 = vcombine.high %v3940_v14, %v4034_v33  ;;  %v4103_v62 = vcombine.low %v3987_v56, %v4081_v30  ;;  %v4104_v55 = vcombine.high %v3987_v56, %v4081_v30  ;;  %v5833_v22 = vld [vmem:[%s6865_s6 + $0x8] sm:$0xff]  }
 0x774   : > { %v4036_v60 = vpop.f32.mrf.mxu0  ;;  %v4083_v38 = vpop.f32.mrf.mxu1  ;;  %5628 = vmatpush3.bf16.msra.mxu0 %v5833_v22 }
 0x775   : > { %v4095_v48 = vrot.slane %v4087_v16, %v7019_v43  ;;  %v4102_v15 = vrot.slane %v4088_v36, %v7019_v43  ;;  %v4111_v47 = vrot.slane %v4103_v62, %v7019_v43  ;;  %v4118_v9 = vrot.slane %v4104_v55, %v7019_v43  ;;  %5629 = vmatprep.subr.bf16.mxu0 %v8286_v28 }
 0x776   : > { %v4037_v11 = vadd.f32 %v4036_v60, %v3850_v45  ;;  %v4084_v2 = vadd.f32 %v4083_v38, %v3894_v1  ;;  %v5616_v29 = vpop.f32.mrf.mxu0  ;;  %v5622_v18 = vpop.f32.mrf.mxu1 }
 0x777   : > { %v4119_v12 = vcombine.low %v4095_v48, %v4111_v47  ;;  %v4120_v0 = vcombine.high %v4095_v48, %v4111_v47  ;;  %v4135_v34 = vcombine.low %v4102_v15, %v4118_v9  ;;  %v4136_v5 = vcombine.high %v4102_v15, %v4118_v9 }
 0x778   : > { %v4155_v31 = vcombine.low %v3943_v51, %v4037_v11  ;;  %v4156_v13 = vcombine.high %v3943_v51, %v4037_v11  ;;  %v4171_v21 = vcombine.low %v3990_v10, %v4084_v2  ;;  %v4172_v24 = vcombine.high %v3990_v10, %v4084_v2  ;;  %v5834_v2 = vld [vmem:[%s6865_s6] sm:$0xff]  }
 0x779   : > { %v4127_v39 = vrot.slane %v4119_v12, %v7030_v54  ;;  %v4134_v53 = vrot.slane %v4120_v0, %v7030_v54  ;;  %v4143_v17 = vrot.slane %v4135_v34, %v7030_v54  ;;  %v4150_v41 = vrot.slane %v4136_v5, %v7030_v54  ;;  %5630 = vmatpush3.bf16.msra.mxu0 %v5834_v2 }
 0x77a   : > { %v4163_v32 = vrot.slane %v4155_v31, %v7019_v43  ;;  %v4170_v50 = vrot.slane %v4156_v13, %v7019_v43  ;;  %v4179_v4 = vrot.slane %v4171_v21, %v7019_v43  ;;  %v4186_v57 = vrot.slane %v4172_v24, %v7019_v43 }
 0x77b   : > { %v4223_v25 = vcombine.low %v4127_v39, %v4134_v53  ;;  %v5340_v3 = vcombine.high %v4127_v39, %v4134_v53  ;;  %v4239_v40 = vcombine.low %v4143_v17, %v4150_v41  ;;  %v5341_v35 = vcombine.high %v4143_v17, %v4150_v41 }
 0x77c   : > { %v4187_v27 = vcombine.low %v4163_v32, %v4179_v4  ;;  %v4188_v58 = vcombine.high %v4163_v32, %v4179_v4  ;;  %v4203_v49 = vcombine.low %v4170_v50, %v4186_v57  ;;  %v4204_v45 = vcombine.high %v4170_v50, %v4186_v57 }
 0x77d   : > { %v4230_v59 = vrot.slane %v4223_v25, %v7019_v43  ;;  %v4238_v6 = vrot.slane %v5340_v3, %v7019_v43  ;;  %v4246_v1 = vrot.slane %v4239_v40, %v7019_v43  ;;  %v4254_v7 = vrot.slane %v5341_v35, %v7019_v43 }
 0x77e   : > { %v4195_v44 = vrot.slane %v4187_v27, %v7030_v54  ;;  %v4202_v20 = vrot.slane %v4188_v58, %v7030_v54  ;;  %v4211_v8 = vrot.slane %v4203_v49, %v7030_v54  ;;  %v4218_v61 = vrot.slane %v4204_v45, %v7030_v54  ;;  %v5344_v49 = vld [vmem:[%s1179_s3] ss:$0 sm:$0xff] }
 0x77f   : > { %v4256_v19 = vcombine.high %v4230_v59, %v4238_v6  ;;  %v4272_v52 = vcombine.high %v4246_v1, %v4254_v7  ;;  %v4255_v26 = vcombine.low %v4230_v59, %v4238_v6  ;;  %v4271_v63 = vcombine.low %v4246_v1, %v4254_v7  ;;  %v6009_v1 = vld [vmem:[#allocation2] sm:$0xff] }
 0x780   : > { %v4291_v23 = vcombine.low %v4195_v44, %v4202_v20  ;;  %v5342_v42 = vcombine.high %v4195_v44, %v4202_v20  ;;  %v4307_v14 = vcombine.low %v4211_v8, %v4218_v61  ;;  %v5343_v56 = vcombine.high %v4211_v8, %v4218_v61 }
 0x781   : > { %v4263_v33 = vrot.slane %v4255_v26, %v7030_v54  ;;  %v4279_v30 = vrot.slane %v4271_v63, %v7030_v54  ;;  %v4270_v55 = vrot.slane %v4256_v19, %v7030_v54  ;;  %v4286_v60 = vrot.slane %v4272_v52, %v7030_v54  ;;  %v6010_v19 = vld [vmem:[#allocation2 + $0x8] sm:$0xff] }
 0x782   : > { %v4298_v46 = vrot.slane %v4291_v23, %v7019_v43  ;;  %v4306_v16 = vrot.slane %v5342_v42, %v7019_v43  ;;  %v4314_v36 = vrot.slane %v4307_v14, %v7019_v43  ;;  %v4322_v62 = vrot.slane %v5343_v56, %v7019_v43 }
 0x783   : > { %v4287_v38 = vcombine.low %v4263_v33, %v4279_v30  ;;  %v4289_v29 = vcombine.low %v4270_v55, %v4286_v60  ;;  %v4288_v12 = vcombine.high %v4263_v33, %v4279_v30  ;;  %v4290_v28 = vcombine.high %v4270_v55, %v4286_v60  ;;  %v5840_v55 = vld [vmem:[%s6883_s22 + $0x24] ss:$8 sps:$4 sm:$0xff]   ;;  %v5838_v60 = vld [vmem:[%s6883_s22 + $0x20] ss:$8 sps:$4 sm:$0xff]  }
 0x784   : > { %v4324_v48 = vcombine.high %v4298_v46, %v4306_v16  ;;  %v4340_v15 = vcombine.high %v4314_v36, %v4322_v62  ;;  %v4323_v47 = vcombine.low %v4298_v46, %v4306_v16  ;;  %v4339_v9 = vcombine.low %v4314_v36, %v4322_v62  ;;  %v5835_v36 = vld [vmem:[%s6883_s22 + $0x30] ss:$8 sps:$4 sm:$0xff]   ;;  %v5837_v62 = vld [vmem:[%s6883_s22 + $0x34] ss:$8 sps:$4 sm:$0xff]  }
 0x785   : > { %4592 = vmatprep.subr.bf16.mxu1 %v5837_v62 }
 0x786   : > { %v4338_v51 = vrot.slane %v4324_v48, %v7030_v54  ;;  %v4354_v10 = vrot.slane %v4340_v15, %v7030_v54  ;;  %v4331_v11 = vrot.slane %v4323_v47, %v7030_v54  ;;  %v4347_v43 = vrot.slane %v4339_v9, %v7030_v54  ;;  %4593 = vmatpush1.bf16.msra.mxu1 %v5835_v36  ;;  %v5843_v48 = vld [vmem:[%s6883_s22 + $0x14] ss:$8 sps:$4 sm:$0xff]   ;;  %v5841_v15 = vld [vmem:[%s6883_s22 + $0x10] ss:$8 sps:$4 sm:$0xff]   ;;  %v5846_v47 = vld [vmem:[%s6883_s22 + $0x4] ss:$8 sps:$4 sm:$0xff]  }
 0x787   : > { %4594 = vmatprep.subr.bf16.mxu1 %v5840_v55  ;;  %v5844_v9 = vld [vmem:[%s6883_s22] ss:$8 sps:$4 sm:$0xff]   ;;  %s8289_s22 = scalar_lea.vmem %s8288_s28, %s6832_s1 }
 0x788   : > { %v4357_v18 = vcombine.low %v4338_v51, %v4354_v10  ;;  %v4356_v0 = vcombine.high %v4331_v11, %v4347_v43  ;;  %v4355_v34 = vcombine.low %v4331_v11, %v4347_v43  ;;  %v4358_v13 = vcombine.high %v4338_v51, %v4354_v10 }
 0x78a   : > { %v5805_v5 = vpack.i.bf16 %v4357_v18, %v4289_v29  ;;  %v5800_v31 = vpack.i.bf16 %v4356_v0, %v4288_v12  ;;  %v5810_v21 = vpack.i.bf16 %v4358_v13, %v4290_v28  ;;  %4595 = vmatpush1.bf16.msra.mxu1 %v5838_v60  ;;  %v5350_v0 = vld [vmem:[%s8289_s22] ss:$0 sm:$0xff] }
 0x78b   : > { %4596 = vmatprep.subr.bf16.mxu1 %v5843_v48  ;;  %v5351_v13 = vld [vmem:[%s8291_s9] ss:$0 sm:$0xff] }
 0x78c   : > { %5806 = vrot.lane.b32.xlu1 %v5805_v5, %s6392_s15  ;;  %5801 = vrot.lane.b32.xlu0 %v5800_v31, %s6393_s11 }
 0x78e   : > { %4597 = vmatpush1.bf16.msra.mxu1 %v5841_v15 }
 0x78f   : > { %4598 = vmatprep.subr.bf16.mxu1 %v5846_v47 }
 0x790   : > { %5811 = vrot.lane.b32.xlu0 %v5810_v21, %s6394_s20 }
 0x792   : > { %4599 = vmatpush1.bf16.msra.mxu1 %v5844_v9 }
 0x7fe   : > { %v5807_v24 = vpop.permute.xlu1 %5806  ;;  %v5802_v54 = vpop.permute.xlu0 %5801 }
 0x7ff   : > { %v5804_v39 = vunpack.i.h.bf16 %v5802_v54  ;;  %v5803_v53 = vunpack.i.l.bf16 %v5802_v54  ;;  %v5809_v17 = vunpack.i.h.bf16 %v5807_v24  ;;  %v5808_v41 = vunpack.i.l.bf16 %v5807_v24 }
 0x801   : > { %v4383_v32 = vsel %vm1935_vm4, %v4287_v38, %v5803_v53  ;;  %v4384_v50 = vsel %vm1935_vm4, %v4355_v34, %v5804_v39  ;;  %v6395_v38 = vmov 0   ;;  %v5847_v39 = vld [vmem:[%s6895_s19 + $0x78] sm:$0xff]  }
 0x802   : > { %v5812_v4 = vpop.permute.xlu0 %5811  ;;  %v4385_v3 = vsel %vm1220_vm2, %v4383_v32, %v5808_v41  ;;  %v4386_v40 = vsel %vm1220_vm2, %v4384_v50, %v5809_v17  ;;  %4616 = vmatprep.mubr.bf16.mxu1 %v6395_v38  ;;  %v5848_v53 = vld [vmem:[%s6895_s19 + $0x38] sm:$0xff]   ;;  %5453 = vmatprep.subr.bf16.mxu0 %v5847_v39  ;;  %v5849_v17 = vld [vmem:[%s6895_s19 + $0x70] sm:$0xff]   ;;  %v5851_v32 = vld [vmem:[%s6895_s19 + $0x68] sm:$0xff]  }
 0x803   : > { %v5814_v57 = vunpack.i.h.bf16 %v5812_v4  ;;  %v5813_v25 = vunpack.i.l.bf16 %v5812_v4  ;;  %v5850_v41 = vld [vmem:[%s6895_s19 + $0x30] sm:$0xff]   ;;  %v5852_v50 = vld [vmem:[%s6895_s19 + $0x28] sm:$0xff]   ;;  %v5853_v4 = vld [vmem:[%s6895_s19 + $0x60] sm:$0xff]  }
 0x805   : > { %v4388_v35 = vsel %vm4387_vm3, %v4385_v3, %v5813_v25  ;;  %v4389_v27 = vsel %vm4387_vm3, %v4386_v40, %v5814_v57  ;;  %v5854_v57 = vld [vmem:[%s6895_s19 + $0x20] sm:$0xff]   ;;  %v5855_v25 = vld [vmem:[%s6895_s19 + $0x58] sm:$0xff]   ;;  %v5857_v40 = vld [vmem:[%s6895_s19 + $0x50] sm:$0xff]  }
 0x806   : > { %v4390_v58 = vpack.c.bf16 %v4389_v27, %v4388_v35  ;;  %v5856_v3 = vld [vmem:[%s6895_s19 + $0x18] sm:$0xff]   ;;  %v5858_v35 = vld [vmem:[%s6895_s19 + $0x10] sm:$0xff]   ;;  %v5859_v27 = vld [vmem:[%s6895_s19 + $0x48] sm:$0xff]  }
 0x808   : > { %5632 = vmatmul.mubr.msk.bf16.vlgmr.msra.gmra.mxu0 %vm1252_vm1, %v4390_v58  ;;  %v5860_v58 = vld [vmem:[%s6895_s19 + $0x8] sm:$0xff]  }
 0x809   : > { %5454 = vmatpush3.bf16.msra.mxu0 %v5848_v53 }
 0x80a   : > { %5455 = vmatprep.subr.bf16.mxu0 %v5849_v17 }
 0x80d   : > { %5456 = vmatpush3.bf16.msra.mxu0 %v5850_v41 }
 0x80e   : > { %5457 = vmatprep.subr.bf16.mxu0 %v5851_v32 }
 0x811   : > { %5458 = vmatpush3.bf16.msra.mxu0 %v5852_v50 }
 0x812   : > { %5459 = vmatprep.subr.bf16.mxu0 %v5853_v4 }
 0x815   : > { %5460 = vmatpush3.bf16.msra.mxu0 %v5854_v57 }
 0x816   : > { %5461 = vmatprep.subr.bf16.mxu0 %v5855_v25 }
 0x819   : > { %5462 = vmatpush3.bf16.msra.mxu0 %v5856_v3 }
 0x81a   : > { %5463 = vmatprep.subr.bf16.mxu0 %v5857_v40 }
 0x81d   : > { %5464 = vmatpush3.bf16.msra.mxu0 %v5858_v35 }
 0x81e   : > { %5465 = vmatprep.subr.bf16.mxu0 %v5859_v27 }
 0x821   : > { %5466 = vmatpush3.bf16.msra.mxu0 %v5860_v58 }
 0x8c8   : > { %v4467_v45 = vpop.f32.mrf.mxu0 }
 0x8c9   : > { %v4468_v59 = vadd.f32 %v5344_v49, %v4467_v45  ;;  %v5862_v45 = vld [vmem:[%s6895_s19] sm:$0xff]  }
 0x8ca   : > { %v5633_v6 = vpop.f32.mrf.mxu0 }
 0x8cb   : > { %v7982_v7 = vadd.f32 %v6009_v1, %v4468_v59  ;;  %v4533_v59 = vsub.s32 0, %v7016_v37  ;;  %v4529_v6 = vld [vmem:[%s6889_s13] sm:$0x3]  ;;  %v4537_v1 = vsub.s32 1, %v7016_v37 }
 0x8cc   : > { %v4470_v44 = vpop.f32.mrf.mxu0 }
 0x8cd   : > { %v4471_v20 = vadd.f32 %v5344_v49, %v4470_v44  ;;  %v4478_v8 = vsel %vm1252_vm1, %v7982_v7, 0.0  ;;  %v5861_v49 = vld [vmem:[%s6895_s19 + $0x40] sm:$0xff]   ;;  %v4534_v44 = vrot.slane %v4529_v6, %v4533_v59 }
 0x8ce   : > { %4479 = vadd.xlane.f32.xlu1 %v4478_v8  ;;  %v5634_v61 = vpop.f32.mrf.mxu0  ;;  %5467 = vmatprep.subr.bf16.mxu0 %v5861_v49 }
 0x8cf   : > { %v7986_v52 = vadd.f32 %v6010_v19, %v4471_v20  ;;  %5468 = vmatpush3.bf16.msra.mxu0 %v5862_v45  ;;  %v4538_v20 = vrot.slane %v4529_v6, %v4537_v1 }
 0x8d1   : > { %v4481_v26 = vsel %vm1252_vm1, %v7986_v52, 0.0 }
 0x8d2   : > { %4482 = vadd.xlane.f32.xlu0 %v4481_v26 }
 0x957   : > { %v4480_v63 = vpop.xlane.xlu1 %4479 }
 0x958   : > { %v4484_v23 = vmul.f32 0.015625, %v4480_v63 }
 0x95a   : > { %v4486_v42 = vsub.f32 %v7982_v7, %v4484_v23 }
 0x95b   : > { %v4483_v14 = vpop.xlane.xlu0 %4482 }
 0x95c   : > { %v4485_v56 = vmul.f32 0.015625, %v4483_v14  ;;  %v4488_v33 = vmul.f32 %v4486_v42, %v4486_v42 }
 0x95e   : > { %v4487_v30 = vsub.f32 %v7986_v52, %v4485_v56  ;;  %v4490_v22 = vsel %vm1252_vm1, %v4488_v33, 0.0 }
 0x95f   : > { %4491 = vadd.xlane.f32.xlu0 %v4490_v22 }
 0x960   : > { %v4489_v46 = vmul.f32 %v4487_v30, %v4487_v30 }
 0x962   : > { %v4493_v16 = vsel %vm1252_vm1, %v4489_v46, 0.0 }
 0x963   : > { %4494 = vadd.xlane.f32.xlu0 %v4493_v16 }
 0x9e8   : > { %v4492_v51 = vpop.xlane.xlu0 %4491 }
 0x9e9   : > { %v4496_v10 = vmul.f32 0.015625, %v4492_v51 }
 0x9eb   : > { %v4498_v11 = vadd.f32 1e-05, %v4496_v10 }
 0x9ec   : > { %v4495_v43 = vpop.xlane.xlu0 %4494 }
 0x9ed   : > { %5997 = vrsqrt.f32 %v4498_v11  ;;  %v4497_v2 = vmul.f32 0.015625, %v4495_v43 }
 0x9ef   : > { %v4499_v29 = vadd.f32 1e-05, %v4497_v2 }
 0x9f1   : > { %5999 = vrsqrt.f32 %v4499_v29 }
 0x9fa   : > { %v5998_v18 = vpop.eup %5997 }
 0x9fb   : > { %v4502_v12 = vmul.f32 %v5998_v18, %v4486_v42 }
 0x9fd   : > { %v4510_v31 = vmul.f32 %v5350_v0, %v4502_v12  ;;  %v5361_v12 = vld [vmem:[%s1202_s8] ss:$0 sm:$0xff] }
 0x9fe   : > { %v6000_v34 = vpop.eup %5999 }
 0x9ff   : > { %v4503_v5 = vmul.f32 %v6000_v34, %v4487_v30  ;;  %v4518_v21 = vadd.f32 %v5351_v13, %v4510_v31 }
 0xa01   : > { %v4511_v28 = vmul.f32 %v5350_v0, %v4503_v5 }
 0xa03   : > { %v4519_v24 = vadd.f32 %v5351_v13, %v4511_v28 }
 0xa05   : > { %v4520_v54 = vpack.c.bf16 %v4519_v24, %v4518_v21 }
 0xa07   : > { %5360 = vmatmul.mubr.msk.bf16.vlgmr.msra.gmra.mxu1 %vm1252_vm1, %v4520_v54 }
 0xac7   : > { %v4618_v8 = vpop.f32.mrf.mxu1 }
 0xac8   : > { %v4619_v61 = vadd.f32 %v4618_v8, %v4534_v44 }
 0xac9   : > { %v4620_v19 = vpop.f32.mrf.mxu1 }
 0xaca   : > { %v4621_v26 = vadd.f32 %v4620_v19, %v4538_v20  ;;  %v4631_v63 = vmul.f32 0.70710677, %v4619_v61  ;;  %v4627_v9 = vmul.f32 0.5, %v4619_v61 }
 0xacb   : > { %v4622_v23 = vpop.f32.mrf.mxu1 }
 0xacc   : > { %v4632_v42 = vmul.f32 0.70710677, %v4621_v26  ;;  %v4623_v14 = vadd.f32 %v4622_v23, %v4534_v44  ;;  %v4628_v48 = vmul.f32 0.5, %v4621_v26 }
 0xacd   : > { %v4624_v56 = vpop.f32.mrf.mxu1 }
 0xace   : > { %6001 = verf.f32 %v4632_v42  ;;  %v4633_v33 = vmul.f32 0.70710677, %v4623_v14  ;;  %v4625_v30 = vadd.f32 %v4624_v56, %v4538_v20  ;;  %v4629_v38 = vmul.f32 0.5, %v4623_v14 }
 0xacf   : > { %6003 = verf.f32 %v4631_v63 }
 0xad0   : > { %6005 = verf.f32 %v4633_v33  ;;  %v4634_v22 = vmul.f32 0.70710677, %v4625_v30  ;;  %v4630_v15 = vmul.f32 0.5, %v4625_v30 }
 0xad2   : > { %6007 = verf.f32 %v4634_v22 }
 0xadb   : > { %v6002_v46 = vpop.eup %6001 }
 0xadc   : > { %v6004_v37 = vpop.eup %6003  ;;  %v4640_v36 = vadd.f32 1.0, %v6002_v46 }
 0xadd   : > { %v6006_v16 = vpop.eup %6005  ;;  %v4639_v60 = vadd.f32 1.0, %v6004_v37 }
 0xade   : > { %v4641_v62 = vadd.f32 1.0, %v6006_v16  ;;  %v4644_v10 = vmul.f32 %v4640_v36, %v4628_v48 }
 0xadf   : > { %v6008_v55 = vpop.eup %6007  ;;  %v4643_v43 = vmul.f32 %v4639_v60, %v4627_v9 }
 0xae0   : > { %v4642_v47 = vadd.f32 1.0, %v6008_v55  ;;  %v4645_v51 = vmul.f32 %v4641_v62, %v4629_v38 }
 0xae2   : > { %v4646_v11 = vmul.f32 %v4642_v47, %v4630_v15  ;;  %v4647_v29 = vpack.c.bf16 %v4645_v51, %v4643_v43 }
 0xae4   : > { %v4648_v2 = vpack.c.bf16 %v4646_v11, %v4644_v10 }
 0xae6   : > { %4816 = vmatprep.mubr.bf16.mxu0 %v4648_v2 }
 0xae7   : > { %4817 = vmatmul.mubr.bf16.vlgmr.msra.gmra.mxu0 %v4647_v29 }
 0xba7   : > { %v5469_v18 = vpop.f32.mrf.mxu0 }
 0xba9   : > { %v5470_v0 = vpop.f32.mrf.mxu0 }
 0xbaa   : > { %v5471_v34 = vadd.f32 %v5470_v0, %v5469_v18 }
 0xbab   : > { %v5472_v5 = vpop.f32.mrf.mxu0 }
 0xbac   : > { %v4819_v31 = vadd.f32 %v5471_v34, %v5361_v12 }
 0xbad   : > { %v5473_v13 = vpop.f32.mrf.mxu0 }
 0xbae   : > { %v4825_v28 = vadd.f32 %v4819_v31, %v7982_v7  ;;  %v5474_v21 = vadd.f32 %v5473_v13, %v5472_v5 }
 0xbb0   : > { %4827 = vst.msk [vmem:[#allocation2] sm:$0xff] %vm1252_vm1, %v4825_v28  ;;  %v4822_v24 = vadd.f32 %v5474_v21, %v5361_v12  ;;  %4832 = sbr.rel (%p5378_p9) target bundleno = 3310 (0xcee), region = 156 }
 0xbb2   : > { %v4826_v54 = vadd.f32 %v4822_v24, %v7986_v52 }
 0xbb4   : > { %4828 = vst.msk [vmem:[#allocation2 + $0x8] sm:$0xff] %vm1252_vm1, %v4826_v54 }
 0xbb5   : > { %v4835_v39 = vsel %vm1252_vm1, %v4825_v28, 0.0  ;;  %v4838_v53 = vsel %vm1252_vm1, %v4826_v54, 0.0  ;;  %v5379_v6 = vld [vmem:[%s8294_s27] ss:$0 sm:$0xff] }
 0xbb6   : > { %4836 = vadd.xlane.f32.xlu0 %v4835_v39  ;;  %v5380_v44 = vld [vmem:[%s8295_s2] ss:$0 sm:$0xff] }
 0xbba   : > { %4839 = vadd.xlane.f32.xlu0 %v4838_v53 }
 0xc3f   : > { %v4837_v17 = vpop.xlane.xlu0 %4836 }
 0xc40   : > { %v4841_v41 = vmul.f32 0.015625, %v4837_v17 }
 0xc42   : > { %v4843_v7 = vsub.f32 %v4825_v28, %v4841_v41 }
 0xc43   : > { %v4840_v32 = vpop.xlane.xlu0 %4839 }
 0xc44   : > { %v4842_v50 = vmul.f32 0.015625, %v4840_v32  ;;  %v4845_v4 = vmul.f32 %v4843_v7, %v4843_v7 }
 0xc46   : > { %v4844_v57 = vsub.f32 %v4826_v54, %v4842_v50  ;;  %v4847_v52 = vsel %vm1252_vm1, %v4845_v4, 0.0 }
 0xc47   : > { %4848 = vadd.xlane.f32.xlu1 %v4847_v52 }
 0xc48   : > { %v4846_v25 = vmul.f32 %v4844_v57, %v4844_v57 }
 0xc4a   : > { %v4850_v3 = vsel %vm1252_vm1, %v4846_v25, 0.0 }
 0xc4b   : > { %4851 = vadd.xlane.f32.xlu1 %v4850_v3 }
 0xcd0   : > { %v4849_v40 = vpop.xlane.xlu1 %4848 }
 0xcd1   : > { %v4853_v35 = vmul.f32 0.015625, %v4849_v40 }
 0xcd3   : > { %v4855_v27 = vadd.f32 1e-05, %v4853_v35 }
 0xcd4   : > { %v4852_v58 = vpop.xlane.xlu1 %4851 }
 0xcd5   : > { %6011 = vrsqrt.f32 %v4855_v27  ;;  %v4854_v49 = vmul.f32 0.015625, %v4852_v58 }
 0xcd7   : > { %v4856_v45 = vadd.f32 1e-05, %v4854_v49 }
 0xcd9   : > { %6013 = vrsqrt.f32 %v4856_v45 }
 0xce2   : > { %v6012_v59 = vpop.eup %6011 }
 0xce3   : > { %v4859_v1 = vmul.f32 %v6012_v59, %v4843_v7 }
 0xce5   : > { %v4867_v20 = vmul.f32 %v5379_v6, %v4859_v1 }
 0xce6   : > { %v6014_v8 = vpop.eup %6013 }
 0xce7   : > { %v4875_v61 = vadd.f32 %v5380_v44, %v4867_v20  ;;  %v4860_v19 = vmul.f32 %v6014_v8, %v4844_v57 }
 0xce9   : > { %4877 = vst.msk [vmem:[%s6901_s10] sm:$0xff] %vm1252_vm1, %v4875_v61  ;;  %v4868_v26 = vmul.f32 %v5379_v6, %v4860_v19 }
 0xceb   : > { %v4876_v63 = vadd.f32 %v5380_v44, %v4868_v26 }
 0xced   : > { %4878 = vst.msk [vmem:[%s6901_s10 + $0x8] sm:$0xff] %vm1252_vm1, %v4876_v63 }
 0xcee PF: > { %s8296_s7 = sld [smem:[#allocation30_spill]]  ;;  %s4893_s20 = sshll.u32 %s6901_s10, 4  ;;  %s8063_s20 = int_to_ptr.vmem [resolvable:$true] %s4893_s20 }
 0xcef   : > { %s8297_s18 = sld [smem:[#allocation42_spill]]  ;;  %s6235_s12 = scalar_lea.vmem %s8063_s20, 256 }
 0xcf0   : > { %s8299_s15 = sld [smem:[#allocation68_spill]]  ;;  %p6236_p11 = scmp.ne.s32.totalorder %s8063_s20, %s6235_s12 }
 0xcf1   : > { %s6396_s29 = smov [#allocation17]  }
 0xcf2   : > { %p6237_p1 = pnand %p6236_p11, %p6720_p0  ;;  %s6239_s3 = sshll.u32 %s6396_s29, 4  ;;  %s6240_s3 = int_to_ptr.vmem [resolvable:$false] %s6239_s3 }
 0xcf3   : > { %s6241_s26 = scalar_lea.vmem %s6240_s3, 512  ;;  %p6242_p5 = scmp.lt.s32.totalorder %s8063_s20, %s6240_s3 }
 0xcf4   : > { %s5394_s21 = sshll.u32 %s8296_s7, 8  ;;  %p6238_p3 = pneg %p6237_p1 }
 0xcf5   : > { %s4880_s6 = scalar_lea.sflag [#allocation5], %s8297_s18  ;;  %p6243_p10 = scmp.lt.s32.totalorder %s6241_s26, %s6235_s12 }
 0xcf6   : > { %s8060_s11 = scalar_lea.hbm %s8299_s15, %s5394_s21 }
 0xcf7   : > { %p6244_p12 = por %p6243_p10, %p6242_p5 }
 0xcf9   : > { %p6245_p2 = pnand %p6244_p12, %p6238_p3 }
 0xcfb   : > { %6248 = shalt.err (!%p6245_p2)
}
 0xcfc   : > { %s6249_s10 = scalar_lea.hbm %s8060_s11, 256  ;;  %s6253_s14 = scalar_lea.hbm %s8299_s15, 512 }
 0xcfd   : > { %p6250_p4 = scmp.ne.s32.totalorder %s8060_s11, %s6249_s10  ;;  %p6254_p8 = scmp.lt.s32.totalorder %s8060_s11, %s8299_s15 }
 0xcfe   : > { %p6255_p13 = scmp.lt.s32.totalorder %s6253_s14, %s6249_s10 }
 0xcff   : > { %p6251_p6 = pnand %p6250_p4, %p6720_p0 }
 0xd00   : > { %p6256_p9 = por %p6255_p13, %p6254_p8 }
 0xd01   : > { %p6252_p7 = pneg %p6251_p6 }
 0xd03   : > { %p6257_p11 = pnand %p6256_p9, %p6252_p7 }
 0xd05   : > { %6260 = shalt.err (!%p6257_p11)
}
 0xd06   : > { %s6397_s9 = smov 128   ;;  %s6398_s13 = smov 8  }
 0xd07   : > { %5655 = dma.vmem_to_hbm [thread:$0]  (%p6720_p0), %s8063_s20, 256, %s8060_s11, %s4880_s6, %s6397_s9, %s6397_s9, %s6398_s13  }
 0xd08 PF: > { %s8300_s19 = sld [smem:[#allocation33_spill]] }
 0xd09   : > { %s8301_s25 = sld [smem:[#allocation26_spill]] }
 0xd0a   : > { %s8302_s5 = sld [smem:[#allocation40_spill]] }
 0xd0e   : > { %p5692_p1 = scmp.ge.s32.totalorder %s8300_s19, 2 }
 0xd0f   : > { %s4908_s1 = sand.u32 1, %s8301_s25  }
 0xd10   : > { %p8303_p3 = scmp.ne.s32.totalorder %s8302_s5, 0  ;;  %s4909_s8 = scalar_lea.sflag [#allocation5], %s4908_s1 }
 0xd12   : > { %p5684_p5 = pnand %p5692_p1, %p8303_p3 }
 0xd14   : > { %p5685_p10 = pneg %p5684_p5 }
 0xd16   : > { %6326 = dma.done.wait (%p5685_p10), %s4909_s8, 256  }
 0xd17   : > { %6328 = vsyncadd (%p5685_p10), %s4909_s8, 4294967040  ;;  %s50_s3 = sadd.s32 1, %s8300_s19   ;;  %s8304_s5 = sld [smem:[#allocation24_spill]] }
 0xd18   : > { %p47_p12 = scmp.ge.s32.totalorder %s50_s3, 6   ;;  %s8305_s26 = sld [smem:[#allocation25_spill]] }
 0xd19   : > { %s8306_s27 = sld [smem:[#allocation37_spill]] }
 0xd1a   : > { %s8307_s28 = sld [smem:[#allocation27_spill]] }
 0xd1b   : > { %s8308_s6 = sld [smem:[#allocation28_spill]] }
 0xd1c   : > { %s8309_s2 = sld [smem:[#allocation41_spill]]  ;;  %49 = sbr.rel (!%p47_p12) target bundleno = 42 (0x2a), region = 280 }
 0xd1d   : > { %s8310_s29 = sld [smem:[#allocation31_spill]] }
 0xd1e   : > { %s8311_s0 = sld [smem:[#allocation32_spill]] }
 0xd1f   : > { %s8312_s7 = sld [smem:[#allocation36_spill]] }
 0xd20   : > { %s8313_s30 = sld [smem:[#allocation38_spill]] }
 0xd21   :  { %4914 = vsyncpa [#allocation4], 1 }
 0xd22   :  { %4916 = vsyncpa [#allocation4 + $0x1], 1 }
 0xd23   :  { %4917 = vsyncpa [#allocation7], 1 }
 0xd24   :  { %4918 = vsyncpa [#allocation10], 1 }
 0xd25   :  { %4920 = vsyncpa [#allocation10 + $0x1], 1 }
 0xd26   :  { %4921 = vsyncpa [#allocation13], 1 }
 0xd27   :  { %4923 = vsyncpa [#allocation13 + $0x1], 1 }
 0xd28   :  { %4924 = vsyncpa [#allocation16], 1 }
 0xd29   :  { %4926 = vsyncpa [#allocation16 + $0x1], 1 }
 0xd2a   :  { %4927 = vsyncpa [#allocation5], 1 }
 0xd2b   :  { %4929 = vsyncpa [#allocation5 + $0x1], 1 }

</bundles_post_ra>
